<compile_context>
chip_gen: v5e
topology: v5e:2x2
jax: 0.10.0
libtpu: 0.0.40
codegen_flags: <defaults>
</compile_context>

<pallas_src>
import jax
import jax.numpy as jnp
from jax import lax
from jax.experimental import pallas as pl
from jax.experimental.pallas import tpu as pltpu

HIDDEN = 128   # fixed by the module: nn.LSTM(1, 128, bidirectional=True)
PAD_B = 8      # pad the (time*batch) row axis to full sublane tiles


def _bilstm_fc_kernel(gin_ref, whh_ref, h0_ref, c0_ref, wfc_ref, bfc_ref,
                      out_ref, hs_ref):
    # gin_ref : (T, 2B, 4H)  precomputed x*W_ih + b, fwd rows then bwd rows
    # whh_ref : (2H, 4H)     stacked [W_hh_f ; W_hh_b]
    # h0_ref  : (2B, H)      stacked initial hidden   c0_ref: (2B, H)
    # wfc_ref : (2H, Ppad)   bfc_ref: (1, Ppad)
    # out_ref : (T*PAD_B, Ppad)
    # hs_ref  : (T*PAD_B, 2H) VMEM scratch for [h_fwd | h_bwd] per (t, b) row
    T = gin_ref.shape[0]
    B2 = gin_ref.shape[1]          # 2B
    B = B2 // 2
    H = h0_ref.shape[1]

    # Zero the padded hidden scratch once so unused pad rows are well defined.
    hs_ref[...] = jnp.zeros_like(hs_ref)

    whh = whh_ref[...]             # (2H, 4H), hoisted out of the loop

    # Block-diagonal mask (2B, 2H): forward rows see only cols 0:H (W_hh_f),
    # backward rows only cols H:2H (W_hh_b).  Built once, float arithmetic only.
    rf = (lax.broadcasted_iota(jnp.int32, (B2, 2 * H), 0) < B).astype(jnp.float32)
    cf = (lax.broadcasted_iota(jnp.int32, (B2, 2 * H), 1) < H).astype(jnp.float32)
    bd_mask = rf * cf + (1.0 - rf) * (1.0 - cf)

    def step(s, carry):
        h, c = carry                                           # (2B, H) each
        # One MXU dot serves both directions via the block-diagonal LHS.
        lhs = jnp.concatenate([h, h], axis=1) * bd_mask        # (2B, 2H)
        gates = jnp.dot(lhs, whh,
                        preferred_element_type=jnp.float32) + gin_ref[s]  # (2B,4H)
        i = jax.nn.sigmoid(gates[:, 0:H])
        f = jax.nn.sigmoid(gates[:, H:2 * H])
        g = jnp.tanh(gates[:, 2 * H:3 * H])
        o = jax.nn.sigmoid(gates[:, 3 * H:4 * H])
        c_new = f * c + i * g
        h_new = o * jnp.tanh(c_new)
        # Forward hidden belongs to output time s, backward hidden to T-1-s.
        # Stores are off the recurrence's dependence chain.
        row_f = pl.multiple_of(s * PAD_B, PAD_B)
        row_b = pl.multiple_of((T - 1 - s) * PAD_B, PAD_B)
        hs_ref[pl.ds(row_f, B), pl.ds(0, H)] = h_new[0:B]
        hs_ref[pl.ds(row_b, B), pl.ds(H, H)] = h_new[B:B2]
        return h_new, c_new

    unroll = True if T <= 32 else 8
    lax.fori_loop(0, T, step, (h0_ref[...], c0_ref[...]), unroll=unroll)

    # Single hoisted, lane-dense FC over every (time, batch) row + one store.
    out_ref[...] = (jnp.dot(hs_ref[...], wfc_ref[...],
                            preferred_element_type=jnp.float32) + bfc_ref[...])


@jax.jit
def phoneme_lang_model_v3(x, params):
    """x: (B, T, 1) float32  ->  (B, T, num_phones) float32 (torch semantics)."""
    B, T, _ = x.shape
    H = HIDDEN
    P = params["w_fc"].shape[1]
    Ppad = ((P + 127) // 128) * 128
    rows = T * PAD_B

    x_tb1 = jnp.transpose(x, (1, 0, 2)).astype(jnp.float32)          # (T, B, 1)

    # Precompute x*W_ih + (b_ih + b_hh) for all steps (cheap, dense XLA).
    gin_f = x_tb1 * params["w_ih_f"] + params["b_f"]                 # (T, B, 4H)
    gin_b = x_tb1[::-1] * params["w_ih_b"] + params["b_b"]           # (T, B, 4H)
    gin = jnp.concatenate([gin_f, gin_b], axis=1)                    # (T, 2B, 4H)

    whh = jnp.concatenate([params["w_hh_f"], params["w_hh_b"]], axis=0)  # (2H,4H)
    h0 = jnp.concatenate([params["h0_f"], params["h0_b"]], axis=0)       # (2B, H)
    c0 = jnp.concatenate([params["c0_f"], params["c0_b"]], axis=0)       # (2B, H)

    # Lane-dense FC weights: pad the phone axis to a multiple of 128.
    wfc = jnp.zeros((2 * H, Ppad), jnp.float32).at[:, :P].set(params["w_fc"])
    bfc = jnp.zeros((1, Ppad), jnp.float32).at[:, :P].set(params["b_fc"])

    flops = (2 * T * (2 * B) * (2 * H) * (4 * H)      # recurrent dots
             + 2 * rows * (2 * H) * Ppad)             # hoisted FC
    transcendentals = T * (2 * B) * (5 * H)           # 4 gates + tanh(c)
    bytes_accessed = 4 * (gin.size + whh.size + h0.size + c0.size
                          + wfc.size + bfc.size + rows * Ppad)

    vmem = pl.BlockSpec(memory_space=pltpu.MemorySpace.VMEM)
    out2d = pl.pallas_call(
        _bilstm_fc_kernel,
        out_shape=jax.ShapeDtypeStruct((rows, Ppad), jnp.float32),
        in_specs=[vmem] * 6,
        out_specs=vmem,
        scratch_shapes=[pltpu.VMEM((rows, 2 * H), jnp.float32)],
        compiler_params=pltpu.CompilerParams(vmem_limit_bytes=32 * 1024 * 1024),
        cost_estimate=pl.CostEstimate(flops=int(flops),
                                      transcendentals=int(transcendentals),
                                      bytes_accessed=int(bytes_accessed)),
    )(gin, whh, h0, c0, wfc, bfc)

    # (T*PAD_B, Ppad) -> (T, PAD_B, Ppad) -> slice real batch / phones -> (B,T,P)
    out = out2d.reshape(T, PAD_B, Ppad)[:, :B, :P]
    return jnp.transpose(out, (1, 0, 2))


def init_params(key, batch, num_phones, hidden=HIDDEN):
    """Deterministic synthetic parameters matching torch's shapes (transposed)."""
    ks = jax.random.split(key, 16)
    s = 1.0 / jnp.sqrt(hidden)

    def u(k, shape):
        return jax.random.uniform(k, shape, jnp.float32, -s, s)

    params = {
        # forward direction
        "w_ih_f": u(ks[0], (1, 4 * hidden)),
        "w_hh_f": u(ks[1], (hidden, 4 * hidden)),
        "b_f":    u(ks[2], (1, 4 * hidden)) + u(ks[3], (1, 4 * hidden)),  # b_ih+b_hh
        # backward direction
        "w_ih_b": u(ks[4], (1, 4 * hidden)),
        "w_hh_b": u(ks[5], (hidden, 4 * hidden)),
        "b_b":    u(ks[6], (1, 4 * hidden)) + u(ks[7], (1, 4 * hidden)),
        # fc: Linear(2H -> P)
        "w_fc":   u(ks[8], (2 * hidden, num_phones)),
        "b_fc":   u(ks[9], (1, num_phones)),
        # TODO(synk): torch draws h0/c0 with torch.randn per forward call; here
        # they are fixed deterministic draws with the same distribution.
        "h0_f": jax.random.normal(ks[10], (batch, hidden), jnp.float32),
        "c0_f": jax.random.normal(ks[11], (batch, hidden), jnp.float32),
        "h0_b": jax.random.normal(ks[12], (batch, hidden), jnp.float32),
        "c0_b": jax.random.normal(ks[13], (batch, hidden), jnp.float32),
    }
    return params


def ref_forward(x, p):
    """Pure-JAX reference of the same math (for correctness check)."""
    def cell(carry, x_t, wih, whh, b):
        h, c = carry
        gates = x_t @ wih + h @ whh + b
        i, f, g, o = jnp.split(gates, 4, axis=-1)
        i, f, o = jax.nn.sigmoid(i), jax.nn.sigmoid(f), jax.nn.sigmoid(o)
        g = jnp.tanh(g)
        c = f * c + i * g
        h = o * jnp.tanh(c)
        return (h, c), h

    xs = jnp.transpose(x, (1, 0, 2))                          # (T, B, 1)
    _, hf = lax.scan(lambda c_, xt: cell(c_, xt, p["w_ih_f"], p["w_hh_f"], p["b_f"]),
                     (p["h0_f"], p["c0_f"]), xs)
    _, hb = lax.scan(lambda c_, xt: cell(c_, xt, p["w_ih_b"], p["w_hh_b"], p["b_b"]),
                     (p["h0_b"], p["c0_b"]), xs[::-1])
    hb = hb[::-1]
    hcat = jnp.concatenate([hf, hb], axis=-1)                 # (T, B, 2H)
    out = hcat @ p["w_fc"] + p["b_fc"]
    return jnp.transpose(out, (1, 0, 2))                      # (B, T, P)


if __name__ == "__main__":
    B, T, NUM_PHONES = 2, 8, 40
    key = jax.random.PRNGKey(0)
    k_x, k_p = jax.random.split(key)

    x = jax.random.normal(k_x, (B, T, 1), jnp.float32)        # torch batch_first input
    params = init_params(k_p, B, NUM_PHONES)

    out = jax.block_until_ready(phoneme_lang_model_v3(x, params))
    assert out.shape == (B, T, NUM_PHONES), out.shape

    ref = jax.block_until_ready(ref_forward(x, params))
    assert jnp.allclose(out, ref, atol=2e-3, rtol=2e-3), float(jnp.max(jnp.abs(out - ref)))

    print("KERNEL_OK")
</pallas_src>

<mosaic_0001>
module attributes {stable_mosaic.version = 11 : i64} {
  func.func @_bilstm_fc_kernel(%arg0: memref<8x4x512xf32, #tpu.memory_space<vmem>>, %arg1: memref<256x512xf32, #tpu.memory_space<vmem>>, %arg2: memref<4x128xf32, #tpu.memory_space<vmem>>, %arg3: memref<4x128xf32, #tpu.memory_space<vmem>>, %arg4: memref<256x128xf32, #tpu.memory_space<vmem>>, %arg5: memref<1x128xf32, #tpu.memory_space<vmem>>, %arg6: memref<64x128xf32, #tpu.memory_space<vmem>>, %arg7: memref<64x256xf32, #tpu.memory_space<vmem>>) attributes {dimension_semantics = [], scalar_prefetch = 0 : i64, scratch_operands = 1 : i64, tpu.core_type = #tpu.core_type<tc>} {
    %cst = arith.constant 0.000000e+00 : f32
    %0 = vector.broadcast %cst : f32 to vector<64x256xf32>
    %c0 = arith.constant 0 : index
    %c0_0 = arith.constant 0 : index
    %1 = vector.load %arg7[%c0, %c0_0] : memref<64x256xf32, #tpu.memory_space<vmem>>, vector<64x256xf32>
    tpu.vector_store %arg7[%c0, %c0_0], %0 {strides = array<i32>} : memref<64x256xf32, #tpu.memory_space<vmem>>, vector<64x256xf32>,
    %c0_1 = arith.constant 0 : index
    %c0_2 = arith.constant 0 : index
    %2 = vector.load %arg1[%c0_1, %c0_2] : memref<256x512xf32, #tpu.memory_space<vmem>>, vector<256x512xf32>
    %3 = tpu.iota {dimensions = array<i32: 0>} : vector<4x256xi32>
    %c2_i32 = arith.constant 2 : i32
    %4 = vector.broadcast %c2_i32 : i32 to vector<4x256xi32>
    %5 = arith.cmpi slt, %3, %4 : vector<4x256xi32>
    %6 = arith.extui %5 : vector<4x256xi1> to vector<4x256xi32>
    %7 = arith.sitofp %6 : vector<4x256xi32> to vector<4x256xf32>
    %8 = tpu.iota {dimensions = array<i32: 1>} : vector<4x256xi32>
    %c128_i32 = arith.constant 128 : i32
    %9 = vector.broadcast %c128_i32 : i32 to vector<4x256xi32>
    %10 = arith.cmpi slt, %8, %9 : vector<4x256xi32>
    %11 = arith.extui %10 : vector<4x256xi1> to vector<4x256xi32>
    %12 = arith.sitofp %11 : vector<4x256xi32> to vector<4x256xf32>
    %13 = arith.mulf %7, %12 : vector<4x256xf32>
    %cst_3 = arith.constant 1.000000e+00 : f32
    %14 = vector.broadcast %cst_3 : f32 to vector<4x256xf32>
    %15 = arith.subf %14, %7 : vector<4x256xf32>
    %cst_4 = arith.constant 1.000000e+00 : f32
    %16 = vector.broadcast %cst_4 : f32 to vector<4x256xf32>
    %17 = arith.subf %16, %12 : vector<4x256xf32>
    %18 = arith.mulf %15, %17 : vector<4x256xf32>
    %19 = arith.addf %13, %18 : vector<4x256xf32>
    %c0_5 = arith.constant 0 : index
    %c0_6 = arith.constant 0 : index
    %20 = vector.load %arg2[%c0_5, %c0_6] : memref<4x128xf32, #tpu.memory_space<vmem>>, vector<4x128xf32>
    %c0_7 = arith.constant 0 : index
    %c0_8 = arith.constant 0 : index
    %21 = vector.load %arg3[%c0_7, %c0_8] : memref<4x128xf32, #tpu.memory_space<vmem>>, vector<4x128xf32>
    %c0_i32 = arith.constant 0 : i32
    %22 = tpu.concatenate %20, %20 in 1 : vector<4x128xf32>, vector<4x128xf32> -> vector<4x256xf32>
    %23 = arith.mulf %22, %19 : vector<4x256xf32>
    %cst_9 = arith.constant dense<0.000000e+00> : vector<4x512xf32>
    %24 = tpu.matmul %23, %2, %cst_9 {dimension_numbers = #tpu.dot_dimension_numbers<[1], [0], [0], [1], [0, 0, 1, 1], [], []>} : vector<4x256xf32>, vector<256x512xf32>, vector<4x512xf32> -> vector<4x512xf32>
    %25 = arith.index_cast %c0_i32 : i32 to index
    %c0_10 = arith.constant 0 : index
    %c0_11 = arith.constant 0 : index
    %26 = vector.load %arg0[%25, %c0_10, %c0_11] : memref<8x4x512xf32, #tpu.memory_space<vmem>>, vector<1x4x512xf32>
    %27 = vector.shape_cast %26 : vector<1x4x512xf32> to vector<4x512xf32>
    %28 = arith.addf %24, %27 : vector<4x512xf32>
    %29 = vector.extract_strided_slice %28 {offsets = [0, 0], sizes = [4, 128], strides = [1, 1]} : vector<4x512xf32> to vector<4x128xf32>
    %30 = arith.negf %29 : vector<4x128xf32>
    %31 = math.exp %30 : vector<4x128xf32>
    %cst_12 = arith.constant 1.000000e+00 : f32
    %32 = vector.broadcast %cst_12 : f32 to vector<4x128xf32>
    %33 = arith.addf %32, %31 : vector<4x128xf32>
    %34 = arith.divf %32, %33 : vector<4x128xf32>
    %35 = vector.extract_strided_slice %28 {offsets = [0, 128], sizes = [4, 128], strides = [1, 1]} : vector<4x512xf32> to vector<4x128xf32>
    %36 = arith.negf %35 : vector<4x128xf32>
    %37 = math.exp %36 : vector<4x128xf32>
    %cst_13 = arith.constant 1.000000e+00 : f32
    %38 = vector.broadcast %cst_13 : f32 to vector<4x128xf32>
    %39 = arith.addf %38, %37 : vector<4x128xf32>
    %40 = arith.divf %38, %39 : vector<4x128xf32>
    %41 = vector.extract_strided_slice %28 {offsets = [0, 256], sizes = [4, 128], strides = [1, 1]} : vector<4x512xf32> to vector<4x128xf32>
    %42 = math.tanh %41 : vector<4x128xf32>
    %43 = vector.extract_strided_slice %28 {offsets = [0, 384], sizes = [4, 128], strides = [1, 1]} : vector<4x512xf32> to vector<4x128xf32>
    %44 = arith.negf %43 : vector<4x128xf32>
    %45 = math.exp %44 : vector<4x128xf32>
    %cst_14 = arith.constant 1.000000e+00 : f32
    %46 = vector.broadcast %cst_14 : f32 to vector<4x128xf32>
    %47 = arith.addf %46, %45 : vector<4x128xf32>
    %48 = arith.divf %46, %47 : vector<4x128xf32>
    %49 = arith.mulf %40, %21 : vector<4x128xf32>
    %50 = arith.mulf %34, %42 : vector<4x128xf32>
    %51 = arith.addf %49, %50 : vector<4x128xf32>
    %52 = math.tanh %51 : vector<4x128xf32>
    %53 = arith.mulf %48, %52 : vector<4x128xf32>
    %c8_i32 = arith.constant 8 : i32
    %54 = arith.muli %c0_i32, %c8_i32 : i32
    %55 = tpu.assume_multiple %54, 8 : i32
    %c7_i32 = arith.constant 7 : i32
    %56 = arith.subi %c7_i32, %c0_i32 : i32
    %c8_i32_15 = arith.constant 8 : i32
    %57 = arith.muli %56, %c8_i32_15 : i32
    %58 = tpu.assume_multiple %57, 8 : i32
    %59 = vector.extract_strided_slice %53 {offsets = [0, 0], sizes = [2, 128], strides = [1, 1]} : vector<4x128xf32> to vector<2x128xf32>
    %60 = arith.index_cast %55 : i32 to index
    %c0_16 = arith.constant 0 : index
    %61 = vector.load %arg7[%60, %c0_16] : memref<64x256xf32, #tpu.memory_space<vmem>>, vector<2x128xf32>
    tpu.vector_store %arg7[%60, %c0_16], %59 {strides = array<i32>} : memref<64x256xf32, #tpu.memory_space<vmem>>, vector<2x128xf32>,
    %62 = vector.extract_strided_slice %53 {offsets = [2, 0], sizes = [2, 128], strides = [1, 1]} : vector<4x128xf32> to vector<2x128xf32>
    %63 = arith.index_cast %58 : i32 to index
    %c128 = arith.constant 128 : index
    %64 = vector.load %arg7[%63, %c128] : memref<64x256xf32, #tpu.memory_space<vmem>>, vector<2x128xf32>
    tpu.vector_store %arg7[%63, %c128], %62 {strides = array<i32>} : memref<64x256xf32, #tpu.memory_space<vmem>>, vector<2x128xf32>,
    %c1_i32 = arith.constant 1 : i32
    %65 = tpu.concatenate %53, %53 in 1 : vector<4x128xf32>, vector<4x128xf32> -> vector<4x256xf32>
    %66 = arith.mulf %65, %19 : vector<4x256xf32>
    %cst_17 = arith.constant dense<0.000000e+00> : vector<4x512xf32>
    %67 = tpu.matmul %66, %2, %cst_17 {dimension_numbers = #tpu.dot_dimension_numbers<[1], [0], [0], [1], [0, 0, 1, 1], [], []>} : vector<4x256xf32>, vector<256x512xf32>, vector<4x512xf32> -> vector<4x512xf32>
    %68 = arith.index_cast %c1_i32 : i32 to index
    %c0_18 = arith.constant 0 : index
    %c0_19 = arith.constant 0 : index
    %69 = vector.load %arg0[%68, %c0_18, %c0_19] : memref<8x4x512xf32, #tpu.memory_space<vmem>>, vector<1x4x512xf32>
    %70 = vector.shape_cast %69 : vector<1x4x512xf32> to vector<4x512xf32>
    %71 = arith.addf %67, %70 : vector<4x512xf32>
    %72 = vector.extract_strided_slice %71 {offsets = [0, 0], sizes = [4, 128], strides = [1, 1]} : vector<4x512xf32> to vector<4x128xf32>
    %73 = arith.negf %72 : vector<4x128xf32>
    %74 = math.exp %73 : vector<4x128xf32>
    %cst_20 = arith.constant 1.000000e+00 : f32
    %75 = vector.broadcast %cst_20 : f32 to vector<4x128xf32>
    %76 = arith.addf %75, %74 : vector<4x128xf32>
    %77 = arith.divf %75, %76 : vector<4x128xf32>
    %78 = vector.extract_strided_slice %71 {offsets = [0, 128], sizes = [4, 128], strides = [1, 1]} : vector<4x512xf32> to vector<4x128xf32>
    %79 = arith.negf %78 : vector<4x128xf32>
    %80 = math.exp %79 : vector<4x128xf32>
    %cst_21 = arith.constant 1.000000e+00 : f32
    %81 = vector.broadcast %cst_21 : f32 to vector<4x128xf32>
    %82 = arith.addf %81, %80 : vector<4x128xf32>
    %83 = arith.divf %81, %82 : vector<4x128xf32>
    %84 = vector.extract_strided_slice %71 {offsets = [0, 256], sizes = [4, 128], strides = [1, 1]} : vector<4x512xf32> to vector<4x128xf32>
    %85 = math.tanh %84 : vector<4x128xf32>
    %86 = vector.extract_strided_slice %71 {offsets = [0, 384], sizes = [4, 128], strides = [1, 1]} : vector<4x512xf32> to vector<4x128xf32>
    %87 = arith.negf %86 : vector<4x128xf32>
    %88 = math.exp %87 : vector<4x128xf32>
    %cst_22 = arith.constant 1.000000e+00 : f32
    %89 = vector.broadcast %cst_22 : f32 to vector<4x128xf32>
    %90 = arith.addf %89, %88 : vector<4x128xf32>
    %91 = arith.divf %89, %90 : vector<4x128xf32>
    %92 = arith.mulf %83, %51 : vector<4x128xf32>
    %93 = arith.mulf %77, %85 : vector<4x128xf32>
    %94 = arith.addf %92, %93 : vector<4x128xf32>
    %95 = math.tanh %94 : vector<4x128xf32>
    %96 = arith.mulf %91, %95 : vector<4x128xf32>
    %c8_i32_23 = arith.constant 8 : i32
    %97 = arith.muli %c1_i32, %c8_i32_23 : i32
    %98 = tpu.assume_multiple %97, 8 : i32
    %c7_i32_24 = arith.constant 7 : i32
    %99 = arith.subi %c7_i32_24, %c1_i32 : i32
    %c8_i32_25 = arith.constant 8 : i32
    %100 = arith.muli %99, %c8_i32_25 : i32
    %101 = tpu.assume_multiple %100, 8 : i32
    %102 = vector.extract_strided_slice %96 {offsets = [0, 0], sizes = [2, 128], strides = [1, 1]} : vector<4x128xf32> to vector<2x128xf32>
    %103 = arith.index_cast %98 : i32 to index
    %c0_26 = arith.constant 0 : index
    %104 = vector.load %arg7[%103, %c0_26] : memref<64x256xf32, #tpu.memory_space<vmem>>, vector<2x128xf32>
    tpu.vector_store %arg7[%103, %c0_26], %102 {strides = array<i32>} : memref<64x256xf32, #tpu.memory_space<vmem>>, vector<2x128xf32>,
    %105 = vector.extract_strided_slice %96 {offsets = [2, 0], sizes = [2, 128], strides = [1, 1]} : vector<4x128xf32> to vector<2x128xf32>
    %106 = arith.index_cast %101 : i32 to index
    %c128_27 = arith.constant 128 : index
    %107 = vector.load %arg7[%106, %c128_27] : memref<64x256xf32, #tpu.memory_space<vmem>>, vector<2x128xf32>
    tpu.vector_store %arg7[%106, %c128_27], %105 {strides = array<i32>} : memref<64x256xf32, #tpu.memory_space<vmem>>, vector<2x128xf32>,
    %c2_i32_28 = arith.constant 2 : i32
    %108 = tpu.concatenate %96, %96 in 1 : vector<4x128xf32>, vector<4x128xf32> -> vector<4x256xf32>
    %109 = arith.mulf %108, %19 : vector<4x256xf32>
    %cst_29 = arith.constant dense<0.000000e+00> : vector<4x512xf32>
    %110 = tpu.matmul %109, %2, %cst_29 {dimension_numbers = #tpu.dot_dimension_numbers<[1], [0], [0], [1], [0, 0, 1, 1], [], []>} : vector<4x256xf32>, vector<256x512xf32>, vector<4x512xf32> -> vector<4x512xf32>
    %111 = arith.index_cast %c2_i32_28 : i32 to index
    %c0_30 = arith.constant 0 : index
    %c0_31 = arith.constant 0 : index
    %112 = vector.load %arg0[%111, %c0_30, %c0_31] : memref<8x4x512xf32, #tpu.memory_space<vmem>>, vector<1x4x512xf32>
    %113 = vector.shape_cast %112 : vector<1x4x512xf32> to vector<4x512xf32>
    %114 = arith.addf %110, %113 : vector<4x512xf32>
    %115 = vector.extract_strided_slice %114 {offsets = [0, 0], sizes = [4, 128], strides = [1, 1]} : vector<4x512xf32> to vector<4x128xf32>
    %116 = arith.negf %115 : vector<4x128xf32>
    %117 = math.exp %116 : vector<4x128xf32>
    %cst_32 = arith.constant 1.000000e+00 : f32
    %118 = vector.broadcast %cst_32 : f32 to vector<4x128xf32>
    %119 = arith.addf %118, %117 : vector<4x128xf32>
    %120 = arith.divf %118, %119 : vector<4x128xf32>
    %121 = vector.extract_strided_slice %114 {offsets = [0, 128], sizes = [4, 128], strides = [1, 1]} : vector<4x512xf32> to vector<4x128xf32>
    %122 = arith.negf %121 : vector<4x128xf32>
    %123 = math.exp %122 : vector<4x128xf32>
    %cst_33 = arith.constant 1.000000e+00 : f32
    %124 = vector.broadcast %cst_33 : f32 to vector<4x128xf32>
    %125 = arith.addf %124, %123 : vector<4x128xf32>
    %126 = arith.divf %124, %125 : vector<4x128xf32>
    %127 = vector.extract_strided_slice %114 {offsets = [0, 256], sizes = [4, 128], strides = [1, 1]} : vector<4x512xf32> to vector<4x128xf32>
    %128 = math.tanh %127 : vector<4x128xf32>
    %129 = vector.extract_strided_slice %114 {offsets = [0, 384], sizes = [4, 128], strides = [1, 1]} : vector<4x512xf32> to vector<4x128xf32>
    %130 = arith.negf %129 : vector<4x128xf32>
    %131 = math.exp %130 : vector<4x128xf32>
    %cst_34 = arith.constant 1.000000e+00 : f32
    %132 = vector.broadcast %cst_34 : f32 to vector<4x128xf32>
    %133 = arith.addf %132, %131 : vector<4x128xf32>
    %134 = arith.divf %132, %133 : vector<4x128xf32>
    %135 = arith.mulf %126, %94 : vector<4x128xf32>
    %136 = arith.mulf %120, %128 : vector<4x128xf32>
    %137 = arith.addf %135, %136 : vector<4x128xf32>
    %138 = math.tanh %137 : vector<4x128xf32>
    %139 = arith.mulf %134, %138 : vector<4x128xf32>
    %c8_i32_35 = arith.constant 8 : i32
    %140 = arith.muli %c2_i32_28, %c8_i32_35 : i32
    %141 = tpu.assume_multiple %140, 8 : i32
    %c7_i32_36 = arith.constant 7 : i32
    %142 = arith.subi %c7_i32_36, %c2_i32_28 : i32
    %c8_i32_37 = arith.constant 8 : i32
    %143 = arith.muli %142, %c8_i32_37 : i32
    %144 = tpu.assume_multiple %143, 8 : i32
    %145 = vector.extract_strided_slice %139 {offsets = [0, 0], sizes = [2, 128], strides = [1, 1]} : vector<4x128xf32> to vector<2x128xf32>
    %146 = arith.index_cast %141 : i32 to index
    %c0_38 = arith.constant 0 : index
    %147 = vector.load %arg7[%146, %c0_38] : memref<64x256xf32, #tpu.memory_space<vmem>>, vector<2x128xf32>
    tpu.vector_store %arg7[%146, %c0_38], %145 {strides = array<i32>} : memref<64x256xf32, #tpu.memory_space<vmem>>, vector<2x128xf32>,
    %148 = vector.extract_strided_slice %139 {offsets = [2, 0], sizes = [2, 128], strides = [1, 1]} : vector<4x128xf32> to vector<2x128xf32>
    %149 = arith.index_cast %144 : i32 to index
    %c128_39 = arith.constant 128 : index
    %150 = vector.load %arg7[%149, %c128_39] : memref<64x256xf32, #tpu.memory_space<vmem>>, vector<2x128xf32>
    tpu.vector_store %arg7[%149, %c128_39], %148 {strides = array<i32>} : memref<64x256xf32, #tpu.memory_space<vmem>>, vector<2x128xf32>,
    %c3_i32 = arith.constant 3 : i32
    %151 = tpu.concatenate %139, %139 in 1 : vector<4x128xf32>, vector<4x128xf32> -> vector<4x256xf32>
    %152 = arith.mulf %151, %19 : vector<4x256xf32>
    %cst_40 = arith.constant dense<0.000000e+00> : vector<4x512xf32>
    %153 = tpu.matmul %152, %2, %cst_40 {dimension_numbers = #tpu.dot_dimension_numbers<[1], [0], [0], [1], [0, 0, 1, 1], [], []>} : vector<4x256xf32>, vector<256x512xf32>, vector<4x512xf32> -> vector<4x512xf32>
    %154 = arith.index_cast %c3_i32 : i32 to index
    %c0_41 = arith.constant 0 : index
    %c0_42 = arith.constant 0 : index
    %155 = vector.load %arg0[%154, %c0_41, %c0_42] : memref<8x4x512xf32, #tpu.memory_space<vmem>>, vector<1x4x512xf32>
    %156 = vector.shape_cast %155 : vector<1x4x512xf32> to vector<4x512xf32>
    %157 = arith.addf %153, %156 : vector<4x512xf32>
    %158 = vector.extract_strided_slice %157 {offsets = [0, 0], sizes = [4, 128], strides = [1, 1]} : vector<4x512xf32> to vector<4x128xf32>
    %159 = arith.negf %158 : vector<4x128xf32>
    %160 = math.exp %159 : vector<4x128xf32>
    %cst_43 = arith.constant 1.000000e+00 : f32
    %161 = vector.broadcast %cst_43 : f32 to vector<4x128xf32>
    %162 = arith.addf %161, %160 : vector<4x128xf32>
    %163 = arith.divf %161, %162 : vector<4x128xf32>
    %164 = vector.extract_strided_slice %157 {offsets = [0, 128], sizes = [4, 128], strides = [1, 1]} : vector<4x512xf32> to vector<4x128xf32>
    %165 = arith.negf %164 : vector<4x128xf32>
    %166 = math.exp %165 : vector<4x128xf32>
    %cst_44 = arith.constant 1.000000e+00 : f32
    %167 = vector.broadcast %cst_44 : f32 to vector<4x128xf32>
    %168 = arith.addf %167, %166 : vector<4x128xf32>
    %169 = arith.divf %167, %168 : vector<4x128xf32>
    %170 = vector.extract_strided_slice %157 {offsets = [0, 256], sizes = [4, 128], strides = [1, 1]} : vector<4x512xf32> to vector<4x128xf32>
    %171 = math.tanh %170 : vector<4x128xf32>
    %172 = vector.extract_strided_slice %157 {offsets = [0, 384], sizes = [4, 128], strides = [1, 1]} : vector<4x512xf32> to vector<4x128xf32>
    %173 = arith.negf %172 : vector<4x128xf32>
    %174 = math.exp %173 : vector<4x128xf32>
    %cst_45 = arith.constant 1.000000e+00 : f32
    %175 = vector.broadcast %cst_45 : f32 to vector<4x128xf32>
    %176 = arith.addf %175, %174 : vector<4x128xf32>
    %177 = arith.divf %175, %176 : vector<4x128xf32>
    %178 = arith.mulf %169, %137 : vector<4x128xf32>
    %179 = arith.mulf %163, %171 : vector<4x128xf32>
    %180 = arith.addf %178, %179 : vector<4x128xf32>
    %181 = math.tanh %180 : vector<4x128xf32>
    %182 = arith.mulf %177, %181 : vector<4x128xf32>
    %c8_i32_46 = arith.constant 8 : i32
    %183 = arith.muli %c3_i32, %c8_i32_46 : i32
    %184 = tpu.assume_multiple %183, 8 : i32
    %c7_i32_47 = arith.constant 7 : i32
    %185 = arith.subi %c7_i32_47, %c3_i32 : i32
    %c8_i32_48 = arith.constant 8 : i32
    %186 = arith.muli %185, %c8_i32_48 : i32
    %187 = tpu.assume_multiple %186, 8 : i32
    %188 = vector.extract_strided_slice %182 {offsets = [0, 0], sizes = [2, 128], strides = [1, 1]} : vector<4x128xf32> to vector<2x128xf32>
    %189 = arith.index_cast %184 : i32 to index
    %c0_49 = arith.constant 0 : index
    %190 = vector.load %arg7[%189, %c0_49] : memref<64x256xf32, #tpu.memory_space<vmem>>, vector<2x128xf32>
    tpu.vector_store %arg7[%189, %c0_49], %188 {strides = array<i32>} : memref<64x256xf32, #tpu.memory_space<vmem>>, vector<2x128xf32>,
    %191 = vector.extract_strided_slice %182 {offsets = [2, 0], sizes = [2, 128], strides = [1, 1]} : vector<4x128xf32> to vector<2x128xf32>
    %192 = arith.index_cast %187 : i32 to index
    %c128_50 = arith.constant 128 : index
    %193 = vector.load %arg7[%192, %c128_50] : memref<64x256xf32, #tpu.memory_space<vmem>>, vector<2x128xf32>
    tpu.vector_store %arg7[%192, %c128_50], %191 {strides = array<i32>} : memref<64x256xf32, #tpu.memory_space<vmem>>, vector<2x128xf32>,
    %c4_i32 = arith.constant 4 : i32
    %194 = tpu.concatenate %182, %182 in 1 : vector<4x128xf32>, vector<4x128xf32> -> vector<4x256xf32>
    %195 = arith.mulf %194, %19 : vector<4x256xf32>
    %cst_51 = arith.constant dense<0.000000e+00> : vector<4x512xf32>
    %196 = tpu.matmul %195, %2, %cst_51 {dimension_numbers = #tpu.dot_dimension_numbers<[1], [0], [0], [1], [0, 0, 1, 1], [], []>} : vector<4x256xf32>, vector<256x512xf32>, vector<4x512xf32> -> vector<4x512xf32>
    %197 = arith.index_cast %c4_i32 : i32 to index
    %c0_52 = arith.constant 0 : index
    %c0_53 = arith.constant 0 : index
    %198 = vector.load %arg0[%197, %c0_52, %c0_53] : memref<8x4x512xf32, #tpu.memory_space<vmem>>, vector<1x4x512xf32>
    %199 = vector.shape_cast %198 : vector<1x4x512xf32> to vector<4x512xf32>
    %200 = arith.addf %196, %199 : vector<4x512xf32>
    %201 = vector.extract_strided_slice %200 {offsets = [0, 0], sizes = [4, 128], strides = [1, 1]} : vector<4x512xf32> to vector<4x128xf32>
    %202 = arith.negf %201 : vector<4x128xf32>
    %203 = math.exp %202 : vector<4x128xf32>
    %cst_54 = arith.constant 1.000000e+00 : f32
    %204 = vector.broadcast %cst_54 : f32 to vector<4x128xf32>
    %205 = arith.addf %204, %203 : vector<4x128xf32>
    %206 = arith.divf %204, %205 : vector<4x128xf32>
    %207 = vector.extract_strided_slice %200 {offsets = [0, 128], sizes = [4, 128], strides = [1, 1]} : vector<4x512xf32> to vector<4x128xf32>
    %208 = arith.negf %207 : vector<4x128xf32>
    %209 = math.exp %208 : vector<4x128xf32>
    %cst_55 = arith.constant 1.000000e+00 : f32
    %210 = vector.broadcast %cst_55 : f32 to vector<4x128xf32>
    %211 = arith.addf %210, %209 : vector<4x128xf32>
    %212 = arith.divf %210, %211 : vector<4x128xf32>
    %213 = vector.extract_strided_slice %200 {offsets = [0, 256], sizes = [4, 128], strides = [1, 1]} : vector<4x512xf32> to vector<4x128xf32>
    %214 = math.tanh %213 : vector<4x128xf32>
    %215 = vector.extract_strided_slice %200 {offsets = [0, 384], sizes = [4, 128], strides = [1, 1]} : vector<4x512xf32> to vector<4x128xf32>
    %216 = arith.negf %215 : vector<4x128xf32>
    %217 = math.exp %216 : vector<4x128xf32>
    %cst_56 = arith.constant 1.000000e+00 : f32
    %218 = vector.broadcast %cst_56 : f32 to vector<4x128xf32>
    %219 = arith.addf %218, %217 : vector<4x128xf32>
    %220 = arith.divf %218, %219 : vector<4x128xf32>
    %221 = arith.mulf %212, %180 : vector<4x128xf32>
    %222 = arith.mulf %206, %214 : vector<4x128xf32>
    %223 = arith.addf %221, %222 : vector<4x128xf32>
    %224 = math.tanh %223 : vector<4x128xf32>
    %225 = arith.mulf %220, %224 : vector<4x128xf32>
    %c8_i32_57 = arith.constant 8 : i32
    %226 = arith.muli %c4_i32, %c8_i32_57 : i32
    %227 = tpu.assume_multiple %226, 8 : i32
    %c7_i32_58 = arith.constant 7 : i32
    %228 = arith.subi %c7_i32_58, %c4_i32 : i32
    %c8_i32_59 = arith.constant 8 : i32
    %229 = arith.muli %228, %c8_i32_59 : i32
    %230 = tpu.assume_multiple %229, 8 : i32
    %231 = vector.extract_strided_slice %225 {offsets = [0, 0], sizes = [2, 128], strides = [1, 1]} : vector<4x128xf32> to vector<2x128xf32>
    %232 = arith.index_cast %227 : i32 to index
    %c0_60 = arith.constant 0 : index
    %233 = vector.load %arg7[%232, %c0_60] : memref<64x256xf32, #tpu.memory_space<vmem>>, vector<2x128xf32>
    tpu.vector_store %arg7[%232, %c0_60], %231 {strides = array<i32>} : memref<64x256xf32, #tpu.memory_space<vmem>>, vector<2x128xf32>,
    %234 = vector.extract_strided_slice %225 {offsets = [2, 0], sizes = [2, 128], strides = [1, 1]} : vector<4x128xf32> to vector<2x128xf32>
    %235 = arith.index_cast %230 : i32 to index
    %c128_61 = arith.constant 128 : index
    %236 = vector.load %arg7[%235, %c128_61] : memref<64x256xf32, #tpu.memory_space<vmem>>, vector<2x128xf32>
    tpu.vector_store %arg7[%235, %c128_61], %234 {strides = array<i32>} : memref<64x256xf32, #tpu.memory_space<vmem>>, vector<2x128xf32>,
    %c5_i32 = arith.constant 5 : i32
    %237 = tpu.concatenate %225, %225 in 1 : vector<4x128xf32>, vector<4x128xf32> -> vector<4x256xf32>
    %238 = arith.mulf %237, %19 : vector<4x256xf32>
    %cst_62 = arith.constant dense<0.000000e+00> : vector<4x512xf32>
    %239 = tpu.matmul %238, %2, %cst_62 {dimension_numbers = #tpu.dot_dimension_numbers<[1], [0], [0], [1], [0, 0, 1, 1], [], []>} : vector<4x256xf32>, vector<256x512xf32>, vector<4x512xf32> -> vector<4x512xf32>
    %240 = arith.index_cast %c5_i32 : i32 to index
    %c0_63 = arith.constant 0 : index
    %c0_64 = arith.constant 0 : index
    %241 = vector.load %arg0[%240, %c0_63, %c0_64] : memref<8x4x512xf32, #tpu.memory_space<vmem>>, vector<1x4x512xf32>
    %242 = vector.shape_cast %241 : vector<1x4x512xf32> to vector<4x512xf32>
    %243 = arith.addf %239, %242 : vector<4x512xf32>
    %244 = vector.extract_strided_slice %243 {offsets = [0, 0], sizes = [4, 128], strides = [1, 1]} : vector<4x512xf32> to vector<4x128xf32>
    %245 = arith.negf %244 : vector<4x128xf32>
    %246 = math.exp %245 : vector<4x128xf32>
    %cst_65 = arith.constant 1.000000e+00 : f32
    %247 = vector.broadcast %cst_65 : f32 to vector<4x128xf32>
    %248 = arith.addf %247, %246 : vector<4x128xf32>
    %249 = arith.divf %247, %248 : vector<4x128xf32>
    %250 = vector.extract_strided_slice %243 {offsets = [0, 128], sizes = [4, 128], strides = [1, 1]} : vector<4x512xf32> to vector<4x128xf32>
    %251 = arith.negf %250 : vector<4x128xf32>
    %252 = math.exp %251 : vector<4x128xf32>
    %cst_66 = arith.constant 1.000000e+00 : f32
    %253 = vector.broadcast %cst_66 : f32 to vector<4x128xf32>
    %254 = arith.addf %253, %252 : vector<4x128xf32>
    %255 = arith.divf %253, %254 : vector<4x128xf32>
    %256 = vector.extract_strided_slice %243 {offsets = [0, 256], sizes = [4, 128], strides = [1, 1]} : vector<4x512xf32> to vector<4x128xf32>
    %257 = math.tanh %256 : vector<4x128xf32>
    %258 = vector.extract_strided_slice %243 {offsets = [0, 384], sizes = [4, 128], strides = [1, 1]} : vector<4x512xf32> to vector<4x128xf32>
    %259 = arith.negf %258 : vector<4x128xf32>
    %260 = math.exp %259 : vector<4x128xf32>
    %cst_67 = arith.constant 1.000000e+00 : f32
    %261 = vector.broadcast %cst_67 : f32 to vector<4x128xf32>
    %262 = arith.addf %261, %260 : vector<4x128xf32>
    %263 = arith.divf %261, %262 : vector<4x128xf32>
    %264 = arith.mulf %255, %223 : vector<4x128xf32>
    %265 = arith.mulf %249, %257 : vector<4x128xf32>
    %266 = arith.addf %264, %265 : vector<4x128xf32>
    %267 = math.tanh %266 : vector<4x128xf32>
    %268 = arith.mulf %263, %267 : vector<4x128xf32>
    %c8_i32_68 = arith.constant 8 : i32
    %269 = arith.muli %c5_i32, %c8_i32_68 : i32
    %270 = tpu.assume_multiple %269, 8 : i32
    %c7_i32_69 = arith.constant 7 : i32
    %271 = arith.subi %c7_i32_69, %c5_i32 : i32
    %c8_i32_70 = arith.constant 8 : i32
    %272 = arith.muli %271, %c8_i32_70 : i32
    %273 = tpu.assume_multiple %272, 8 : i32
    %274 = vector.extract_strided_slice %268 {offsets = [0, 0], sizes = [2, 128], strides = [1, 1]} : vector<4x128xf32> to vector<2x128xf32>
    %275 = arith.index_cast %270 : i32 to index
    %c0_71 = arith.constant 0 : index
    %276 = vector.load %arg7[%275, %c0_71] : memref<64x256xf32, #tpu.memory_space<vmem>>, vector<2x128xf32>
    tpu.vector_store %arg7[%275, %c0_71], %274 {strides = array<i32>} : memref<64x256xf32, #tpu.memory_space<vmem>>, vector<2x128xf32>,
    %277 = vector.extract_strided_slice %268 {offsets = [2, 0], sizes = [2, 128], strides = [1, 1]} : vector<4x128xf32> to vector<2x128xf32>
    %278 = arith.index_cast %273 : i32 to index
    %c128_72 = arith.constant 128 : index
    %279 = vector.load %arg7[%278, %c128_72] : memref<64x256xf32, #tpu.memory_space<vmem>>, vector<2x128xf32>
    tpu.vector_store %arg7[%278, %c128_72], %277 {strides = array<i32>} : memref<64x256xf32, #tpu.memory_space<vmem>>, vector<2x128xf32>,
    %c6_i32 = arith.constant 6 : i32
    %280 = tpu.concatenate %268, %268 in 1 : vector<4x128xf32>, vector<4x128xf32> -> vector<4x256xf32>
    %281 = arith.mulf %280, %19 : vector<4x256xf32>
    %cst_73 = arith.constant dense<0.000000e+00> : vector<4x512xf32>
    %282 = tpu.matmul %281, %2, %cst_73 {dimension_numbers = #tpu.dot_dimension_numbers<[1], [0], [0], [1], [0, 0, 1, 1], [], []>} : vector<4x256xf32>, vector<256x512xf32>, vector<4x512xf32> -> vector<4x512xf32>
    %283 = arith.index_cast %c6_i32 : i32 to index
    %c0_74 = arith.constant 0 : index
    %c0_75 = arith.constant 0 : index
    %284 = vector.load %arg0[%283, %c0_74, %c0_75] : memref<8x4x512xf32, #tpu.memory_space<vmem>>, vector<1x4x512xf32>
    %285 = vector.shape_cast %284 : vector<1x4x512xf32> to vector<4x512xf32>
    %286 = arith.addf %282, %285 : vector<4x512xf32>
    %287 = vector.extract_strided_slice %286 {offsets = [0, 0], sizes = [4, 128], strides = [1, 1]} : vector<4x512xf32> to vector<4x128xf32>
    %288 = arith.negf %287 : vector<4x128xf32>
    %289 = math.exp %288 : vector<4x128xf32>
    %cst_76 = arith.constant 1.000000e+00 : f32
    %290 = vector.broadcast %cst_76 : f32 to vector<4x128xf32>
    %291 = arith.addf %290, %289 : vector<4x128xf32>
    %292 = arith.divf %290, %291 : vector<4x128xf32>
    %293 = vector.extract_strided_slice %286 {offsets = [0, 128], sizes = [4, 128], strides = [1, 1]} : vector<4x512xf32> to vector<4x128xf32>
    %294 = arith.negf %293 : vector<4x128xf32>
    %295 = math.exp %294 : vector<4x128xf32>
    %cst_77 = arith.constant 1.000000e+00 : f32
    %296 = vector.broadcast %cst_77 : f32 to vector<4x128xf32>
    %297 = arith.addf %296, %295 : vector<4x128xf32>
    %298 = arith.divf %296, %297 : vector<4x128xf32>
    %299 = vector.extract_strided_slice %286 {offsets = [0, 256], sizes = [4, 128], strides = [1, 1]} : vector<4x512xf32> to vector<4x128xf32>
    %300 = math.tanh %299 : vector<4x128xf32>
    %301 = vector.extract_strided_slice %286 {offsets = [0, 384], sizes = [4, 128], strides = [1, 1]} : vector<4x512xf32> to vector<4x128xf32>
    %302 = arith.negf %301 : vector<4x128xf32>
    %303 = math.exp %302 : vector<4x128xf32>
    %cst_78 = arith.constant 1.000000e+00 : f32
    %304 = vector.broadcast %cst_78 : f32 to vector<4x128xf32>
    %305 = arith.addf %304, %303 : vector<4x128xf32>
    %306 = arith.divf %304, %305 : vector<4x128xf32>
    %307 = arith.mulf %298, %266 : vector<4x128xf32>
    %308 = arith.mulf %292, %300 : vector<4x128xf32>
    %309 = arith.addf %307, %308 : vector<4x128xf32>
    %310 = math.tanh %309 : vector<4x128xf32>
    %311 = arith.mulf %306, %310 : vector<4x128xf32>
    %c8_i32_79 = arith.constant 8 : i32
    %312 = arith.muli %c6_i32, %c8_i32_79 : i32
    %313 = tpu.assume_multiple %312, 8 : i32
    %c7_i32_80 = arith.constant 7 : i32
    %314 = arith.subi %c7_i32_80, %c6_i32 : i32
    %c8_i32_81 = arith.constant 8 : i32
    %315 = arith.muli %314, %c8_i32_81 : i32
    %316 = tpu.assume_multiple %315, 8 : i32
    %317 = vector.extract_strided_slice %311 {offsets = [0, 0], sizes = [2, 128], strides = [1, 1]} : vector<4x128xf32> to vector<2x128xf32>
    %318 = arith.index_cast %313 : i32 to index
    %c0_82 = arith.constant 0 : index
    %319 = vector.load %arg7[%318, %c0_82] : memref<64x256xf32, #tpu.memory_space<vmem>>, vector<2x128xf32>
    tpu.vector_store %arg7[%318, %c0_82], %317 {strides = array<i32>} : memref<64x256xf32, #tpu.memory_space<vmem>>, vector<2x128xf32>,
    %320 = vector.extract_strided_slice %311 {offsets = [2, 0], sizes = [2, 128], strides = [1, 1]} : vector<4x128xf32> to vector<2x128xf32>
    %321 = arith.index_cast %316 : i32 to index
    %c128_83 = arith.constant 128 : index
    %322 = vector.load %arg7[%321, %c128_83] : memref<64x256xf32, #tpu.memory_space<vmem>>, vector<2x128xf32>
    tpu.vector_store %arg7[%321, %c128_83], %320 {strides = array<i32>} : memref<64x256xf32, #tpu.memory_space<vmem>>, vector<2x128xf32>,
    %c7_i32_84 = arith.constant 7 : i32
    %323 = tpu.concatenate %311, %311 in 1 : vector<4x128xf32>, vector<4x128xf32> -> vector<4x256xf32>
    %324 = arith.mulf %323, %19 : vector<4x256xf32>
    %cst_85 = arith.constant dense<0.000000e+00> : vector<4x512xf32>
    %325 = tpu.matmul %324, %2, %cst_85 {dimension_numbers = #tpu.dot_dimension_numbers<[1], [0], [0], [1], [0, 0, 1, 1], [], []>} : vector<4x256xf32>, vector<256x512xf32>, vector<4x512xf32> -> vector<4x512xf32>
    %326 = arith.index_cast %c7_i32_84 : i32 to index
    %c0_86 = arith.constant 0 : index
    %c0_87 = arith.constant 0 : index
    %327 = vector.load %arg0[%326, %c0_86, %c0_87] : memref<8x4x512xf32, #tpu.memory_space<vmem>>, vector<1x4x512xf32>
    %328 = vector.shape_cast %327 : vector<1x4x512xf32> to vector<4x512xf32>
    %329 = arith.addf %325, %328 : vector<4x512xf32>
    %330 = vector.extract_strided_slice %329 {offsets = [0, 0], sizes = [4, 128], strides = [1, 1]} : vector<4x512xf32> to vector<4x128xf32>
    %331 = arith.negf %330 : vector<4x128xf32>
    %332 = math.exp %331 : vector<4x128xf32>
    %cst_88 = arith.constant 1.000000e+00 : f32
    %333 = vector.broadcast %cst_88 : f32 to vector<4x128xf32>
    %334 = arith.addf %333, %332 : vector<4x128xf32>
    %335 = arith.divf %333, %334 : vector<4x128xf32>
    %336 = vector.extract_strided_slice %329 {offsets = [0, 128], sizes = [4, 128], strides = [1, 1]} : vector<4x512xf32> to vector<4x128xf32>
    %337 = arith.negf %336 : vector<4x128xf32>
    %338 = math.exp %337 : vector<4x128xf32>
    %cst_89 = arith.constant 1.000000e+00 : f32
    %339 = vector.broadcast %cst_89 : f32 to vector<4x128xf32>
    %340 = arith.addf %339, %338 : vector<4x128xf32>
    %341 = arith.divf %339, %340 : vector<4x128xf32>
    %342 = vector.extract_strided_slice %329 {offsets = [0, 256], sizes = [4, 128], strides = [1, 1]} : vector<4x512xf32> to vector<4x128xf32>
    %343 = math.tanh %342 : vector<4x128xf32>
    %344 = vector.extract_strided_slice %329 {offsets = [0, 384], sizes = [4, 128], strides = [1, 1]} : vector<4x512xf32> to vector<4x128xf32>
    %345 = arith.negf %344 : vector<4x128xf32>
    %346 = math.exp %345 : vector<4x128xf32>
    %cst_90 = arith.constant 1.000000e+00 : f32
    %347 = vector.broadcast %cst_90 : f32 to vector<4x128xf32>
    %348 = arith.addf %347, %346 : vector<4x128xf32>
    %349 = arith.divf %347, %348 : vector<4x128xf32>
    %350 = arith.mulf %341, %309 : vector<4x128xf32>
    %351 = arith.mulf %335, %343 : vector<4x128xf32>
    %352 = arith.addf %350, %351 : vector<4x128xf32>
    %353 = math.tanh %352 : vector<4x128xf32>
    %354 = arith.mulf %349, %353 : vector<4x128xf32>
    %c8_i32_91 = arith.constant 8 : i32
    %355 = arith.muli %c7_i32_84, %c8_i32_91 : i32
    %356 = tpu.assume_multiple %355, 8 : i32
    %c7_i32_92 = arith.constant 7 : i32
    %357 = arith.subi %c7_i32_92, %c7_i32_84 : i32
    %c8_i32_93 = arith.constant 8 : i32
    %358 = arith.muli %357, %c8_i32_93 : i32
    %359 = tpu.assume_multiple %358, 8 : i32
    %360 = vector.extract_strided_slice %354 {offsets = [0, 0], sizes = [2, 128], strides = [1, 1]} : vector<4x128xf32> to vector<2x128xf32>
    %361 = arith.index_cast %356 : i32 to index
    %c0_94 = arith.constant 0 : index
    %362 = vector.load %arg7[%361, %c0_94] : memref<64x256xf32, #tpu.memory_space<vmem>>, vector<2x128xf32>
    tpu.vector_store %arg7[%361, %c0_94], %360 {strides = array<i32>} : memref<64x256xf32, #tpu.memory_space<vmem>>, vector<2x128xf32>,
    %363 = vector.extract_strided_slice %354 {offsets = [2, 0], sizes = [2, 128], strides = [1, 1]} : vector<4x128xf32> to vector<2x128xf32>
    %364 = arith.index_cast %359 : i32 to index
    %c128_95 = arith.constant 128 : index
    %365 = vector.load %arg7[%364, %c128_95] : memref<64x256xf32, #tpu.memory_space<vmem>>, vector<2x128xf32>
    tpu.vector_store %arg7[%364, %c128_95], %363 {strides = array<i32>} : memref<64x256xf32, #tpu.memory_space<vmem>>, vector<2x128xf32>,
    %c8_i32_96 = arith.constant 8 : i32
    %c0_97 = arith.constant 0 : index
    %c0_98 = arith.constant 0 : index
    %366 = vector.load %arg7[%c0_97, %c0_98] : memref<64x256xf32, #tpu.memory_space<vmem>>, vector<64x256xf32>
    %c0_99 = arith.constant 0 : index
    %c0_100 = arith.constant 0 : index
    %367 = vector.load %arg4[%c0_99, %c0_100] : memref<256x128xf32, #tpu.memory_space<vmem>>, vector<256x128xf32>
    %cst_101 = arith.constant dense<0.000000e+00> : vector<64x128xf32>
    %368 = tpu.matmul %366, %367, %cst_101 {dimension_numbers = #tpu.dot_dimension_numbers<[1], [0], [0], [1], [0, 0, 1, 1], [], []>} : vector<64x256xf32>, vector<256x128xf32>, vector<64x128xf32> -> vector<64x128xf32>
    %c0_102 = arith.constant 0 : index
    %c0_103 = arith.constant 0 : index
    %369 = vector.load %arg5[%c0_102, %c0_103] : memref<1x128xf32, #tpu.memory_space<vmem>>, vector<1x128xf32>
    %370 = vector.broadcast %369 : vector<1x128xf32> to vector<64x128xf32>
    %371 = arith.addf %368, %370 : vector<64x128xf32>
    %c0_104 = arith.constant 0 : index
    %c0_105 = arith.constant 0 : index
    %372 = vector.load %arg6[%c0_104, %c0_105] : memref<64x128xf32, #tpu.memory_space<vmem>>, vector<64x128xf32>
    tpu.vector_store %arg6[%c0_104, %c0_105], %371 {strides = array<i32>} : memref<64x128xf32, #tpu.memory_space<vmem>>, vector<64x128xf32>,
    return
  }
}

</mosaic_0001>

<bundles_post_ra>
// kernel: phoneme_lang_model_v3.1
= control target key start
LH: loop header
LB: loop body
LE: loop exit
PB: predicated region body
PF: predicated region fallthrough
CT: control target
= control target key end

     0   :  { %v167_v8 = vlaneseq  ;;  %v2761_v14 = vmov 0.0   ;;  %s6007_s1 = inlined_call_operand.vmem [shape: f32[256,512], index: 1, kind: input, shape index: {}]   ;;  %s6008_s2 = inlined_call_operand.vmem [shape: f32[4,128], index: 2, kind: input, shape index: {}]   ;;  %s6009_s0 = inlined_call_operand.vmem [shape: f32[8,4,512], index: 0, kind: input, shape index: {}]   ;;  %s6010_s3 = inlined_call_operand.vmem [shape: f32[4,128], index: 3, kind: input, shape index: {}]   ;;  %s6011_s4 = inlined_call_operand.vmem [shape: f32[256,128], index: 4, kind: input, shape index: {}]   ;;  %s6012_s5 = inlined_call_operand.vmem [shape: f32[1,128], index: 5, kind: input, shape index: {}]   ;;  %s6013_s6 = inlined_call_operand.vmem [shape: f32[64,128], index: 6, kind: output, shape index: {}]  }
   0x1   :  { %v2800_v0 = vld [vmem:[%s6007_s1 + $0x1e0] sm:$0xff]  ;;  %23 = vst [vmem:[#allocation2 + $0x30] sm:$0xff] %v2761_v14  ;;  %v2913_v22 = vld [vmem:[%s6007_s1 + $0x1f0] sm:$0xff]  ;;  %v3102_v57 = vld [vmem:[%s6007_s1 + $0x1e8] sm:$0xff] }
   0x2   :  { %v2805_v1 = vld [vmem:[%s6007_s1 + $0x1c0] sm:$0xff]  ;;  %209 = vmatpush.msra.mxu2 %v2800_v0  ;;  %v168_v11 = vshrl.u32 %v167_v8, 7  ;;  %24 = vst [vmem:[#allocation2] sm:$0xff] %v2761_v14  ;;  %289 = vmatpush.msra.mxu0 %v2913_v22  ;;  %v2930_v25 = vld [vmem:[%s6007_s1 + $0x1d0] sm:$0xff]  ;;  %v3107_v58 = vld [vmem:[%s6007_s1 + $0x3e8] sm:$0xff] }
   0x3   :  { %v2810_v2 = vld [vmem:[%s6007_s1 + $0x3e0] sm:$0xff]  ;;  %25 = vst [vmem:[#allocation2 + $0x58] sm:$0xff] %v2761_v14  ;;  %v2943_v27 = vld [vmem:[%s6007_s1 + $0x3f0] sm:$0xff]  ;;  %v3122_v61 = vld [vmem:[%s6007_s1 + $0x1c8] sm:$0xff] }
   0x4   :  { %229 = vmatpush.msra.mxu3 %v2810_v2  ;;  %v2817_v3 = vld [vmem:[%s6007_s1 + $0x3c0] sm:$0xff]  ;;  %210 = vmatpush.msra.mxu2 %v2805_v1  ;;  %vm169_vm0 = vcmp.lt.s32.totalorder %v168_v11, 2  ;;  %26 = vst [vmem:[#allocation2 + $0x18] sm:$0xff] %v2761_v14  ;;  %v2957_v30 = vld [vmem:[%s6007_s1 + $0x1b0] sm:$0xff]  ;;  %v3127_v62 = vld [vmem:[%s6007_s1 + $0x3c8] sm:$0xff] }
   0x5   :  { %v2822_v4 = vld [vmem:[%s6007_s1 + $0x1a0] sm:$0xff]  ;;  %27 = vst [vmem:[#allocation2 + $0x50] sm:$0xff] %v2761_v14  ;;  %v2336_v21 = vsel %vm169_vm0, 1.0, %v2761_v14  ;;  %290 = vmatpush.msra.mxu0 %v2930_v25  ;;  %309 = vmatpush.msra.mxu1 %v2943_v27  ;;  %v2962_v31 = vld [vmem:[%s6007_s1 + $0x3d0] sm:$0xff]  ;;  %v3144_v11 = vld [vmem:[%s6007_s1 + $0x1a8] sm:$0xff] }
   0x6   :  { %v2827_v5 = vld [vmem:[%s6007_s1 + $0x3a0] sm:$0xff]  ;;  %230 = vmatpush.msra.mxu3 %v2817_v3  ;;  %211 = vmatpush.msra.mxu2 %v2822_v4  ;;  %28 = vst [vmem:[#allocation2 + $0x68] sm:$0xff] %v2761_v14  ;;  %v183_v28 = vsub.f32 1.0, %v2336_v21  ;;  %v2970_v32 = vld [vmem:[%s6007_s1 + $0x190] sm:$0xff]  ;;  %v182_v37 = vmul.f32 0.0, %v2336_v21 }
   0x7   :  { %v2834_v6 = vld [vmem:[%s6007_s1 + $0x180] sm:$0xff]  ;;  %29 = vst [vmem:[#allocation2 + $0x8] sm:$0xff] %v2761_v14  ;;  %291 = vmatpush.msra.mxu0 %v2957_v30  ;;  %310 = vmatpush.msra.mxu1 %v2962_v31  ;;  %v2988_v35 = vld [vmem:[%s6007_s1 + $0x3b0] sm:$0xff] }
   0x8   :  { %v2839_v7 = vld [vmem:[%s6007_s1 + $0x380] sm:$0xff]  ;;  %231 = vmatpush.msra.mxu3 %v2827_v5  ;;  %212 = vmatpush.msra.mxu2 %v2834_v6  ;;  %30 = vst [vmem:[#allocation2 + $0x48] sm:$0xff] %v2761_v14  ;;  %v186_v36 = vmul.f32 0.0, %v183_v28  ;;  %v2996_v38 = vld [vmem:[%s6007_s1 + $0x170] sm:$0xff]  ;;  %v3046_v47 = vadd.f32 %v183_v28, %v182_v37  ;;  %v3173_v37 = vld [vmem:[%s6007_s1 + $0x388] sm:$0xff] }
   0x9   :  { %v2846_v9 = vld [vmem:[%s6007_s1 + $0x160] sm:$0xff]  ;;  %31 = vst [vmem:[#allocation2 + $0x40] sm:$0xff] %v2761_v14  ;;  %v3001_v39 = vld [vmem:[%s6007_s1 + $0x390] sm:$0xff]  ;;  %292 = vmatpush.msra.mxu0 %v2970_v32  ;;  %311 = vmatpush.msra.mxu1 %v2988_v35 }
   0xa   :  { %v2851_v10 = vld [vmem:[%s6007_s1 + $0x360] sm:$0xff]  ;;  %232 = vmatpush.msra.mxu3 %v2839_v7  ;;  %213 = vmatpush.msra.mxu2 %v2846_v9  ;;  %32 = vst [vmem:[#allocation2 + $0x20] sm:$0xff] %v2761_v14  ;;  %v3022_v42 = vld [vmem:[%s6007_s1 + $0x150] sm:$0xff]  ;;  %v3044_v46 = vadd.f32 %v2336_v21, %v186_v36  ;;  %v3168_v36 = vld [vmem:[%s6007_s1 + $0x188] sm:$0xff] }
   0xb   :  { %v2858_v12 = vld [vmem:[%s6007_s1 + $0x140] sm:$0xff]  ;;  %33 = vst [vmem:[#allocation2 + $0x10] sm:$0xff] %v2761_v14  ;;  %v3027_v43 = vld [vmem:[%s6007_s1 + $0x370] sm:$0xff]  ;;  %293 = vmatpush.msra.mxu0 %v2996_v38  ;;  %312 = vmatpush.msra.mxu1 %v3001_v39 }
   0xc   :  { %v2863_v13 = vld [vmem:[%s6007_s1 + $0x340] sm:$0xff]  ;;  %233 = vmatpush.msra.mxu3 %v2851_v10  ;;  %214 = vmatpush.msra.mxu2 %v2858_v12  ;;  %34 = vst [vmem:[#allocation2 + $0x38] sm:$0xff] %v2761_v14  ;;  %v3051_v48 = vld [vmem:[%s6007_s1 + $0x130] sm:$0xff] }
   0xd   :  { %v2871_v15 = vld [vmem:[%s6007_s1 + $0x120] sm:$0xff]  ;;  %35 = vst [vmem:[#allocation2 + $0x60] sm:$0xff] %v2761_v14  ;;  %v3056_v49 = vld [vmem:[%s6007_s1 + $0x350] sm:$0xff]  ;;  %294 = vmatpush.msra.mxu0 %v3022_v42  ;;  %313 = vmatpush.msra.mxu1 %v3027_v43 }
   0xe   :  { %v2876_v16 = vld [vmem:[%s6007_s1 + $0x320] sm:$0xff]  ;;  %234 = vmatpush.msra.mxu3 %v2863_v13  ;;  %215 = vmatpush.msra.mxu2 %v2871_v15  ;;  %36 = vst [vmem:[#allocation2 + $0x70] sm:$0xff] %v2761_v14  ;;  %v3078_v53 = vld [vmem:[%s6007_s1 + $0x110] sm:$0xff] }
   0xf   :  { %v2885_v17 = vld [vmem:[%s6007_s1 + $0x100] sm:$0xff]  ;;  %37 = vst [vmem:[#allocation2 + $0x78] sm:$0xff] %v2761_v14  ;;  %v3083_v54 = vld [vmem:[%s6007_s1 + $0x330] sm:$0xff]  ;;  %295 = vmatpush.msra.mxu0 %v3051_v48  ;;  %314 = vmatpush.msra.mxu1 %v3056_v49 }
  0x10   :  { %v2890_v18 = vld [vmem:[%s6007_s1 + $0x300] sm:$0xff]  ;;  %235 = vmatpush.msra.mxu3 %v2876_v16  ;;  %216 = vmatpush.msra.mxu2 %v2885_v17  ;;  %38 = vst [vmem:[#allocation2 + $0x28] sm:$0xff] %v2761_v14  ;;  %v3134_v63 = vld [vmem:[%s6007_s1 + $0xf0] sm:$0xff]  ;;  %v3149_v14 = vld [vmem:[%s6007_s1 + $0x3a8] sm:$0xff] }
  0x11   :  { %v2899_v19 = vld [vmem:[%s6007_s1 + $0xe0] sm:$0xff]  ;;  %6378 = vst [vmem:[#allocation9_spill] sm:$0xff] %v3044_v46  ;;  %296 = vmatpush.msra.mxu0 %v3078_v53  ;;  %315 = vmatpush.msra.mxu1 %v3083_v54  ;;  %v3139_v8 = vld [vmem:[%s6007_s1 + $0x310] sm:$0xff] }
  0x12   :  { %v2904_v20 = vld [vmem:[%s6007_s1 + $0x2e0] sm:$0xff]  ;;  %236 = vmatpush.msra.mxu3 %v2890_v18  ;;  %217 = vmatpush.msra.mxu2 %v2899_v19  ;;  %6379 = vst [vmem:[#allocation10_spill] sm:$0xff] %v3046_v47  ;;  %v3158_v21 = vld [vmem:[%s6007_s1 + $0xd0] sm:$0xff] }
  0x13   :  { %v2919_v23 = vld [vmem:[%s6007_s1 + $0xc0] sm:$0xff]  ;;  %6382 = vst [vmem:[#allocation13_spill] sm:$0xff] %v3078_v53  ;;  %v3163_v28 = vld [vmem:[%s6007_s1 + $0x2f0] sm:$0xff]  ;;  %297 = vmatpush.msra.mxu0 %v3134_v63  ;;  %316 = vmatpush.msra.mxu1 %v3139_v8 }
  0x14   :  { %v2924_v24 = vld [vmem:[%s6007_s1 + $0x2c0] sm:$0xff]  ;;  %237 = vmatpush.msra.mxu3 %v2904_v20  ;;  %218 = vmatpush.msra.mxu2 %v2919_v23  ;;  %6383 = vst [vmem:[#allocation14_spill] sm:$0xff] %v3083_v54  ;;  %v3211_v53 = vld [vmem:[%s6007_s1 + $0x2b0] sm:$0xff] }
  0x15   :  { %v2938_v26 = vld [vmem:[%s6007_s1 + $0xa0] sm:$0xff]  ;;  %6386 = vst [vmem:[#allocation17_spill] sm:$0xff] %v3134_v63  ;;  %v3197_v63 = vld [vmem:[%s6007_s1 + $0x368] sm:$0xff]  ;;  %298 = vmatpush.msra.mxu0 %v3158_v21  ;;  %317 = vmatpush.msra.mxu1 %v3163_v28  ;;  %v3230_v54 = vld [vmem:[%s6007_s1 + $0x70] sm:$0xff] }
  0x16   :  { %v2949_v29 = vld [vmem:[%s6007_s1 + $0x2a0] sm:$0xff]  ;;  %238 = vmatpush.msra.mxu3 %v2924_v24  ;;  %219 = vmatpush.msra.mxu2 %v2938_v26  ;;  %6387 = vst [vmem:[#allocation18_spill] sm:$0xff] %v3139_v8  ;;  %v3206_v8 = vld [vmem:[%s6007_s1 + $0x90] sm:$0xff] }
  0x17   :  { %v2975_v33 = vld [vmem:[%s6007_s1 + $0x80] sm:$0xff]  ;;  %6388 = vst [vmem:[#allocation19_spill] sm:$0xff] %v3158_v21  ;;  %v3216_v21 = vld [vmem:[%s6007_s1 + $0x148] sm:$0xff] }
  0x18   :  { %6372 = vst [vmem:[#allocation3_spill] sm:$0xff] %v2975_v33  ;;  %v2980_v34 = vld [vmem:[%s6007_s1 + $0x280] sm:$0xff]  ;;  %239 = vmatpush.msra.mxu3 %v2949_v29  ;;  %220 = vmatpush.msra.mxu2 %v2975_v33 }
  0x19   :  { %6373 = vst [vmem:[#allocation4_spill] sm:$0xff] %v2980_v34  ;;  %v3006_v40 = vld [vmem:[%s6007_s1 + $0x60] sm:$0xff] }
  0x1a   :  { %6374 = vst [vmem:[#allocation5_spill] sm:$0xff] %v3006_v40  ;;  %v3011_v41 = vld [vmem:[%s6007_s1 + $0x260] sm:$0xff]  ;;  %240 = vmatpush.msra.mxu3 %v2980_v34  ;;  %221 = vmatpush.msra.mxu2 %v3006_v40 }
  0x1b   :  { %6375 = vst [vmem:[#allocation6_spill] sm:$0xff] %v3011_v41  ;;  %v3032_v44 = vld [vmem:[%s6007_s1 + $0x40] sm:$0xff] }
  0x1c   :  { %6376 = vst [vmem:[#allocation7_spill] sm:$0xff] %v3032_v44  ;;  %v3037_v45 = vld [vmem:[%s6007_s1 + $0x240] sm:$0xff]  ;;  %241 = vmatpush.msra.mxu3 %v3011_v41  ;;  %222 = vmatpush.msra.mxu2 %v3032_v44 }
  0x1d   :  { %6377 = vst [vmem:[#allocation8_spill] sm:$0xff] %v3037_v45  ;;  %v3061_v50 = vld [vmem:[%s6007_s1 + $0x20] sm:$0xff] }
  0x1e   :  { %6380 = vst [vmem:[#allocation11_spill] sm:$0xff] %v3061_v50  ;;  %v3066_v51 = vld [vmem:[%s6007_s1 + $0x220] sm:$0xff]  ;;  %242 = vmatpush.msra.mxu3 %v3037_v45  ;;  %223 = vmatpush.msra.mxu2 %v3061_v50 }
  0x1f   :  { %6381 = vst [vmem:[#allocation12_spill] sm:$0xff] %v3066_v51  ;;  %v190_v52 = vld [vmem:[%s6008_s2] sm:$0xf] }
  0x20   :  { %v3088_v55 = vld [vmem:[%s6007_s1] sm:$0xff]  ;;  %243 = vmatpush.msra.mxu3 %v3066_v51  ;;  %v3110_v59 = vmul.f32 %v190_v52, %v3044_v46  ;;  %v3113_v60 = vmul.f32 %v190_v52, %v3046_v47  ;;  %6389 = vst [vmem:[#allocation20_spill] sm:$0xff] %v3163_v28  ;;  %v3182_v52 = vld [vmem:[%s6007_s1 + $0xb0] sm:$0xff]  ;;  %v3192_v46 = vld [vmem:[%s6007_s1 + $0x168] sm:$0xff] }
  0x21   :  { %6384 = vst [vmem:[#allocation15_spill] sm:$0xff] %v3088_v55  ;;  %v3093_v56 = vld [vmem:[%s6007_s1 + $0x200] sm:$0xff]  ;;  %224 = vmatpush.msra.mxu2 %v3088_v55  ;;  %v3187_v47 = vld [vmem:[%s6007_s1 + $0x2d0] sm:$0xff]  ;;  %v3221_v28 = vld [vmem:[%s6007_s1 + $0x348] sm:$0xff]  ;;  %299 = vmatpush.msra.mxu0 %v3182_v52 }
  0x22   :  { %6385 = vst [vmem:[#allocation16_spill] sm:$0xff] %v3093_v56  ;;  %244 = vmatpush.msra.mxu3 %v3093_v56  ;;  %225 = vmatmul.f32.vlgmr.msra.gmra.mxu2 %v3110_v59 }
  0x23   :  { %249 = vmatpush.msrb.mxu2 %v3102_v57  ;;  %245 = vmatmul.f32.vlgmr.msra.gmra.mxu3 %v3113_v60  ;;  %6390 = vst [vmem:[#allocation21_spill] sm:$0xff] %v3173_v37 }
  0x24   :  { %269 = vmatpush.msrb.mxu3 %v3107_v58  ;;  %6391 = vst [vmem:[#allocation22_spill] sm:$0xff] %v3182_v52  ;;  %318 = vmatpush.msra.mxu1 %v3187_v47  ;;  %v3240_v52 = vld [vmem:[%s6007_s1 + $0x128] sm:$0xff] }
  0x25   :  { %250 = vmatpush.msrb.mxu2 %v3122_v61  ;;  %6392 = vst [vmem:[#allocation23_spill] sm:$0xff] %v3187_v47  ;;  %v3245_v47 = vld [vmem:[%s6007_s1 + $0x328] sm:$0xff]  ;;  %300 = vmatpush.msra.mxu0 %v3206_v8 }
  0x26   :  { %270 = vmatpush.msrb.mxu3 %v3127_v62  ;;  %6393 = vst [vmem:[#allocation24_spill] sm:$0xff] %v3192_v46  ;;  %319 = vmatpush.msra.mxu1 %v3211_v53 }
  0x27   :  { %251 = vmatpush.msrb.mxu2 %v3144_v11  ;;  %6394 = vst [vmem:[#allocation25_spill] sm:$0xff] %v3197_v63  ;;  %301 = vmatpush.msra.mxu0 %v3230_v54 }
  0x28   :  { %271 = vmatpush.msrb.mxu3 %v3149_v14  ;;  %6395 = vst [vmem:[#allocation26_spill] sm:$0xff] %v3206_v8  ;;  %v3264_v8 = vld [vmem:[%s6007_s1 + $0x108] sm:$0xff] }
  0x29   :  { %252 = vmatpush.msrb.mxu2 %v3168_v36  ;;  %6396 = vst [vmem:[#allocation27_spill] sm:$0xff] %v3211_v53  ;;  %v3269_v53 = vld [vmem:[%s6007_s1 + $0x308] sm:$0xff] }
  0x2a   :  { %272 = vmatpush.msrb.mxu3 %v3173_v37  ;;  %6397 = vst [vmem:[#allocation28_spill] sm:$0xff] %v3216_v21  ;;  %v3235_v37 = vld [vmem:[%s6007_s1 + $0x290] sm:$0xff] }
  0x2b   :  { %6398 = vst [vmem:[#allocation29_spill] sm:$0xff] %v3221_v28  ;;  %253 = vmatpush.msrb.mxu2 %v3192_v46  ;;  %v3259_v46 = vld [vmem:[%s6007_s1 + $0x270] sm:$0xff]  ;;  %320 = vmatpush.msra.mxu1 %v3235_v37 }
  0x2c   :  { %273 = vmatpush.msrb.mxu3 %v3197_v63  ;;  %6399 = vst [vmem:[#allocation30_spill] sm:$0xff] %v3230_v54  ;;  %v3254_v63 = vld [vmem:[%s6007_s1 + $0x50] sm:$0xff]  ;;  %v3288_v54 = vld [vmem:[%s6007_s1 + $0xe8] sm:$0xff] }
  0x2d   :  { %6400 = vst [vmem:[#allocation31_spill] sm:$0xff] %v3235_v37  ;;  %254 = vmatpush.msrb.mxu2 %v3216_v21  ;;  %v3283_v21 = vld [vmem:[%s6007_s1 + $0x250] sm:$0xff]  ;;  %v3293_v37 = vld [vmem:[%s6007_s1 + $0x2e8] sm:$0xff]  ;;  %302 = vmatpush.msra.mxu0 %v3254_v63 }
  0x2e   :  { %6401 = vst [vmem:[#allocation32_spill] sm:$0xff] %v3240_v52  ;;  %274 = vmatpush.msrb.mxu3 %v3221_v28  ;;  %v3278_v28 = vld [vmem:[%s6007_s1 + $0x30] sm:$0xff]  ;;  %321 = vmatpush.msra.mxu1 %v3259_v46 }
  0x2f   :  { %6402 = vst [vmem:[#allocation33_spill] sm:$0xff] %v3245_v47  ;;  %255 = vmatpush.msrb.mxu2 %v3240_v52  ;;  %v3307_v52 = vld [vmem:[%s6007_s1 + $0x230] sm:$0xff]  ;;  %303 = vmatpush.msra.mxu0 %v3278_v28 }
  0x30   :  { %6403 = vst [vmem:[#allocation34_spill] sm:$0xff] %v3254_v63  ;;  %275 = vmatpush.msrb.mxu3 %v3245_v47  ;;  %v3302_v47 = vld [vmem:[%s6007_s1 + $0x10] sm:$0xff]  ;;  %v3312_v63 = vld [vmem:[%s6007_s1 + $0xc8] sm:$0xff]  ;;  %322 = vmatpush.msra.mxu1 %v3283_v21 }
  0x31   :  { %6404 = vst [vmem:[#allocation35_spill] sm:$0xff] %v3259_v46  ;;  %256 = vmatpush.msrb.mxu2 %v3264_v8  ;;  %v3317_v46 = vld [vmem:[%s6007_s1 + $0x2c8] sm:$0xff]  ;;  %304 = vmatpush.msra.mxu0 %v3302_v47 }
  0x32   :  { %6405 = vst [vmem:[#allocation36_spill] sm:$0xff] %v3264_v8  ;;  %276 = vmatpush.msrb.mxu3 %v3269_v53  ;;  %v3331_v8 = vld [vmem:[%s6007_s1 + $0xa8] sm:$0xff]  ;;  %323 = vmatpush.msra.mxu1 %v3307_v52 }
  0x33   :  { %6406 = vst [vmem:[#allocation37_spill] sm:$0xff] %v3269_v53  ;;  %257 = vmatpush.msrb.mxu2 %v3288_v54  ;;  %v3326_v53 = vld [vmem:[%s6007_s1 + $0x210] sm:$0xff]  ;;  %305 = vmatmul.f32.vlgmr.msra.gmra.mxu0 %v3110_v59 }
  0x34   :  { %6407 = vst [vmem:[#allocation38_spill] sm:$0xff] %v3278_v28  ;;  %277 = vmatpush.msrb.mxu3 %v3293_v37  ;;  %v3336_v28 = vld [vmem:[%s6007_s1 + $0x2a8] sm:$0xff]  ;;  %324 = vmatpush.msra.mxu1 %v3326_v53 }
  0x35   :  { %6408 = vst [vmem:[#allocation39_spill] sm:$0xff] %v3283_v21  ;;  %258 = vmatpush.msrb.mxu2 %v3312_v63  ;;  %v3345_v21 = vld [vmem:[%s6007_s1 + $0x88] sm:$0xff]  ;;  %325 = vmatmul.f32.vlgmr.msra.gmra.mxu1 %v3113_v60 }
  0x36   :  { %6409 = vst [vmem:[#allocation40_spill] sm:$0xff] %v3288_v54  ;;  %278 = vmatpush.msrb.mxu3 %v3317_v46  ;;  %461 = vmatpush.msrb.mxu0 %v2800_v0  ;;  %v3387_v0 = vld [vmem:[%s6007_s1 + $0x28] sm:$0xff] }
  0x37   :  { %6410 = vst [vmem:[#allocation41_spill] sm:$0xff] %v3293_v37  ;;  %v3350_v37 = vld [vmem:[%s6007_s1 + $0x288] sm:$0xff]  ;;  %259 = vmatpush.msrb.mxu2 %v3331_v8  ;;  %481 = vmatpush.msrb.mxu1 %v2810_v2 }
  0x38   :  { %6411 = vst [vmem:[#allocation42_spill] sm:$0xff] %v3302_v47  ;;  %279 = vmatpush.msrb.mxu3 %v3336_v28  ;;  %v3359_v47 = vld [vmem:[%s6007_s1 + $0x68] sm:$0xff]  ;;  %462 = vmatpush.msrb.mxu0 %v2805_v1 }
  0x39   :  { %6412 = vst [vmem:[#allocation43_spill] sm:$0xff] %v3307_v52  ;;  %v3364_v52 = vld [vmem:[%s6007_s1 + $0x268] sm:$0xff]  ;;  %260 = vmatpush.msrb.mxu2 %v3345_v21  ;;  %482 = vmatpush.msrb.mxu1 %v2817_v3  ;;  %v3415_v3 = vld [vmem:[%s6007_s1 + $0x1f8] sm:$0xff] }
  0x3a   :  { %6413 = vst [vmem:[#allocation44_spill] sm:$0xff] %v3312_v63  ;;  %280 = vmatpush.msrb.mxu3 %v3350_v37  ;;  %463 = vmatpush.msrb.mxu0 %v2822_v4  ;;  %v3401_v1 = vld [vmem:[%s6007_s1 + $0x8] sm:$0xff]  ;;  %v3420_v4 = vld [vmem:[%s6007_s1 + $0x3f8] sm:$0xff] }
  0x3b   :  { %6414 = vst [vmem:[#allocation45_spill] sm:$0xff] %v3326_v53  ;;  %v3373_v53 = vld [vmem:[%s6007_s1 + $0x48] sm:$0xff]  ;;  %261 = vmatpush.msrb.mxu2 %v3359_v47  ;;  %483 = vmatpush.msrb.mxu1 %v2827_v5  ;;  %v3431_v5 = vld [vmem:[%s6007_s1 + $0x1d8] sm:$0xff] }
  0x3c   :  { %6415 = vst [vmem:[#allocation46_spill] sm:$0xff] %v3336_v28  ;;  %v3378_v28 = vld [vmem:[%s6007_s1 + $0x248] sm:$0xff]  ;;  %281 = vmatpush.msrb.mxu3 %v3364_v52  ;;  %464 = vmatpush.msrb.mxu0 %v2834_v6  ;;  %v3436_v6 = vld [vmem:[%s6007_s1 + $0x3d8] sm:$0xff] }
  0x3d   :  { %6416 = vst [vmem:[#allocation47_spill] sm:$0xff] %v3350_v37  ;;  %v3392_v37 = vld [vmem:[%s6007_s1 + $0x228] sm:$0xff]  ;;  %262 = vmatpush.msrb.mxu2 %v3373_v53  ;;  %484 = vmatpush.msrb.mxu1 %v2839_v7  ;;  %v194_v7 = vld [vmem:[%s6009_s0] sm:$0xff] }
  0x3e   :  { %282 = vmatpush.msrb.mxu3 %v3378_v28  ;;  %v3406_v2 = vld [vmem:[%s6007_s1 + $0x208] sm:$0xff]  ;;  %6418 = vst [vmem:[#allocation49_spill] sm:$0xff] %v3420_v4  ;;  %465 = vmatpush.msrb.mxu0 %v2846_v9  ;;  %v3446_v9 = vld [vmem:[%s6007_s1 + $0x1b8] sm:$0xff] }
  0x3f   :  { %6417 = vst [vmem:[#allocation48_spill] sm:$0xff] %v3406_v2  ;;  %263 = vmatpush.msrb.mxu2 %v3387_v0  ;;  %485 = vmatpush.msrb.mxu1 %v2851_v10  ;;  %v3474_v10 = vld [vmem:[%s6007_s1 + $0x178] sm:$0xff] }
  0x40   :  { %283 = vmatpush.msrb.mxu3 %v3392_v37  ;;  %198 = vst [vmem:[#allocation1] ss:$2 sm:$0xff] %v194_v7  ;;  %466 = vmatpush.msrb.mxu0 %v2858_v12  ;;  %v3460_v7 = vld [vmem:[%s6007_s1 + $0x198] sm:$0xff] }
  0x41   :  { %264 = vmatpush.msrb.mxu2 %v3401_v1  ;;  %486 = vmatpush.msrb.mxu1 %v2863_v13  ;;  %v3479_v12 = vld [vmem:[%s6007_s1 + $0x378] sm:$0xff] }
  0x42   :  { %284 = vmatpush.msrb.mxu3 %v3406_v2  ;;  %265 = vmatmul.f32.vlgmr.msrb.gmra.mxu2 %v3110_v59  ;;  %v3451_v2 = vld [vmem:[%s6007_s1 + $0x3b8] sm:$0xff] }
  0x43   :  { %285 = vmatmul.f32.vlgmr.msrb.gmra.mxu3 %v3113_v60  ;;  %329 = vmatpush.msra.mxu2 %v3415_v3  ;;  %v3488_v13 = vld [vmem:[%s6007_s1 + $0x158] sm:$0xff] }
  0x44   :  { %349 = vmatpush.msra.mxu3 %v3420_v4  ;;  %v3465_v4 = vld [vmem:[%s6007_s1 + $0x398] sm:$0xff]  ;;  %467 = vmatpush.msrb.mxu0 %v2871_v15 }
  0x45   :  { %330 = vmatpush.msra.mxu2 %v3431_v5  ;;  %487 = vmatpush.msrb.mxu1 %v2876_v16  ;;  %v3493_v15 = vld [vmem:[%s6007_s1 + $0x358] sm:$0xff] }
  0x46   :  { %350 = vmatpush.msra.mxu3 %v3436_v6  ;;  %468 = vmatpush.msrb.mxu0 %v2885_v17  ;;  %v3502_v16 = vld [vmem:[%s6007_s1 + $0x138] sm:$0xff] }
  0x47   :  { %331 = vmatpush.msra.mxu2 %v3446_v9  ;;  %488 = vmatpush.msrb.mxu1 %v2890_v18  ;;  %6419 = vst [vmem:[#allocation50_spill] sm:$0xff] %v3502_v16  ;;  %v3507_v17 = vld [vmem:[%s6007_s1 + $0x338] sm:$0xff] }
  0x48   :  { %351 = vmatpush.msra.mxu3 %v3451_v2  ;;  %469 = vmatpush.msrb.mxu0 %v2899_v19  ;;  %6420 = vst [vmem:[#allocation51_spill] sm:$0xff] %v3507_v17  ;;  %v3516_v18 = vld [vmem:[%s6007_s1 + $0x118] sm:$0xff] }
  0x49   :  { %332 = vmatpush.msra.mxu2 %v3460_v7  ;;  %489 = vmatpush.msrb.mxu1 %v2904_v20  ;;  %6421 = vst [vmem:[#allocation52_spill] sm:$0xff] %v3516_v18  ;;  %v3521_v19 = vld [vmem:[%s6007_s1 + $0x318] sm:$0xff] }
  0x4a   :  { %352 = vmatpush.msra.mxu3 %v3465_v4  ;;  %470 = vmatpush.msrb.mxu0 %v2919_v23  ;;  %6422 = vst [vmem:[#allocation53_spill] sm:$0xff] %v3521_v19  ;;  %v3530_v20 = vld [vmem:[%s6007_s1 + $0xf8] sm:$0xff] }
  0x4b   :  { %333 = vmatpush.msra.mxu2 %v3474_v10  ;;  %490 = vmatpush.msrb.mxu1 %v2924_v24  ;;  %6423 = vst [vmem:[#allocation54_spill] sm:$0xff] %v3530_v20  ;;  %v3535_v23 = vld [vmem:[%s6007_s1 + $0x2f8] sm:$0xff] }
  0x4c   :  { %353 = vmatpush.msra.mxu3 %v3479_v12  ;;  %471 = vmatpush.msrb.mxu0 %v2938_v26  ;;  %6424 = vst [vmem:[#allocation55_spill] sm:$0xff] %v3535_v23  ;;  %v3544_v24 = vld [vmem:[%s6007_s1 + $0xd8] sm:$0xff] }
  0x4d   :  { %334 = vmatpush.msra.mxu2 %v3488_v13  ;;  %491 = vmatpush.msrb.mxu1 %v2949_v29  ;;  %6425 = vst [vmem:[#allocation56_spill] sm:$0xff] %v3544_v24  ;;  %v3549_v26 = vld [vmem:[%s6007_s1 + $0x2d8] sm:$0xff] }
  0x4e   :  { %354 = vmatpush.msra.mxu3 %v3493_v15  ;;  %472 = vmatpush.msrb.mxu0 %v2975_v33  ;;  %6426 = vst [vmem:[#allocation57_spill] sm:$0xff] %v3549_v26  ;;  %v3558_v29 = vld [vmem:[%s6007_s1 + $0xb8] sm:$0xff] }
  0x4f   :  { %335 = vmatpush.msra.mxu2 %v3502_v16  ;;  %492 = vmatpush.msrb.mxu1 %v2980_v34  ;;  %6427 = vst [vmem:[#allocation58_spill] sm:$0xff] %v3558_v29  ;;  %v3563_v33 = vld [vmem:[%s6007_s1 + $0x2b8] sm:$0xff] }
  0x50   :  { %355 = vmatpush.msra.mxu3 %v3507_v17  ;;  %473 = vmatpush.msrb.mxu0 %v3006_v40  ;;  %6428 = vst [vmem:[#allocation59_spill] sm:$0xff] %v3563_v33  ;;  %v3572_v40 = vld [vmem:[%s6007_s1 + $0x98] sm:$0xff] }
  0x51   :  { %336 = vmatpush.msra.mxu2 %v3516_v18  ;;  %493 = vmatpush.msrb.mxu1 %v3011_v41  ;;  %6429 = vst [vmem:[#allocation60_spill] sm:$0xff] %v3572_v40  ;;  %v3577_v34 = vld [vmem:[%s6007_s1 + $0x298] sm:$0xff] }
  0x52   :  { %356 = vmatpush.msra.mxu3 %v3521_v19  ;;  %474 = vmatpush.msrb.mxu0 %v3032_v44  ;;  %6430 = vst [vmem:[#allocation61_spill] sm:$0xff] %v3577_v34  ;;  %v3586_v44 = vld [vmem:[%s6007_s1 + $0x78] sm:$0xff] }
  0x53   :  { %337 = vmatpush.msra.mxu2 %v3530_v20  ;;  %494 = vmatpush.msrb.mxu1 %v3037_v45  ;;  %6431 = vst [vmem:[#allocation62_spill] sm:$0xff] %v3586_v44  ;;  %v3591_v41 = vld [vmem:[%s6007_s1 + $0x278] sm:$0xff] }
  0x54   :  { %357 = vmatpush.msra.mxu3 %v3535_v23  ;;  %475 = vmatpush.msrb.mxu0 %v3061_v50  ;;  %6432 = vst [vmem:[#allocation63_spill] sm:$0xff] %v3591_v41  ;;  %v3600_v50 = vld [vmem:[%s6007_s1 + $0x58] sm:$0xff] }
  0x55   :  { %338 = vmatpush.msra.mxu2 %v3544_v24  ;;  %495 = vmatpush.msrb.mxu1 %v3066_v51  ;;  %6433 = vst [vmem:[#allocation64_spill] sm:$0xff] %v3600_v50  ;;  %v3605_v45 = vld [vmem:[%s6007_s1 + $0x258] sm:$0xff] }
  0x56   :  { %358 = vmatpush.msra.mxu3 %v3549_v26  ;;  %476 = vmatpush.msrb.mxu0 %v3088_v55  ;;  %6434 = vst [vmem:[#allocation65_spill] sm:$0xff] %v3605_v45  ;;  %v3614_v55 = vld [vmem:[%s6007_s1 + $0x38] sm:$0xff] }
  0x57   :  { %339 = vmatpush.msra.mxu2 %v3558_v29  ;;  %496 = vmatpush.msrb.mxu1 %v3093_v56  ;;  %6435 = vst [vmem:[#allocation66_spill] sm:$0xff] %v3614_v55  ;;  %v3619_v51 = vld [vmem:[%s6007_s1 + $0x238] sm:$0xff] }
  0x58   :  { %359 = vmatpush.msra.mxu3 %v3563_v33  ;;  %541 = vmatpush.msra.mxu0 %v2913_v22  ;;  %6436 = vst [vmem:[#allocation67_spill] sm:$0xff] %v3619_v51  ;;  %v3628_v22 = vld [vmem:[%s6007_s1 + $0x18] sm:$0xff] }
  0x59   :  { %340 = vmatpush.msra.mxu2 %v3572_v40  ;;  %561 = vmatpush.msra.mxu1 %v2943_v27  ;;  %6437 = vst [vmem:[#allocation68_spill] sm:$0xff] %v3628_v22  ;;  %v3633_v56 = vld [vmem:[%s6007_s1 + $0x218] sm:$0xff]  ;;  %v6440_v27 = vld [vmem:[#allocation14_spill] sm:$0xff] }
  0x5a   :  { %360 = vmatpush.msra.mxu3 %v3577_v34  ;;  %542 = vmatpush.msra.mxu0 %v2930_v25  ;;  %6438 = vst [vmem:[#allocation69_spill] sm:$0xff] %v3633_v56  ;;  %v6439_v25 = vld [vmem:[#allocation21_spill] sm:$0xff] }
  0x5b   :  { %341 = vmatpush.msra.mxu2 %v3586_v44  ;;  %562 = vmatpush.msra.mxu1 %v2962_v31  ;;  %v6442_v31 = vld [vmem:[#allocation24_spill] sm:$0xff] }
  0x5c   :  { %361 = vmatpush.msra.mxu3 %v3591_v41  ;;  %543 = vmatpush.msra.mxu0 %v2957_v30  ;;  %v6441_v30 = vld [vmem:[#allocation13_spill] sm:$0xff] }
  0x5d   :  { %342 = vmatpush.msra.mxu2 %v3600_v50  ;;  %563 = vmatpush.msra.mxu1 %v2988_v35  ;;  %v6444_v35 = vld [vmem:[#allocation18_spill] sm:$0xff] }
  0x5e   :  { %362 = vmatpush.msra.mxu3 %v3605_v45  ;;  %544 = vmatpush.msra.mxu0 %v2970_v32  ;;  %v6443_v32 = vld [vmem:[#allocation25_spill] sm:$0xff] }
  0x5f   :  { %343 = vmatpush.msra.mxu2 %v3614_v55  ;;  %564 = vmatpush.msra.mxu1 %v3001_v39  ;;  %v6446_v39 = vld [vmem:[#allocation28_spill] sm:$0xff] }
  0x60   :  { %363 = vmatpush.msra.mxu3 %v3619_v51  ;;  %545 = vmatpush.msra.mxu0 %v2996_v38  ;;  %v6445_v38 = vld [vmem:[#allocation17_spill] sm:$0xff] }
  0x61   :  { %344 = vmatpush.msra.mxu2 %v3628_v22  ;;  %565 = vmatpush.msra.mxu1 %v3027_v43  ;;  %v6448_v43 = vld [vmem:[#allocation20_spill] sm:$0xff] }
  0x62   :  { %364 = vmatpush.msra.mxu3 %v3633_v56  ;;  %345 = vmatmul.f32.vlgmr.msra.gmra.mxu2 %v3110_v59  ;;  %v6451_v59 = vld [vmem:[#allocation33_spill] sm:$0xff] }
  0x63   :  { %365 = vmatmul.f32.vlgmr.msra.gmra.mxu3 %v3113_v60  ;;  %501 = vmatpush.msrb.mxu2 %v3102_v57  ;;  %v6452_v60 = vld [vmem:[#allocation23_spill] sm:$0xff] }
  0x64   :  { %521 = vmatpush.msrb.mxu3 %v3107_v58  ;;  %546 = vmatpush.msra.mxu0 %v3022_v42  ;;  %v6447_v42 = vld [vmem:[#allocation29_spill] sm:$0xff] }
  0x65   :  { %502 = vmatpush.msrb.mxu2 %v3122_v61  ;;  %566 = vmatpush.msra.mxu1 %v3056_v49  ;;  %v6450_v49 = vld [vmem:[#allocation32_spill] sm:$0xff] }
  0x66   :  { %522 = vmatpush.msrb.mxu3 %v3127_v62  ;;  %547 = vmatpush.msra.mxu0 %v3051_v48  ;;  %v6449_v48 = vld [vmem:[#allocation19_spill] sm:$0xff] }
  0x67   :  { %503 = vmatpush.msrb.mxu2 %v3144_v11  ;;  %567 = vmatpush.msra.mxu1 %v6440_v27  ;;  %v6454_v27 = vld [vmem:[#allocation36_spill] sm:$0xff] }
  0x68   :  { %523 = vmatpush.msrb.mxu3 %v3149_v14  ;;  %548 = vmatpush.msra.mxu0 %v6441_v30  ;;  %v6453_v30 = vld [vmem:[#allocation22_spill] sm:$0xff] }
  0x69   :  { %504 = vmatpush.msrb.mxu2 %v3168_v36  ;;  %568 = vmatpush.msra.mxu1 %v6444_v35  ;;  %v6455_v35 = vld [vmem:[#allocation37_spill] sm:$0xff] }
  0x6a   :  { %524 = vmatpush.msrb.mxu3 %v6439_v25  ;;  %549 = vmatpush.msra.mxu0 %v6445_v38  ;;  %v6456_v38 = vld [vmem:[#allocation27_spill] sm:$0xff] }
  0x6b   :  { %505 = vmatpush.msrb.mxu2 %v6442_v31  ;;  %569 = vmatpush.msra.mxu1 %v6448_v43  ;;  %v6458_v43 = vld [vmem:[#allocation41_spill] sm:$0xff] }
  0x6c   :  { %525 = vmatpush.msrb.mxu3 %v6443_v32  ;;  %550 = vmatpush.msra.mxu0 %v6449_v48  ;;  %v6459_v48 = vld [vmem:[#allocation31_spill] sm:$0xff] }
  0x6d   :  { %506 = vmatpush.msrb.mxu2 %v6446_v39  ;;  %570 = vmatpush.msra.mxu1 %v6452_v60  ;;  %v6457_v39 = vld [vmem:[#allocation26_spill] sm:$0xff] }
  0x6e   :  { %526 = vmatpush.msrb.mxu3 %v6447_v42  ;;  %551 = vmatpush.msra.mxu0 %v6453_v30  ;;  %v6461_v30 = vld [vmem:[#allocation35_spill] sm:$0xff]  ;;  %v6462_v60 = vld [vmem:[#allocation34_spill] sm:$0xff] }
  0x6f   :  { %507 = vmatpush.msrb.mxu2 %v6450_v49  ;;  %571 = vmatpush.msra.mxu1 %v6456_v38  ;;  %v6460_v49 = vld [vmem:[#allocation30_spill] sm:$0xff] }
  0x70   :  { %527 = vmatpush.msrb.mxu3 %v6451_v59  ;;  %552 = vmatpush.msra.mxu0 %v6457_v39  ;;  %v6463_v38 = vld [vmem:[#allocation46_spill] sm:$0xff]  ;;  %v6464_v39 = vld [vmem:[#allocation39_spill] sm:$0xff] }
  0x71   :  { %508 = vmatpush.msrb.mxu2 %v6454_v27  ;;  %572 = vmatpush.msra.mxu1 %v6459_v48  ;;  %v6466_v48 = vld [vmem:[#allocation47_spill] sm:$0xff] }
  0x72   :  { %528 = vmatpush.msrb.mxu3 %v6455_v35  ;;  %553 = vmatpush.msra.mxu0 %v6460_v49  ;;  %v6467_v49 = vld [vmem:[#allocation43_spill] sm:$0xff] }
  0x73   :  { %509 = vmatpush.msrb.mxu2 %v3288_v54  ;;  %573 = vmatpush.msra.mxu1 %v6461_v30  ;;  %v6465_v54 = vld [vmem:[#allocation38_spill] sm:$0xff] }
  0x74   :  { %529 = vmatpush.msrb.mxu3 %v6458_v43  ;;  %554 = vmatpush.msra.mxu0 %v6462_v60  ;;  %v6469_v60 = vld [vmem:[#allocation45_spill] sm:$0xff] }
  0x75   :  { %510 = vmatpush.msrb.mxu2 %v3312_v63  ;;  %574 = vmatpush.msra.mxu1 %v6464_v39  ;;  %v6468_v63 = vld [vmem:[#allocation42_spill] sm:$0xff] }
  0x76   :  { %530 = vmatpush.msrb.mxu3 %v3317_v46  ;;  %555 = vmatpush.msra.mxu0 %v6465_v54  ;;  %v6470_v54 = vld [vmem:[#allocation48_spill] sm:$0xff] }
  0x77   :  { %511 = vmatpush.msrb.mxu2 %v3331_v8  ;;  %575 = vmatpush.msra.mxu1 %v6467_v49 }
  0x78   :  { %531 = vmatpush.msrb.mxu3 %v6463_v38  ;;  %556 = vmatpush.msra.mxu0 %v6468_v63  ;;  %v6471_v63 = vld [vmem:[#allocation49_spill] sm:$0xff] }
  0x79   :  { %512 = vmatpush.msrb.mxu2 %v3345_v21  ;;  %576 = vmatpush.msra.mxu1 %v6469_v60  ;;  %v195_v60 = vld [vmem:[%s6009_s0 + $0x8] sm:$0xff] }
  0x7a   :  { %532 = vmatpush.msrb.mxu3 %v6466_v48  ;;  %200 = vst [vmem:[#allocation1 + $0x10] ss:$2 sm:$0xff] %v195_v60 }
  0x7b   :  { %513 = vmatpush.msrb.mxu2 %v3359_v47 }
  0x7c   :  { %533 = vmatpush.msrb.mxu3 %v3364_v52 }
  0x7d   :  { %514 = vmatpush.msrb.mxu2 %v3373_v53 }
  0x7e   :  { %534 = vmatpush.msrb.mxu3 %v3378_v28 }
  0x7f   :  { %515 = vmatpush.msrb.mxu2 %v3387_v0 }
  0x80   :  { %535 = vmatpush.msrb.mxu3 %v3392_v37 }
  0x81   :  { %516 = vmatpush.msrb.mxu2 %v3401_v1 }
  0x82   :  { %536 = vmatpush.msrb.mxu3 %v6470_v54 }
  0x83   :  { %581 = vmatpush.msra.mxu2 %v3415_v3 }
  0x84   :  { %601 = vmatpush.msra.mxu3 %v6471_v63 }
  0x85   :  { %582 = vmatpush.msra.mxu2 %v3431_v5 }
  0x86   :  { %602 = vmatpush.msra.mxu3 %v3436_v6 }
  0x87   :  { %583 = vmatpush.msra.mxu2 %v3446_v9 }
  0x88   :  { %603 = vmatpush.msra.mxu3 %v3451_v2 }
  0x89   :  { %584 = vmatpush.msra.mxu2 %v3460_v7 }
  0x8a   :  { %604 = vmatpush.msra.mxu3 %v3465_v4 }
  0x8b   :  { %585 = vmatpush.msra.mxu2 %v3474_v10 }
  0x8c   :  { %605 = vmatpush.msra.mxu3 %v3479_v12 }
  0x8d   :  { %586 = vmatpush.msra.mxu2 %v3488_v13 }
  0x8e   :  { %606 = vmatpush.msra.mxu3 %v3493_v15 }
  0x8f   :  { %587 = vmatpush.msra.mxu2 %v3502_v16 }
  0x90   :  { %607 = vmatpush.msra.mxu3 %v3507_v17 }
  0x91   :  { %588 = vmatpush.msra.mxu2 %v3516_v18 }
  0x92   :  { %608 = vmatpush.msra.mxu3 %v3521_v19 }
  0x93   :  { %589 = vmatpush.msra.mxu2 %v3530_v20  ;;  %v203_v20 = vld.sshfl [vmem:[#allocation1 + $0x10] sm:$0xff pattern:$0x75316420] }
  0x94   :  { %609 = vmatpush.msra.mxu3 %v3535_v23 }
  0x95   :  { %590 = vmatpush.msra.mxu2 %v3544_v24 }
  0x96   :  { %610 = vmatpush.msra.mxu3 %v3549_v26 }
  0x97   :  { %591 = vmatpush.msra.mxu2 %v3558_v29 }
  0x98   :  { %611 = vmatpush.msra.mxu3 %v3563_v33 }
  0x99   :  { %592 = vmatpush.msra.mxu2 %v3572_v40 }
  0x9a   :  { %612 = vmatpush.msra.mxu3 %v3577_v34 }
  0x9b   :  { %593 = vmatpush.msra.mxu2 %v3586_v44 }
  0x9c   :  { %613 = vmatpush.msra.mxu3 %v3591_v41  ;;  %v201_v41 = vld.sshfl [vmem:[#allocation1] sm:$0xff pattern:$0x75316420] }
  0x9d   :  { %594 = vmatpush.msra.mxu2 %v3600_v50  ;;  %v202_v50 = vld.sshfl [vmem:[#allocation1 + $0x8] sm:$0xff pattern:$0x75316420] }
  0x9e   :  { %614 = vmatpush.msra.mxu3 %v3605_v45 }
  0x9f   :  { %595 = vmatpush.msra.mxu2 %v3614_v55 }
  0xa0   :  { %615 = vmatpush.msra.mxu3 %v3619_v51 }
  0xa1   :  { %596 = vmatpush.msra.mxu2 %v3628_v22 }
  0xa2   :  { %616 = vmatpush.msra.mxu3 %v3633_v56 }
  0xa5   :  { %v226_v49 = vpop.f32.mrf.mxu2 }
  0xa6   :  { %v246_v39 = vpop.f32.mrf.mxu3  ;;  %v227_v44 = vadd.f32 %v226_v49, %v201_v41  ;;  %v204_v49 = vld.sshfl [vmem:[#allocation1 + $0x18] sm:$0xff pattern:$0x75316420] }
  0xa8   :  { %v247_v30 = vadd.f32 %v246_v39, %v227_v44 }
  0xaa   :  { %v2337_v51 = vmul.f32 -1.442695, %v247_v30 }
  0xb0   :  { %v306_v44 = vpop.f32.mrf.mxu0 }
  0xb2   :  { %v326_v30 = vpop.f32.mrf.mxu1 }
  0xc5   :  { %v266_v45 = vpop.f32.mrf.mxu2 }
  0xc6   :  { %v286_v34 = vpop.f32.mrf.mxu3  ;;  %v267_v55 = vadd.f32 %v266_v45, %v202_v50 }
  0xc8   :  { %v287_v40 = vadd.f32 %v286_v34, %v267_v55 }
  0xca   :  { %v2338_v33 = vmul.f32 -1.442695, %v287_v40 }
  0xcc   :  { %2377 = vpow2.f32 %v2338_v33  ;;  %v307_v33 = vadd.f32 %v306_v44, %v203_v20 }
  0xcd   :  { %2379 = vpow2.f32 %v2337_v51 }
  0xce   :  { %v327_v18 = vadd.f32 %v326_v30, %v307_v33 }
  0xd2   :  { %v2378_v56 = vpop.eup %2377 }
  0xd3   :  { %v2380_v22 = vpop.eup %2379  ;;  %v391_v29 = vadd.f32 1.0, %v2378_v56 }
  0xd4   :  { %v372_v26 = vadd.f32 1.0, %v2380_v22 }
  0xd5   :  { %2381 = vrcp.f32 %v391_v29  ;;  %vm397_vm1 = vweird.f32 %v391_v29  ;;  %v403_v19 = vand.u32 2147483648, %v391_v29 }
  0xd6   :  { %2383 = vrcp.f32 %v372_v26  ;;  %vm378_vm3 = vweird.f32 %v372_v26 }
  0xd7   :  { %v404_v44 = vor.u32 1.1754944e-38, %v403_v19  ;;  %v2340_v19 = vld [vmem:[%s6009_s0 + $0x10] sm:$0xff] }
  0xd8   :  { %450 = vst [vmem:[#allocation1] ss:$2 sm:$0xff] %v2340_v19  ;;  %v6477_v19 = vld [vmem:[#allocation10_spill] sm:$0xff] }
  0xdb   :  { %v2382_v60 = vpop.eup %2381 }
  0xdc   :  { %v2384_v24 = vpop.eup %2383  ;;  %v393_v23 = vmul.f32 %v2382_v60, %v391_v29  ;;  %vm398_vm2 = vweird.f32 %v2382_v60 }
  0xdd   :  { %v374_v41 = vmul.f32 %v2384_v24, %v372_v26  ;;  %vm379_vm4 = vweird.f32 %v2384_v24  ;;  %vm3737_vm5 = vmor %vm397_vm1, %vm398_vm2 }
  0xde   :  { %v394_v39 = vsub.f32 1.0, %v393_v23  ;;  %v401_v23 = vand.u32 2147483647, %v391_v29  ;;  %vm3741_vm6 = vmor %vm378_vm3, %vm379_vm4 }
  0xdf   :  { %v375_v40 = vsub.f32 1.0, %v374_v41  ;;  %v384_v41 = vand.u32 2147483648, %v372_v26 }
  0xe0   :  { %v395_v55 = vmul.f32 %v2382_v60, %v394_v39  ;;  %vm402_vm7 = vcmp.eq.f32.partialorder %v401_v23, 8.507059e+37 }
  0xe1   :  { %v376_v22 = vmul.f32 %v2384_v24, %v375_v40 }
  0xe2   :  { %v396_v17 = vadd.f32 %v2382_v60, %v395_v55 }
  0xe3   :  { %v377_v20 = vadd.f32 %v2384_v24, %v376_v22 }
  0xe5   :  { %v346_v45 = vpop.f32.mrf.mxu2  ;;  %v381_v29 = vsel %vm3741_vm6, %v2384_v24, %v377_v20 }
  0xe6   :  { %v366_v34 = vpop.f32.mrf.mxu3  ;;  %v347_v50 = vadd.f32 %v346_v45, %v204_v49  ;;  %v382_v49 = vand.u32 2147483647, %v372_v26  ;;  %v400_v45 = vsel %vm3737_vm5, %v2382_v60, %v396_v17  ;;  %v191_v26 = vld [vmem:[%s6010_s3] sm:$0xf] }
  0xe8   :  { %v367_v51 = vadd.f32 %v366_v34, %v347_v50  ;;  %v385_v50 = vor.u32 1.1754944e-38, %v384_v41  ;;  %vm383_vm8 = vcmp.eq.f32.partialorder %v382_v49, 8.507059e+37 }
  0xea   :  { %v2339_v56 = vmul.f32 -1.442695, %v367_v51  ;;  %v386_v17 = vsel %vm383_vm8, %v385_v50, %v381_v29  ;;  %v6476_v50 = vld [vmem:[#allocation9_spill] sm:$0xff] }
  0xec   :  { %2385 = vpow2.f32 %v2339_v56 }
  0xed   :  { %2387 = vtanh.f32 %v327_v18  ;;  %v405_v18 = vsel %vm402_vm7, %v404_v44, %v400_v45 }
  0xee   :  { %v427_v60 = vmul.f32 %v405_v18, %v191_v26  ;;  %v3769_v18 = vld [vmem:[%s6007_s1 + $0x3e0] sm:$0xff] }
  0xf2   :  { %v2386_v34 = vpop.eup %2385 }
  0xf3   :  { %v411_v40 = vadd.f32 1.0, %v2386_v34  ;;  %v2388_v16 = vpop.eup %2387 }
  0xf4   :  { %v428_v33 = vmul.f32 %v2388_v16, %v386_v17  ;;  %v3777_v16 = vld [vmem:[%s6007_s1 + $0x1c0] sm:$0xff] }
  0xf5   :  { %2389 = vrcp.f32 %v411_v40  ;;  %v423_v56 = vand.u32 2147483648, %v411_v40  ;;  %v421_v23 = vand.u32 2147483647, %v411_v40  ;;  %vm417_vm10 = vweird.f32 %v411_v40  ;;  %v3783_v17 = vld [vmem:[%s6007_s1 + $0x3c0] sm:$0xff] }
  0xf6   :  { %v3755_v55 = vadd.f32 %v428_v33, %v427_v60  ;;  %v6478_v60 = vld [vmem:[#allocation28_spill] sm:$0xff] }
  0xf7   :  { %v424_v20 = vor.u32 1.1754944e-38, %v423_v56  ;;  %vm422_vm12 = vcmp.eq.f32.partialorder %v421_v23, 8.507059e+37  ;;  %v6479_v33 = vld [vmem:[#allocation32_spill] sm:$0xff]  ;;  %v6484_v23 = vld [vmem:[#allocation3_spill] sm:$0xff] }
  0xf8   :  { %2391 = vtanh.f32 %v3755_v55  ;;  %v6481_v56 = vld [vmem:[#allocation44_spill] sm:$0xff] }
  0xfb   :  { %v2390_v51 = vpop.eup %2389 }
  0xfc   :  { %v413_v24 = vmul.f32 %v2390_v51, %v411_v40  ;;  %vm418_vm9 = vweird.f32 %v2390_v51  ;;  %v3763_v40 = vld [vmem:[%s6007_s1 + $0x1e0] sm:$0xff] }
  0xfd   :  { %vm419_vm11 = vmor %vm417_vm10, %vm418_vm9 }
  0xfe   :  { %v414_v30 = vsub.f32 1.0, %v413_v24  ;;  %v2392_v44 = vpop.eup %2391  ;;  %v3881_v24 = vld [vmem:[%s6007_s1 + $0x2e0] sm:$0xff] }
 0x100   :  { %v415_v22 = vmul.f32 %v2390_v51, %v414_v30  ;;  %v6480_v30 = vld [vmem:[#allocation40_spill] sm:$0xff] }
 0x102   :  { %v416_v41 = vadd.f32 %v2390_v51, %v415_v22  ;;  %v3909_v22 = vld [vmem:[%s6007_s1 + $0x2a0] sm:$0xff] }
 0x103   :  { %6483 = vst [vmem:[#allocation24_spill] sm:$0xff] %v3909_v22 }
 0x104   :  { %v420_v49 = vsel %vm419_vm11, %v2390_v51, %v416_v41  ;;  %v3867_v51 = vld [vmem:[%s6007_s1 + $0x300] sm:$0xff]  ;;  %v6486_v41 = vld [vmem:[#allocation5_spill] sm:$0xff] }
 0x105   :  { %v425_v39 = vsel %vm422_vm12, %v424_v20, %v420_v49  ;;  %v6487_v20 = vld [vmem:[#allocation6_spill] sm:$0xff]  ;;  %v6488_v49 = vld [vmem:[#allocation7_spill] sm:$0xff] }
 0x106   :  { %v431_v45 = vmul.f32 %v2392_v44, %v425_v39  ;;  %v6511_v44 = vld [vmem:[#allocation18_spill] sm:$0xff]  ;;  %v6514_v39 = vld [vmem:[#allocation17_spill] sm:$0xff] }
 0x108   :  { %435 = vst [vmem:[#allocation2 + $0x30] sm:$0x3] %v431_v45  ;;  %v437_v34 = vrot.slane %v431_v45, 2  ;;  %v443_v29 = vmul.f32 %v431_v45, %v6476_v50  ;;  %v444_v26 = vmul.f32 %v431_v45, %v6477_v19  ;;  %v6515_v45 = vld [vmem:[#allocation20_spill] sm:$0xff] }
 0x10a   :  { %442 = vst [vmem:[#allocation2 + $0x28] sm:$0x3] %v437_v34  ;;  %477 = vmatmul.f32.vlgmr.msrb.gmra.mxu0 %v443_v29  ;;  %497 = vmatmul.f32.vlgmr.msrb.gmra.mxu1 %v444_v26  ;;  %v6516_v34 = vld [vmem:[#allocation54_spill] sm:$0xff] }
 0x10b   :  { %517 = vmatmul.f32.vlgmr.msrb.gmra.mxu2 %v443_v29  ;;  %537 = vmatmul.f32.vlgmr.msrb.gmra.mxu3 %v444_v26 }
 0x10c   :  { %713 = vmatpush.msrb.mxu0 %v3763_v40  ;;  %733 = vmatpush.msrb.mxu1 %v3769_v18 }
 0x10d   :  { %753 = vmatpush.msrb.mxu2 %v3102_v57  ;;  %773 = vmatpush.msrb.mxu3 %v3107_v58  ;;  %v3791_v57 = vld [vmem:[%s6007_s1 + $0x1a0] sm:$0xff] }
 0x10e   :  { %714 = vmatpush.msrb.mxu0 %v3777_v16  ;;  %734 = vmatpush.msrb.mxu1 %v3783_v17  ;;  %v3797_v58 = vld [vmem:[%s6007_s1 + $0x3a0] sm:$0xff] }
 0x10f   :  { %754 = vmatpush.msrb.mxu2 %v3122_v61  ;;  %774 = vmatpush.msrb.mxu3 %v3127_v62  ;;  %v3805_v61 = vld [vmem:[%s6007_s1 + $0x180] sm:$0xff] }
 0x110   :  { %715 = vmatpush.msrb.mxu0 %v3791_v57  ;;  %735 = vmatpush.msrb.mxu1 %v3797_v58  ;;  %v3811_v62 = vld [vmem:[%s6007_s1 + $0x380] sm:$0xff] }
 0x111   :  { %755 = vmatpush.msrb.mxu2 %v3144_v11  ;;  %775 = vmatpush.msrb.mxu3 %v3149_v14  ;;  %v3819_v11 = vld [vmem:[%s6007_s1 + $0x160] sm:$0xff] }
 0x112   :  { %557 = vmatmul.f32.vlgmr.msra.gmra.mxu0 %v443_v29  ;;  %577 = vmatmul.f32.vlgmr.msra.gmra.mxu1 %v444_v26  ;;  %v3825_v14 = vld [vmem:[%s6007_s1 + $0x360] sm:$0xff] }
 0x113   :  { %597 = vmatmul.f32.vlgmr.msra.gmra.mxu2 %v443_v29  ;;  %617 = vmatmul.f32.vlgmr.msra.gmra.mxu3 %v444_v26  ;;  %v6517_v29 = vld [vmem:[#allocation55_spill] sm:$0xff] }
 0x114   :  { %716 = vmatpush.msrb.mxu0 %v3805_v61  ;;  %736 = vmatpush.msrb.mxu1 %v3811_v62  ;;  %v6518_v26 = vld [vmem:[#allocation19_spill] sm:$0xff] }
 0x115   :  { %756 = vmatpush.msrb.mxu2 %v3168_v36  ;;  %776 = vmatpush.msrb.mxu3 %v6439_v25  ;;  %v3833_v36 = vld [vmem:[%s6007_s1 + $0x140] sm:$0xff] }
 0x116   :  { %717 = vmatpush.msrb.mxu0 %v3819_v11  ;;  %737 = vmatpush.msrb.mxu1 %v3825_v14  ;;  %v3839_v25 = vld [vmem:[%s6007_s1 + $0x340] sm:$0xff] }
 0x117   :  { %757 = vmatpush.msrb.mxu2 %v6442_v31  ;;  %777 = vmatpush.msrb.mxu3 %v6443_v32  ;;  %v3847_v31 = vld [vmem:[%s6007_s1 + $0x120] sm:$0xff] }
 0x118   :  { %718 = vmatpush.msrb.mxu0 %v3833_v36  ;;  %738 = vmatpush.msrb.mxu1 %v3839_v25  ;;  %v3853_v32 = vld [vmem:[%s6007_s1 + $0x320] sm:$0xff] }
 0x119   :  { %758 = vmatpush.msrb.mxu2 %v6478_v60  ;;  %778 = vmatpush.msrb.mxu3 %v6447_v42  ;;  %v3861_v42 = vld [vmem:[%s6007_s1 + $0x100] sm:$0xff]  ;;  %v6519_v60 = vld [vmem:[#allocation23_spill] sm:$0xff] }
 0x11a   :  { %719 = vmatpush.msrb.mxu0 %v3847_v31  ;;  %739 = vmatpush.msrb.mxu1 %v3853_v32 }
 0x11b   :  { %759 = vmatpush.msrb.mxu2 %v6479_v33  ;;  %779 = vmatpush.msrb.mxu3 %v6451_v59  ;;  %v3875_v59 = vld [vmem:[%s6007_s1 + $0xe0] sm:$0xff]  ;;  %v6520_v33 = vld [vmem:[#allocation56_spill] sm:$0xff] }
 0x11c   :  { %720 = vmatpush.msrb.mxu0 %v3861_v42  ;;  %740 = vmatpush.msrb.mxu1 %v3867_v51 }
 0x11d   :  { %760 = vmatpush.msrb.mxu2 %v6454_v27  ;;  %780 = vmatpush.msrb.mxu3 %v6455_v35  ;;  %v3889_v27 = vld [vmem:[%s6007_s1 + $0xc0] sm:$0xff] }
 0x11e   :  { %721 = vmatpush.msrb.mxu0 %v3875_v59  ;;  %741 = vmatpush.msrb.mxu1 %v3881_v24  ;;  %v3895_v35 = vld [vmem:[%s6007_s1 + $0x2c0] sm:$0xff] }
 0x11f   :  { %761 = vmatpush.msrb.mxu2 %v6480_v30  ;;  %781 = vmatpush.msrb.mxu3 %v6458_v43  ;;  %v3903_v43 = vld [vmem:[%s6007_s1 + $0xa0] sm:$0xff]  ;;  %v6521_v30 = vld [vmem:[#allocation57_spill] sm:$0xff] }
 0x120   :  { %722 = vmatpush.msrb.mxu0 %v3889_v27  ;;  %742 = vmatpush.msrb.mxu1 %v3895_v35  ;;  %6482 = vst [vmem:[#allocation21_spill] sm:$0xff] %v3903_v43 }
 0x121   :  { %762 = vmatpush.msrb.mxu2 %v6481_v56  ;;  %782 = vmatpush.msrb.mxu3 %v3317_v46  ;;  %v6485_v46 = vld [vmem:[#allocation4_spill] sm:$0xff]  ;;  %v6522_v56 = vld [vmem:[#allocation22_spill] sm:$0xff] }
 0x122   :  { %723 = vmatpush.msrb.mxu0 %v3903_v43  ;;  %743 = vmatpush.msrb.mxu1 %v3909_v22 }
 0x123   :  { %763 = vmatpush.msrb.mxu2 %v3331_v8  ;;  %783 = vmatpush.msrb.mxu3 %v6463_v38  ;;  %v6489_v8 = vld [vmem:[#allocation8_spill] sm:$0xff]  ;;  %v6490_v38 = vld [vmem:[#allocation11_spill] sm:$0xff] }
 0x124   :  { %724 = vmatpush.msrb.mxu0 %v6484_v23  ;;  %744 = vmatpush.msrb.mxu1 %v6485_v46  ;;  %v6523_v23 = vld [vmem:[#allocation27_spill] sm:$0xff]  ;;  %v6524_v46 = vld [vmem:[#allocation58_spill] sm:$0xff] }
 0x125   :  { %764 = vmatpush.msrb.mxu2 %v3345_v21  ;;  %784 = vmatpush.msrb.mxu3 %v6466_v48  ;;  %v6491_v21 = vld [vmem:[#allocation12_spill] sm:$0xff]  ;;  %v6492_v48 = vld [vmem:[#allocation15_spill] sm:$0xff] }
 0x126   :  { %725 = vmatpush.msrb.mxu0 %v6486_v41  ;;  %745 = vmatpush.msrb.mxu1 %v6487_v20  ;;  %v6525_v41 = vld [vmem:[#allocation59_spill] sm:$0xff]  ;;  %v6526_v20 = vld [vmem:[#allocation26_spill] sm:$0xff] }
 0x127   :  { %765 = vmatpush.msrb.mxu2 %v3359_v47  ;;  %785 = vmatpush.msrb.mxu3 %v3364_v52  ;;  %v6493_v47 = vld [vmem:[#allocation16_spill] sm:$0xff] }
 0x128   :  { %726 = vmatpush.msrb.mxu0 %v6488_v49  ;;  %746 = vmatpush.msrb.mxu1 %v6489_v8  ;;  %v3971_v52 = vld [vmem:[%s6007_s1 + $0x3b0] sm:$0xff]  ;;  %v6527_v49 = vld [vmem:[#allocation31_spill] sm:$0xff] }
 0x129   :  { %766 = vmatpush.msrb.mxu2 %v3373_v53  ;;  %786 = vmatpush.msrb.mxu3 %v3378_v28  ;;  %v3937_v53 = vld [vmem:[%s6007_s1 + $0x1f0] sm:$0xff]  ;;  %6499 = vst [vmem:[#allocation41_spill] sm:$0xff] %v3971_v52 }
 0x12a   :  { %727 = vmatpush.msrb.mxu0 %v6490_v38  ;;  %747 = vmatpush.msrb.mxu1 %v6491_v21  ;;  %6494 = vst [vmem:[#allocation25_spill] sm:$0xff] %v3937_v53  ;;  %v3943_v28 = vld [vmem:[%s6007_s1 + $0x3f0] sm:$0xff]  ;;  %v6529_v38 = vld [vmem:[#allocation61_spill] sm:$0xff]  ;;  %v6530_v21 = vld [vmem:[#allocation30_spill] sm:$0xff] }
 0x12b   :  { %767 = vmatpush.msrb.mxu2 %v3387_v0  ;;  %787 = vmatpush.msrb.mxu3 %v3392_v37  ;;  %6495 = vst [vmem:[#allocation29_spill] sm:$0xff] %v3943_v28  ;;  %v3957_v37 = vld [vmem:[%s6007_s1 + $0x3d0] sm:$0xff] }
 0x12c   :  { %728 = vmatpush.msrb.mxu0 %v6492_v48  ;;  %748 = vmatpush.msrb.mxu1 %v6493_v47  ;;  %6497 = vst [vmem:[#allocation36_spill] sm:$0xff] %v3957_v37  ;;  %v3979_v0 = vld [vmem:[%s6007_s1 + $0x190] sm:$0xff]  ;;  %v6531_v48 = vld [vmem:[#allocation35_spill] sm:$0xff]  ;;  %v6532_v47 = vld [vmem:[#allocation62_spill] sm:$0xff] }
 0x12d   :  { %768 = vmatpush.msrb.mxu2 %v3401_v1  ;;  %788 = vmatpush.msrb.mxu3 %v6470_v54  ;;  %v3951_v54 = vld [vmem:[%s6007_s1 + $0x1d0] sm:$0xff]  ;;  %6500 = vst [vmem:[#allocation46_spill] sm:$0xff] %v3979_v0 }
 0x12e   :  { %793 = vmatpush.msra.mxu0 %v3937_v53  ;;  %813 = vmatpush.msra.mxu1 %v3943_v28  ;;  %6496 = vst [vmem:[#allocation33_spill] sm:$0xff] %v3951_v54  ;;  %v3985_v1 = vld [vmem:[%s6007_s1 + $0x390] sm:$0xff] }
 0x12f   :  { %833 = vmatpush.msra.mxu2 %v3415_v3  ;;  %853 = vmatpush.msra.mxu3 %v6471_v63  ;;  %v3965_v63 = vld [vmem:[%s6007_s1 + $0x1b0] sm:$0xff]  ;;  %6501 = vst [vmem:[#allocation47_spill] sm:$0xff] %v3985_v1 }
 0x130   :  { %794 = vmatpush.msra.mxu0 %v3951_v54  ;;  %814 = vmatpush.msra.mxu1 %v3957_v37  ;;  %6498 = vst [vmem:[#allocation37_spill] sm:$0xff] %v3965_v63  ;;  %v3999_v3 = vld [vmem:[%s6007_s1 + $0x370] sm:$0xff] }
 0x131   :  { %834 = vmatpush.msra.mxu2 %v3431_v5  ;;  %854 = vmatpush.msra.mxu3 %v3436_v6  ;;  %6503 = vst [vmem:[#allocation49_spill] sm:$0xff] %v3999_v3  ;;  %v4013_v5 = vld [vmem:[%s6007_s1 + $0x350] sm:$0xff] }
 0x132   :  { %795 = vmatpush.msra.mxu0 %v3965_v63  ;;  %815 = vmatpush.msra.mxu1 %v3971_v52  ;;  %6505 = vst [vmem:[#allocation10_spill] sm:$0xff] %v4013_v5  ;;  %v4021_v6 = vld [vmem:[%s6007_s1 + $0x130] sm:$0xff] }
 0x133   :  { %835 = vmatpush.msra.mxu2 %v3446_v9  ;;  %855 = vmatpush.msra.mxu3 %v3451_v2  ;;  %v3993_v2 = vld [vmem:[%s6007_s1 + $0x170] sm:$0xff]  ;;  %6506 = vst [vmem:[#allocation28_spill] sm:$0xff] %v4021_v6  ;;  %v6507_v9 = vld [vmem:[#allocation14_spill] sm:$0xff] }
 0x134   :  { %796 = vmatpush.msra.mxu0 %v3979_v0  ;;  %816 = vmatpush.msra.mxu1 %v3985_v1  ;;  %6502 = vst [vmem:[#allocation48_spill] sm:$0xff] %v3993_v2  ;;  %v6528_v8 = vld [vmem:[#allocation60_spill] sm:$0xff] }
 0x135   :  { %836 = vmatpush.msra.mxu2 %v3460_v7  ;;  %856 = vmatpush.msra.mxu3 %v3465_v4  ;;  %v4007_v4 = vld [vmem:[%s6007_s1 + $0x150] sm:$0xff]  ;;  %v6508_v7 = vld [vmem:[#allocation50_spill] sm:$0xff] }
 0x136   :  { %797 = vmatpush.msra.mxu0 %v3993_v2  ;;  %817 = vmatpush.msra.mxu1 %v3999_v3  ;;  %6504 = vst [vmem:[#allocation9_spill] sm:$0xff] %v4007_v4 }
 0x137   :  { %837 = vmatpush.msra.mxu2 %v3474_v10  ;;  %857 = vmatpush.msra.mxu3 %v3479_v12  ;;  %v6509_v10 = vld [vmem:[#allocation51_spill] sm:$0xff]  ;;  %v6510_v12 = vld [vmem:[#allocation13_spill] sm:$0xff] }
 0x138   :  { %798 = vmatpush.msra.mxu0 %v4007_v4  ;;  %818 = vmatpush.msra.mxu1 %v4013_v5 }
 0x139   :  { %838 = vmatpush.msra.mxu2 %v3488_v13  ;;  %858 = vmatpush.msra.mxu3 %v3493_v15  ;;  %v6512_v13 = vld [vmem:[#allocation52_spill] sm:$0xff]  ;;  %v6513_v15 = vld [vmem:[#allocation53_spill] sm:$0xff] }
 0x13a   :  { %799 = vmatpush.msra.mxu0 %v4021_v6  ;;  %819 = vmatpush.msra.mxu1 %v6507_v9  ;;  %v6533_v9 = vld [vmem:[#allocation63_spill] sm:$0xff] }
 0x13b   :  { %839 = vmatpush.msra.mxu2 %v6508_v7  ;;  %859 = vmatpush.msra.mxu3 %v6509_v10  ;;  %v6534_v7 = vld [vmem:[#allocation34_spill] sm:$0xff]  ;;  %v6535_v10 = vld [vmem:[#allocation39_spill] sm:$0xff] }
 0x13c   :  { %800 = vmatpush.msra.mxu0 %v6510_v12  ;;  %820 = vmatpush.msra.mxu1 %v6511_v44  ;;  %v6536_v12 = vld [vmem:[#allocation64_spill] sm:$0xff]  ;;  %v6537_v44 = vld [vmem:[#allocation65_spill] sm:$0xff] }
 0x13d   :  { %840 = vmatpush.msra.mxu2 %v6512_v13  ;;  %860 = vmatpush.msra.mxu3 %v6513_v15  ;;  %v6538_v13 = vld [vmem:[#allocation38_spill] sm:$0xff]  ;;  %v6539_v15 = vld [vmem:[#allocation43_spill] sm:$0xff] }
 0x13e   :  { %801 = vmatpush.msra.mxu0 %v6514_v39  ;;  %821 = vmatpush.msra.mxu1 %v6515_v45  ;;  %v6540_v39 = vld [vmem:[#allocation66_spill] sm:$0xff]  ;;  %v6541_v45 = vld [vmem:[#allocation67_spill] sm:$0xff] }
 0x13f   :  { %841 = vmatpush.msra.mxu2 %v6516_v34  ;;  %861 = vmatpush.msra.mxu3 %v6517_v29  ;;  %v6542_v34 = vld [vmem:[#allocation42_spill] sm:$0xff]  ;;  %v6543_v29 = vld [vmem:[#allocation45_spill] sm:$0xff] }
 0x140   :  { %802 = vmatpush.msra.mxu0 %v6518_v26  ;;  %822 = vmatpush.msra.mxu1 %v6519_v60  ;;  %v6544_v26 = vld [vmem:[#allocation68_spill] sm:$0xff]  ;;  %v6545_v60 = vld [vmem:[#allocation69_spill] sm:$0xff] }
 0x141   :  { %842 = vmatpush.msra.mxu2 %v6520_v33  ;;  %862 = vmatpush.msra.mxu3 %v6521_v30  ;;  %v2341_v33 = vld [vmem:[%s6009_s0 + $0x18] sm:$0xff]  ;;  %v453_v30 = vld.sshfl [vmem:[#allocation1] sm:$0xff pattern:$0x75316420] }
 0x142   :  { %803 = vmatpush.msra.mxu0 %v6522_v56  ;;  %823 = vmatpush.msra.mxu1 %v6523_v23  ;;  %452 = vst [vmem:[#allocation1 + $0x10] ss:$2 sm:$0xff] %v2341_v33 }
 0x143   :  { %843 = vmatpush.msra.mxu2 %v6524_v46  ;;  %863 = vmatpush.msra.mxu3 %v6525_v41 }
 0x144   :  { %804 = vmatpush.msra.mxu0 %v6526_v20  ;;  %824 = vmatpush.msra.mxu1 %v6527_v49  ;;  %v454_v49 = vld.sshfl [vmem:[#allocation1 + $0x8] sm:$0xff pattern:$0x75316420] }
 0x145   :  { %844 = vmatpush.msra.mxu2 %v6528_v8  ;;  %864 = vmatpush.msra.mxu3 %v6529_v38 }
 0x146   :  { %805 = vmatpush.msra.mxu0 %v6530_v21  ;;  %825 = vmatpush.msra.mxu1 %v6531_v48 }
 0x147   :  { %845 = vmatpush.msra.mxu2 %v6532_v47  ;;  %865 = vmatpush.msra.mxu3 %v6533_v9 }
 0x148   :  { %806 = vmatpush.msra.mxu0 %v6534_v7  ;;  %826 = vmatpush.msra.mxu1 %v6535_v10 }
 0x149   :  { %846 = vmatpush.msra.mxu2 %v6536_v12  ;;  %866 = vmatpush.msra.mxu3 %v6537_v44  ;;  %v456_v10 = vld.sshfl [vmem:[#allocation1 + $0x18] sm:$0xff pattern:$0x75316420] }
 0x14a   :  { %807 = vmatpush.msra.mxu0 %v6538_v13  ;;  %827 = vmatpush.msra.mxu1 %v6539_v15 }
 0x14b   :  { %847 = vmatpush.msra.mxu2 %v6540_v39  ;;  %867 = vmatpush.msra.mxu3 %v6541_v45 }
 0x14c   :  { %808 = vmatpush.msra.mxu0 %v6542_v34  ;;  %828 = vmatpush.msra.mxu1 %v6543_v29  ;;  %v455_v34 = vld.sshfl [vmem:[#allocation1 + $0x10] sm:$0xff pattern:$0x75316420] }
 0x14d   :  { %848 = vmatpush.msra.mxu2 %v6544_v26  ;;  %868 = vmatpush.msra.mxu3 %v6545_v60 }
 0x187   :  { %v478_v56 = vpop.f32.mrf.mxu0  ;;  %v498_v46 = vpop.f32.mrf.mxu1 }
 0x188   :  { %v479_v23 = vadd.f32 %v478_v56, %v453_v30 }
 0x18a   :  { %v499_v41 = vadd.f32 %v498_v46, %v479_v23 }
 0x18c   :  { %v2342_v20 = vmul.f32 -1.442695, %v499_v41 }
 0x18e   :  { %2393 = vpow2.f32 %v2342_v20  ;;  %v518_v8 = vpop.f32.mrf.mxu2  ;;  %v538_v21 = vpop.f32.mrf.mxu3 }
 0x18f   :  { %v519_v38 = vadd.f32 %v518_v8, %v454_v49  ;;  %v558_v29 = vpop.f32.mrf.mxu0  ;;  %v578_v23 = vpop.f32.mrf.mxu1 }
 0x190   :  { %v559_v30 = vadd.f32 %v558_v29, %v455_v34 }
 0x191   :  { %v539_v48 = vadd.f32 %v538_v21, %v519_v38 }
 0x192   :  { %v579_v41 = vadd.f32 %v578_v23, %v559_v30 }
 0x193   :  { %v2343_v47 = vmul.f32 -1.442695, %v539_v48 }
 0x194   :  { %v2394_v9 = vpop.eup %2393 }
 0x195   :  { %v624_v7 = vadd.f32 1.0, %v2394_v9  ;;  %2395 = vpow2.f32 %v2343_v47 }
 0x196   :  { %v598_v12 = vpop.f32.mrf.mxu2  ;;  %v618_v13 = vpop.f32.mrf.mxu3 }
 0x197   :  { %2397 = vrcp.f32 %v624_v7  ;;  %v599_v44 = vadd.f32 %v598_v12, %v456_v10  ;;  %v636_v21 = vand.u32 2147483648, %v624_v7  ;;  %vm630_vm14 = vweird.f32 %v624_v7  ;;  %v2345_v10 = vld [vmem:[%s6009_s0 + $0x20] sm:$0xff] }
 0x198   :  { %v634_v9 = vand.u32 2147483647, %v624_v7  ;;  %702 = vst [vmem:[#allocation1] ss:$2 sm:$0xff] %v2345_v10 }
 0x199   :  { %v619_v15 = vadd.f32 %v618_v13, %v599_v44 }
 0x19a   :  { %vm635_vm2 = vcmp.eq.f32.partialorder %v634_v9, 8.507059e+37 }
 0x19b   :  { %v2396_v39 = vpop.eup %2395  ;;  %v2344_v26 = vmul.f32 -1.442695, %v619_v15 }
 0x19c   :  { %v643_v45 = vadd.f32 1.0, %v2396_v39  ;;  %v637_v39 = vor.u32 1.1754944e-38, %v636_v21 }
 0x19d   :  { %v2398_v60 = vpop.eup %2397 }
 0x19e   :  { %v626_v33 = vmul.f32 %v2398_v60, %v624_v7  ;;  %2399 = vrcp.f32 %v643_v45  ;;  %vm631_vm13 = vweird.f32 %v2398_v60  ;;  %v655_v12 = vand.u32 2147483648, %v643_v45 }
 0x19f   :  { %2401 = vpow2.f32 %v2344_v26  ;;  %vm632_vm15 = vmor %vm630_vm14, %vm631_vm13  ;;  %v653_v15 = vand.u32 2147483647, %v643_v45  ;;  %vm649_vm1 = vweird.f32 %v643_v45 }
 0x1a0   :  { %v627_v56 = vsub.f32 1.0, %v626_v33  ;;  %2403 = vtanh.f32 %v579_v41  ;;  %v656_v29 = vor.u32 1.1754944e-38, %v655_v12 }
 0x1a1   :  { %vm654_vm4 = vcmp.eq.f32.partialorder %v653_v15, 8.507059e+37  ;;  %v4086_v15 = vld [vmem:[%s6007_s1 + $0x3e8] sm:$0xff] }
 0x1a2   :  { %v628_v46 = vmul.f32 %v2398_v60, %v627_v56 }
 0x1a4   :  { %v2400_v20 = vpop.eup %2399  ;;  %v629_v38 = vadd.f32 %v2398_v60, %v628_v46 }
 0x1a5   :  { %v2402_v49 = vpop.eup %2401  ;;  %v645_v8 = vmul.f32 %v2400_v20, %v643_v45  ;;  %vm650_vm0 = vweird.f32 %v2400_v20 }
 0x1a6   :  { %v663_v48 = vadd.f32 1.0, %v2402_v49  ;;  %v633_v13 = vsel %vm632_vm15, %v2398_v60, %v629_v38  ;;  %vm651_vm3 = vmor %vm649_vm1, %vm650_vm0  ;;  %v2404_v26 = vpop.eup %2403 }
 0x1a7   :  { %v646_v47 = vsub.f32 1.0, %v645_v8  ;;  %v638_v7 = vsel %vm635_vm2, %v637_v39, %v633_v13  ;;  %v4094_v39 = vld [vmem:[%s6007_s1 + $0x1c8] sm:$0xff] }
 0x1a8   :  { %2405 = vrcp.f32 %v663_v48  ;;  %v680_v46 = vmul.f32 %v2404_v26, %v638_v7  ;;  %v675_v8 = vand.u32 2147483648, %v663_v48  ;;  %v673_v38 = vand.u32 2147483647, %v663_v48  ;;  %v4114_v7 = vld [vmem:[%s6007_s1 + $0x3a8] sm:$0xff] }
 0x1a9   :  { %v647_v44 = vmul.f32 %v2400_v20, %v646_v47  ;;  %vm669_vm6 = vweird.f32 %v663_v48  ;;  %v4122_v26 = vld [vmem:[%s6007_s1 + $0x188] sm:$0xff] }
 0x1aa   :  { %vm674_vm8 = vcmp.eq.f32.partialorder %v673_v38, 8.507059e+37  ;;  %v4192_v38 = vld [vmem:[%s6007_s1 + $0xe8] sm:$0xff] }
 0x1ab   :  { %v648_v34 = vadd.f32 %v2400_v20, %v647_v44 }
 0x1ad   :  { %v652_v33 = vsel %vm651_vm3, %v2400_v20, %v648_v34  ;;  %v676_v20 = vor.u32 1.1754944e-38, %v675_v8  ;;  %v4100_v34 = vld [vmem:[%s6007_s1 + $0x3c8] sm:$0xff] }
 0x1ae   :  { %v2406_v30 = vpop.eup %2405  ;;  %v657_v56 = vsel %vm654_vm4, %v656_v29, %v652_v33  ;;  %v4108_v29 = vld [vmem:[%s6007_s1 + $0x1a8] sm:$0xff] }
 0x1af   :  { %v679_v23 = vmul.f32 %v657_v56, %v3755_v55  ;;  %v665_v41 = vmul.f32 %v2406_v30, %v663_v48  ;;  %vm670_vm5 = vweird.f32 %v2406_v30  ;;  %v4080_v48 = vld [vmem:[%s6007_s1 + $0x1e8] sm:$0xff] }
 0x1b0   :  { %vm671_vm7 = vmor %vm669_vm6, %vm670_vm5  ;;  %v4128_v33 = vld [vmem:[%s6007_s1 + $0x388] sm:$0xff] }
 0x1b1   :  { %v4070_v49 = vadd.f32 %v680_v46, %v679_v23  ;;  %v666_v60 = vsub.f32 1.0, %v665_v41  ;;  %v4142_v56 = vld [vmem:[%s6007_s1 + $0x368] sm:$0xff] }
 0x1b2   :  { %v4150_v23 = vld [vmem:[%s6007_s1 + $0x148] sm:$0xff] }
 0x1b3   :  { %2407 = vtanh.f32 %v4070_v49  ;;  %v667_v45 = vmul.f32 %v2406_v30, %v666_v60  ;;  %v4156_v46 = vld [vmem:[%s6007_s1 + $0x348] sm:$0xff] }
 0x1b4   :  { %v4164_v41 = vld [vmem:[%s6007_s1 + $0x128] sm:$0xff] }
 0x1b5   :  { %v668_v21 = vadd.f32 %v2406_v30, %v667_v45  ;;  %v4170_v60 = vld [vmem:[%s6007_s1 + $0x328] sm:$0xff] }
 0x1b6   :  { %v4178_v45 = vld [vmem:[%s6007_s1 + $0x108] sm:$0xff] }
 0x1b7   :  { %v672_v47 = vsel %vm671_vm7, %v2406_v30, %v668_v21  ;;  %v4136_v30 = vld [vmem:[%s6007_s1 + $0x168] sm:$0xff] }
 0x1b8   :  { %v677_v10 = vsel %vm674_vm8, %v676_v20, %v672_v47  ;;  %v4184_v8 = vld [vmem:[%s6007_s1 + $0x308] sm:$0xff] }
 0x1b9   :  { %v2408_v9 = vpop.eup %2407  ;;  %v4198_v21 = vld [vmem:[%s6007_s1 + $0x2e8] sm:$0xff] }
 0x1ba   :  { %v683_v55 = vmul.f32 %v2408_v9, %v677_v10  ;;  %v4206_v20 = vld [vmem:[%s6007_s1 + $0xc8] sm:$0xff] }
 0x1bb   :  { %6546 = vst [vmem:[#allocation32_spill] sm:$0xff] %v4206_v20  ;;  %v4212_v47 = vld [vmem:[%s6007_s1 + $0x2c8] sm:$0xff] }
 0x1bc   :  { %687 = vst [vmem:[#allocation2 + $0x58] sm:$0x3] %v683_v55  ;;  %v689_v12 = vrot.slane %v683_v55, 2  ;;  %v695_v44 = vmul.f32 %v683_v55, %v6476_v50  ;;  %v696_v13 = vmul.f32 %v683_v55, %v6477_v19  ;;  %v4220_v9 = vld [vmem:[%s6007_s1 + $0xa8] sm:$0xff]  ;;  %v4232_v55 = vld [vmem:[%s6007_s1 + $0x80] sm:$0xff] }
 0x1bd   :  { %6547 = vst [vmem:[#allocation40_spill] sm:$0xff] %v4212_v47  ;;  %v4226_v10 = vld [vmem:[%s6007_s1 + $0x2a8] sm:$0xff] }
 0x1be   :  { %694 = vst [vmem:[#allocation2 + $0x70] sm:$0x3] %v689_v12  ;;  %729 = vmatmul.f32.vlgmr.msrb.gmra.mxu0 %v695_v44  ;;  %749 = vmatmul.f32.vlgmr.msrb.gmra.mxu1 %v696_v13  ;;  %v4238_v12 = vld [vmem:[%s6007_s1 + $0x280] sm:$0xff] }
 0x1bf   :  { %769 = vmatmul.f32.vlgmr.msrb.gmra.mxu2 %v695_v44  ;;  %789 = vmatmul.f32.vlgmr.msrb.gmra.mxu3 %v696_v13  ;;  %6548 = vst [vmem:[#allocation44_spill] sm:$0xff] %v4220_v9 }
 0x1c0   :  { %965 = vmatpush.msrb.mxu0 %v3763_v40  ;;  %985 = vmatpush.msrb.mxu1 %v3769_v18  ;;  %6549 = vst [vmem:[#allocation3_spill] sm:$0xff] %v4226_v10 }
 0x1c1   :  { %1005 = vmatpush.msrb.mxu2 %v4080_v48  ;;  %1025 = vmatpush.msrb.mxu3 %v4086_v15  ;;  %6550 = vst [vmem:[#allocation4_spill] sm:$0xff] %v4232_v55 }
 0x1c2   :  { %966 = vmatpush.msrb.mxu0 %v3777_v16  ;;  %986 = vmatpush.msrb.mxu1 %v3783_v17  ;;  %6551 = vst [vmem:[#allocation5_spill] sm:$0xff] %v4238_v12 }
 0x1c3   :  { %1006 = vmatpush.msrb.mxu2 %v4094_v39  ;;  %1026 = vmatpush.msrb.mxu3 %v4100_v34 }
 0x1c4   :  { %967 = vmatpush.msrb.mxu0 %v3791_v57  ;;  %987 = vmatpush.msrb.mxu1 %v3797_v58 }
 0x1c5   :  { %1007 = vmatpush.msrb.mxu2 %v4108_v29  ;;  %1027 = vmatpush.msrb.mxu3 %v4114_v7 }
 0x1c6   :  { %809 = vmatmul.f32.vlgmr.msra.gmra.mxu0 %v695_v44  ;;  %829 = vmatmul.f32.vlgmr.msra.gmra.mxu1 %v696_v13 }
 0x1c7   :  { %849 = vmatmul.f32.vlgmr.msra.gmra.mxu2 %v695_v44  ;;  %869 = vmatmul.f32.vlgmr.msra.gmra.mxu3 %v696_v13  ;;  %v4244_v44 = vld [vmem:[%s6007_s1 + $0x88] sm:$0xff] }
 0x1c8   :  { %968 = vmatpush.msrb.mxu0 %v3805_v61  ;;  %988 = vmatpush.msrb.mxu1 %v3811_v62  ;;  %6552 = vst [vmem:[#allocation6_spill] sm:$0xff] %v4244_v44  ;;  %v4250_v13 = vld [vmem:[%s6007_s1 + $0x288] sm:$0xff] }
 0x1c9   :  { %1008 = vmatpush.msrb.mxu2 %v4122_v26  ;;  %1028 = vmatpush.msrb.mxu3 %v4128_v33  ;;  %6553 = vst [vmem:[#allocation7_spill] sm:$0xff] %v4250_v13 }
 0x1ca   :  { %969 = vmatpush.msrb.mxu0 %v3819_v11  ;;  %989 = vmatpush.msrb.mxu1 %v3825_v14 }
 0x1cb   :  { %1009 = vmatpush.msrb.mxu2 %v4136_v30  ;;  %1029 = vmatpush.msrb.mxu3 %v4142_v56 }
 0x1cc   :  { %970 = vmatpush.msrb.mxu0 %v3833_v36  ;;  %990 = vmatpush.msrb.mxu1 %v3839_v25 }
 0x1cd   :  { %1010 = vmatpush.msrb.mxu2 %v4150_v23  ;;  %1030 = vmatpush.msrb.mxu3 %v4156_v46 }
 0x1ce   :  { %971 = vmatpush.msrb.mxu0 %v3847_v31  ;;  %991 = vmatpush.msrb.mxu1 %v3853_v32 }
 0x1cf   :  { %1011 = vmatpush.msrb.mxu2 %v4164_v41  ;;  %1031 = vmatpush.msrb.mxu3 %v4170_v60 }
 0x1d0   :  { %972 = vmatpush.msrb.mxu0 %v3861_v42  ;;  %992 = vmatpush.msrb.mxu1 %v3867_v51 }
 0x1d1   :  { %1012 = vmatpush.msrb.mxu2 %v4178_v45  ;;  %1032 = vmatpush.msrb.mxu3 %v4184_v8 }
 0x1d2   :  { %973 = vmatpush.msrb.mxu0 %v3875_v59  ;;  %993 = vmatpush.msrb.mxu1 %v3881_v24 }
 0x1d3   :  { %1013 = vmatpush.msrb.mxu2 %v4192_v38  ;;  %1033 = vmatpush.msrb.mxu3 %v4198_v21 }
 0x1d4   :  { %974 = vmatpush.msrb.mxu0 %v3889_v27  ;;  %994 = vmatpush.msrb.mxu1 %v3895_v35 }
 0x1d5   :  { %1014 = vmatpush.msrb.mxu2 %v4206_v20  ;;  %1034 = vmatpush.msrb.mxu3 %v4212_v47 }
 0x1d6   :  { %975 = vmatpush.msrb.mxu0 %v3903_v43  ;;  %995 = vmatpush.msrb.mxu1 %v3909_v22 }
 0x1d7   :  { %1015 = vmatpush.msrb.mxu2 %v4220_v9  ;;  %1035 = vmatpush.msrb.mxu3 %v4226_v10 }
 0x1d8   :  { %976 = vmatpush.msrb.mxu0 %v4232_v55  ;;  %996 = vmatpush.msrb.mxu1 %v4238_v12  ;;  %v4256_v55 = vld [vmem:[%s6007_s1 + $0x60] sm:$0xff] }
 0x1d9   :  { %1016 = vmatpush.msrb.mxu2 %v4244_v44  ;;  %1036 = vmatpush.msrb.mxu3 %v4250_v13  ;;  %6554 = vst [vmem:[#allocation8_spill] sm:$0xff] %v4256_v55  ;;  %v4262_v12 = vld [vmem:[%s6007_s1 + $0x260] sm:$0xff]  ;;  %v4268_v44 = vld [vmem:[%s6007_s1 + $0x68] sm:$0xff] }
 0x1da   :  { %977 = vmatpush.msrb.mxu0 %v4256_v55  ;;  %6555 = vst [vmem:[#allocation11_spill] sm:$0xff] %v4262_v12  ;;  %997 = vmatpush.msrb.mxu1 %v4262_v12  ;;  %v4274_v13 = vld [vmem:[%s6007_s1 + $0x268] sm:$0xff]  ;;  %v4280_v55 = vld [vmem:[%s6007_s1 + $0x40] sm:$0xff] }
 0x1db   :  { %6556 = vst [vmem:[#allocation12_spill] sm:$0xff] %v4268_v44  ;;  %1017 = vmatpush.msrb.mxu2 %v4268_v44  ;;  %1037 = vmatpush.msrb.mxu3 %v4274_v13  ;;  %v4286_v12 = vld [vmem:[%s6007_s1 + $0x240] sm:$0xff]  ;;  %v4292_v44 = vld [vmem:[%s6007_s1 + $0x48] sm:$0xff] }
 0x1dc   :  { %6557 = vst [vmem:[#allocation15_spill] sm:$0xff] %v4274_v13  ;;  %978 = vmatpush.msrb.mxu0 %v4280_v55  ;;  %998 = vmatpush.msrb.mxu1 %v4286_v12  ;;  %v4298_v13 = vld [vmem:[%s6007_s1 + $0x248] sm:$0xff] }
 0x1dd   :  { %6558 = vst [vmem:[#allocation16_spill] sm:$0xff] %v4280_v55  ;;  %1018 = vmatpush.msrb.mxu2 %v4292_v44  ;;  %1038 = vmatpush.msrb.mxu3 %v4298_v13  ;;  %v4304_v55 = vld [vmem:[%s6007_s1 + $0x20] sm:$0xff] }
 0x1de   :  { %6559 = vst [vmem:[#allocation14_spill] sm:$0xff] %v4286_v12  ;;  %979 = vmatpush.msrb.mxu0 %v4304_v55  ;;  %v4310_v12 = vld [vmem:[%s6007_s1 + $0x220] sm:$0xff] }
 0x1df   :  { %6560 = vst [vmem:[#allocation50_spill] sm:$0xff] %v4292_v44  ;;  %999 = vmatpush.msrb.mxu1 %v4310_v12  ;;  %v4316_v44 = vld [vmem:[%s6007_s1 + $0x28] sm:$0xff] }
 0x1e0   :  { %6561 = vst [vmem:[#allocation51_spill] sm:$0xff] %v4298_v13  ;;  %1019 = vmatpush.msrb.mxu2 %v4316_v44  ;;  %v4322_v13 = vld [vmem:[%s6007_s1 + $0x228] sm:$0xff] }
 0x1e1   :  { %6562 = vst [vmem:[#allocation13_spill] sm:$0xff] %v4304_v55  ;;  %1039 = vmatpush.msrb.mxu3 %v4322_v13  ;;  %v4328_v55 = vld [vmem:[%s6007_s1] sm:$0xff] }
 0x1e2   :  { %6563 = vst [vmem:[#allocation18_spill] sm:$0xff] %v4310_v12  ;;  %980 = vmatpush.msrb.mxu0 %v4328_v55  ;;  %v4334_v12 = vld [vmem:[%s6007_s1 + $0x200] sm:$0xff] }
 0x1e3   :  { %6564 = vst [vmem:[#allocation52_spill] sm:$0xff] %v4316_v44  ;;  %1000 = vmatpush.msrb.mxu1 %v4334_v12  ;;  %v4340_v44 = vld [vmem:[%s6007_s1 + $0x8] sm:$0xff] }
 0x1e4   :  { %6565 = vst [vmem:[#allocation53_spill] sm:$0xff] %v4322_v13  ;;  %1020 = vmatpush.msrb.mxu2 %v4340_v44  ;;  %v4346_v13 = vld [vmem:[%s6007_s1 + $0x208] sm:$0xff]  ;;  %1045 = vmatpush.msra.mxu0 %v3937_v53 }
 0x1e5   :  { %6566 = vst [vmem:[#allocation17_spill] sm:$0xff] %v4328_v55  ;;  %1040 = vmatpush.msrb.mxu3 %v4346_v13  ;;  %1065 = vmatpush.msra.mxu1 %v3943_v28  ;;  %v4368_v28 = vld [vmem:[%s6007_s1 + $0x1d8] sm:$0xff] }
 0x1e6   :  { %6567 = vst [vmem:[#allocation20_spill] sm:$0xff] %v4334_v12  ;;  %v4354_v12 = vld [vmem:[%s6007_s1 + $0x1f8] sm:$0xff]  ;;  %1046 = vmatpush.msra.mxu0 %v3951_v54 }
 0x1e7   :  { %6568 = vst [vmem:[#allocation54_spill] sm:$0xff] %v4340_v44  ;;  %1085 = vmatpush.msra.mxu2 %v4354_v12  ;;  %v4360_v44 = vld [vmem:[%s6007_s1 + $0x3f8] sm:$0xff]  ;;  %1066 = vmatpush.msra.mxu1 %v3957_v37 }
 0x1e8   :  { %6569 = vst [vmem:[#allocation55_spill] sm:$0xff] %v4346_v13  ;;  %1105 = vmatpush.msra.mxu3 %v4360_v44  ;;  %1047 = vmatpush.msra.mxu0 %v3965_v63  ;;  %v4382_v37 = vld [vmem:[%s6007_s1 + $0x1b8] sm:$0xff] }
 0x1e9   :  { %6570 = vst [vmem:[#allocation19_spill] sm:$0xff] %v4354_v12  ;;  %1086 = vmatpush.msra.mxu2 %v4368_v28  ;;  %v4374_v12 = vld [vmem:[%s6007_s1 + $0x3d8] sm:$0xff]  ;;  %1067 = vmatpush.msra.mxu1 %v3971_v52 }
 0x1ea   :  { %6571 = vst [vmem:[#allocation23_spill] sm:$0xff] %v4360_v44  ;;  %1106 = vmatpush.msra.mxu3 %v4374_v12  ;;  %1048 = vmatpush.msra.mxu0 %v3979_v0  ;;  %v4396_v52 = vld [vmem:[%s6007_s1 + $0x198] sm:$0xff] }
 0x1eb   :  { %6572 = vst [vmem:[#allocation56_spill] sm:$0xff] %v4368_v28  ;;  %1087 = vmatpush.msra.mxu2 %v4382_v37  ;;  %v4388_v28 = vld [vmem:[%s6007_s1 + $0x3b8] sm:$0xff]  ;;  %1068 = vmatpush.msra.mxu1 %v3985_v1 }
 0x1ec   :  { %6573 = vst [vmem:[#allocation57_spill] sm:$0xff] %v4374_v12  ;;  %1107 = vmatpush.msra.mxu3 %v4388_v28  ;;  %1049 = vmatpush.msra.mxu0 %v3993_v2  ;;  %v4410_v1 = vld [vmem:[%s6007_s1 + $0x178] sm:$0xff] }
 0x1ed   :  { %6574 = vst [vmem:[#allocation22_spill] sm:$0xff] %v4382_v37  ;;  %1088 = vmatpush.msra.mxu2 %v4396_v52  ;;  %v4402_v37 = vld [vmem:[%s6007_s1 + $0x398] sm:$0xff]  ;;  %1069 = vmatpush.msra.mxu1 %v3999_v3 }
 0x1ee   :  { %6575 = vst [vmem:[#allocation27_spill] sm:$0xff] %v4388_v28  ;;  %1108 = vmatpush.msra.mxu3 %v4402_v37  ;;  %1050 = vmatpush.msra.mxu0 %v4007_v4  ;;  %v4424_v3 = vld [vmem:[%s6007_s1 + $0x158] sm:$0xff]  ;;  %v706_v4 = vld.sshfl [vmem:[#allocation1 + $0x8] sm:$0xff pattern:$0x75316420] }
 0x1ef   :  { %6576 = vst [vmem:[#allocation58_spill] sm:$0xff] %v4396_v52  ;;  %1089 = vmatpush.msra.mxu2 %v4410_v1  ;;  %v4416_v52 = vld [vmem:[%s6007_s1 + $0x378] sm:$0xff]  ;;  %1070 = vmatpush.msra.mxu1 %v4013_v5  ;;  %v4437_v5 = vld [vmem:[%s6007_s1 + $0x330] sm:$0xff] }
 0x1f0   :  { %6577 = vst [vmem:[#allocation59_spill] sm:$0xff] %v4402_v37  ;;  %1109 = vmatpush.msra.mxu3 %v4416_v52  ;;  %1051 = vmatpush.msra.mxu0 %v4021_v6  ;;  %v4455_v6 = vld [vmem:[%s6007_s1 + $0x110] sm:$0xff]  ;;  %v2351_v13 = vld [vmem:[%s6009_s0 + $0x38] sm:$0xff] }
 0x1f1   :  { %6578 = vst [vmem:[#allocation26_spill] sm:$0xff] %v4410_v1  ;;  %1090 = vmatpush.msra.mxu2 %v4424_v3  ;;  %v4430_v1 = vld [vmem:[%s6007_s1 + $0x358] sm:$0xff]  ;;  %1071 = vmatpush.msra.mxu1 %v4437_v5 }
 0x1f2   :  { %6579 = vst [vmem:[#allocation31_spill] sm:$0xff] %v4416_v52  ;;  %1110 = vmatpush.msra.mxu3 %v4430_v1  ;;  %1052 = vmatpush.msra.mxu0 %v4455_v6  ;;  %v2350_v52 = vld [vmem:[%s6009_s0 + $0x30] sm:$0xff] }
 0x1f3   :  { %6580 = vst [vmem:[#allocation60_spill] sm:$0xff] %v4424_v3  ;;  %v4443_v3 = vld [vmem:[%s6007_s1 + $0x138] sm:$0xff] }
 0x1f4   :  { %6581 = vst [vmem:[#allocation61_spill] sm:$0xff] %v4430_v1  ;;  %1091 = vmatpush.msra.mxu2 %v4443_v3  ;;  %v4449_v1 = vld [vmem:[%s6007_s1 + $0x338] sm:$0xff] }
 0x1f5   :  { %6582 = vst [vmem:[#allocation30_spill] sm:$0xff] %v4437_v5  ;;  %1111 = vmatpush.msra.mxu3 %v4449_v1  ;;  %v4461_v5 = vld [vmem:[%s6007_s1 + $0x310] sm:$0xff] }
 0x1f6   :  { %6583 = vst [vmem:[#allocation35_spill] sm:$0xff] %v4443_v3  ;;  %1072 = vmatpush.msra.mxu1 %v4461_v5  ;;  %v4467_v3 = vld [vmem:[%s6007_s1 + $0x118] sm:$0xff] }
 0x1f7   :  { %6584 = vst [vmem:[#allocation62_spill] sm:$0xff] %v4449_v1  ;;  %1092 = vmatpush.msra.mxu2 %v4467_v3  ;;  %v4473_v1 = vld [vmem:[%s6007_s1 + $0x318] sm:$0xff] }
 0x1f8   :  { %6585 = vst [vmem:[#allocation63_spill] sm:$0xff] %v4455_v6  ;;  %1112 = vmatpush.msra.mxu3 %v4473_v1  ;;  %v4479_v6 = vld [vmem:[%s6007_s1 + $0xf0] sm:$0xff] }
 0x1f9   :  { %6586 = vst [vmem:[#allocation34_spill] sm:$0xff] %v4461_v5  ;;  %1053 = vmatpush.msra.mxu0 %v4479_v6  ;;  %v4485_v5 = vld [vmem:[%s6007_s1 + $0x2f0] sm:$0xff] }
 0x1fa   :  { %6587 = vst [vmem:[#allocation39_spill] sm:$0xff] %v4467_v3  ;;  %1073 = vmatpush.msra.mxu1 %v4485_v5  ;;  %v4491_v3 = vld [vmem:[%s6007_s1 + $0xf8] sm:$0xff] }
 0x1fb   :  { %6588 = vst [vmem:[#allocation64_spill] sm:$0xff] %v4473_v1  ;;  %1093 = vmatpush.msra.mxu2 %v4491_v3  ;;  %v4497_v1 = vld [vmem:[%s6007_s1 + $0x2f8] sm:$0xff] }
 0x1fc   :  { %6589 = vst [vmem:[#allocation65_spill] sm:$0xff] %v4479_v6  ;;  %1113 = vmatpush.msra.mxu3 %v4497_v1  ;;  %v4503_v6 = vld [vmem:[%s6007_s1 + $0xd0] sm:$0xff] }
 0x1fd   :  { %6590 = vst [vmem:[#allocation38_spill] sm:$0xff] %v4485_v5  ;;  %1054 = vmatpush.msra.mxu0 %v4503_v6  ;;  %v4509_v5 = vld [vmem:[%s6007_s1 + $0x2d0] sm:$0xff] }
 0x1fe   :  { %6591 = vst [vmem:[#allocation43_spill] sm:$0xff] %v4491_v3  ;;  %1074 = vmatpush.msra.mxu1 %v4509_v5  ;;  %v4515_v3 = vld [vmem:[%s6007_s1 + $0xd8] sm:$0xff] }
 0x1ff   :  { %6592 = vst [vmem:[#allocation66_spill] sm:$0xff] %v4497_v1  ;;  %1094 = vmatpush.msra.mxu2 %v4515_v3  ;;  %v4521_v1 = vld [vmem:[%s6007_s1 + $0x2d8] sm:$0xff] }
 0x200   :  { %6593 = vst [vmem:[#allocation67_spill] sm:$0xff] %v4503_v6  ;;  %1114 = vmatpush.msra.mxu3 %v4521_v1  ;;  %v4527_v6 = vld [vmem:[%s6007_s1 + $0xb0] sm:$0xff] }
 0x201   :  { %6594 = vst [vmem:[#allocation42_spill] sm:$0xff] %v4509_v5  ;;  %1055 = vmatpush.msra.mxu0 %v4527_v6  ;;  %v4533_v5 = vld [vmem:[%s6007_s1 + $0x2b0] sm:$0xff] }
 0x202   :  { %6595 = vst [vmem:[#allocation45_spill] sm:$0xff] %v4515_v3  ;;  %1075 = vmatpush.msra.mxu1 %v4533_v5  ;;  %v4539_v3 = vld [vmem:[%s6007_s1 + $0xb8] sm:$0xff] }
 0x203   :  { %6596 = vst [vmem:[#allocation68_spill] sm:$0xff] %v4521_v1  ;;  %1095 = vmatpush.msra.mxu2 %v4539_v3  ;;  %v4545_v1 = vld [vmem:[%s6007_s1 + $0x2b8] sm:$0xff] }
 0x204   :  { %6597 = vst [vmem:[#allocation69_spill] sm:$0xff] %v4527_v6  ;;  %1115 = vmatpush.msra.mxu3 %v4545_v1  ;;  %v4551_v6 = vld [vmem:[%s6007_s1 + $0x90] sm:$0xff] }
 0x205   :  { %6598 = vst [vmem:[#allocation70_spill] sm:$0xff] %v4533_v5  ;;  %1056 = vmatpush.msra.mxu0 %v4551_v6  ;;  %v4557_v5 = vld [vmem:[%s6007_s1 + $0x290] sm:$0xff] }
 0x206   :  { %6599 = vst [vmem:[#allocation71_spill] sm:$0xff] %v4539_v3  ;;  %1076 = vmatpush.msra.mxu1 %v4557_v5  ;;  %v4563_v3 = vld [vmem:[%s6007_s1 + $0x98] sm:$0xff] }
 0x207   :  { %6600 = vst [vmem:[#allocation72_spill] sm:$0xff] %v4545_v1  ;;  %1096 = vmatpush.msra.mxu2 %v4563_v3  ;;  %v4569_v1 = vld [vmem:[%s6007_s1 + $0x298] sm:$0xff] }
 0x208   :  { %6601 = vst [vmem:[#allocation73_spill] sm:$0xff] %v4551_v6  ;;  %1116 = vmatpush.msra.mxu3 %v4569_v1  ;;  %v4575_v6 = vld [vmem:[%s6007_s1 + $0x70] sm:$0xff] }
 0x209   :  { %6602 = vst [vmem:[#allocation74_spill] sm:$0xff] %v4557_v5  ;;  %1057 = vmatpush.msra.mxu0 %v4575_v6  ;;  %v4581_v5 = vld [vmem:[%s6007_s1 + $0x270] sm:$0xff] }
 0x20a   :  { %6603 = vst [vmem:[#allocation75_spill] sm:$0xff] %v4563_v3  ;;  %1077 = vmatpush.msra.mxu1 %v4581_v5  ;;  %v4587_v3 = vld [vmem:[%s6007_s1 + $0x78] sm:$0xff] }
 0x20b   :  { %6604 = vst [vmem:[#allocation76_spill] sm:$0xff] %v4569_v1  ;;  %1097 = vmatpush.msra.mxu2 %v4587_v3  ;;  %v4593_v1 = vld [vmem:[%s6007_s1 + $0x278] sm:$0xff] }
 0x20c   :  { %6605 = vst [vmem:[#allocation77_spill] sm:$0xff] %v4575_v6  ;;  %1117 = vmatpush.msra.mxu3 %v4593_v1  ;;  %v4599_v6 = vld [vmem:[%s6007_s1 + $0x50] sm:$0xff] }
 0x20d   :  { %6606 = vst [vmem:[#allocation78_spill] sm:$0xff] %v4581_v5  ;;  %1058 = vmatpush.msra.mxu0 %v4599_v6  ;;  %v4605_v5 = vld [vmem:[%s6007_s1 + $0x250] sm:$0xff] }
 0x20e   :  { %6607 = vst [vmem:[#allocation79_spill] sm:$0xff] %v4587_v3  ;;  %1078 = vmatpush.msra.mxu1 %v4605_v5  ;;  %v4611_v3 = vld [vmem:[%s6007_s1 + $0x58] sm:$0xff] }
 0x20f   :  { %6608 = vst [vmem:[#allocation80_spill] sm:$0xff] %v4593_v1  ;;  %1098 = vmatpush.msra.mxu2 %v4611_v3  ;;  %v4617_v1 = vld [vmem:[%s6007_s1 + $0x258] sm:$0xff] }
 0x210   :  { %6609 = vst [vmem:[#allocation81_spill] sm:$0xff] %v4599_v6  ;;  %1118 = vmatpush.msra.mxu3 %v4617_v1  ;;  %v4623_v6 = vld [vmem:[%s6007_s1 + $0x30] sm:$0xff] }
 0x211   :  { %6610 = vst [vmem:[#allocation82_spill] sm:$0xff] %v4605_v5  ;;  %1059 = vmatpush.msra.mxu0 %v4623_v6  ;;  %v4629_v5 = vld [vmem:[%s6007_s1 + $0x230] sm:$0xff] }
 0x212   :  { %6611 = vst [vmem:[#allocation83_spill] sm:$0xff] %v4611_v3  ;;  %1079 = vmatpush.msra.mxu1 %v4629_v5  ;;  %v4635_v3 = vld [vmem:[%s6007_s1 + $0x38] sm:$0xff] }
 0x213   :  { %6612 = vst [vmem:[#allocation84_spill] sm:$0xff] %v4617_v1  ;;  %1099 = vmatpush.msra.mxu2 %v4635_v3  ;;  %v4641_v1 = vld [vmem:[%s6007_s1 + $0x238] sm:$0xff] }
 0x214   :  { %6613 = vst [vmem:[#allocation85_spill] sm:$0xff] %v4623_v6  ;;  %1119 = vmatpush.msra.mxu3 %v4641_v1  ;;  %v4647_v6 = vld [vmem:[%s6007_s1 + $0x10] sm:$0xff] }
 0x215   :  { %6614 = vst [vmem:[#allocation86_spill] sm:$0xff] %v4629_v5  ;;  %1060 = vmatpush.msra.mxu0 %v4647_v6  ;;  %v4653_v5 = vld [vmem:[%s6007_s1 + $0x210] sm:$0xff] }
 0x216   :  { %6615 = vst [vmem:[#allocation87_spill] sm:$0xff] %v4635_v3  ;;  %1080 = vmatpush.msra.mxu1 %v4653_v5  ;;  %v4659_v3 = vld [vmem:[%s6007_s1 + $0x18] sm:$0xff] }
 0x217   :  { %6616 = vst [vmem:[#allocation88_spill] sm:$0xff] %v4641_v1  ;;  %1100 = vmatpush.msra.mxu2 %v4659_v3  ;;  %v4665_v1 = vld [vmem:[%s6007_s1 + $0x218] sm:$0xff] }
 0x218   :  { %6617 = vst [vmem:[#allocation89_spill] sm:$0xff] %v4647_v6  ;;  %1120 = vmatpush.msra.mxu3 %v4665_v1  ;;  %v2346_v6 = vld [vmem:[%s6009_s0 + $0x28] sm:$0xff] }
 0x219   :  { %6618 = vst [vmem:[#allocation90_spill] sm:$0xff] %v4653_v5  ;;  %v705_v5 = vld.sshfl [vmem:[#allocation1] sm:$0xff pattern:$0x75316420] }
 0x21a   :  { %6619 = vst [vmem:[#allocation91_spill] sm:$0xff] %v4659_v3 }
 0x21b   :  { %6620 = vst [vmem:[#allocation92_spill] sm:$0xff] %v4665_v1 }
 0x21c   :  { %704 = vst [vmem:[#allocation1 + $0x10] ss:$2 sm:$0xff] %v2346_v6 }
 0x21d   :  { %954 = vst [vmem:[#allocation1] ss:$2 sm:$0xff] %v2350_v52 }
 0x223   :  { %v707_v44 = vld.sshfl [vmem:[#allocation1 + $0x10] sm:$0xff pattern:$0x75316420]  ;;  %v708_v6 = vld.sshfl [vmem:[#allocation1 + $0x18] sm:$0xff pattern:$0x75316420] }
 0x224   :  { %956 = vst [vmem:[#allocation1 + $0x10] ss:$2 sm:$0xff] %v2351_v13 }
 0x23b   :  { %v730_v3 = vpop.f32.mrf.mxu0  ;;  %v750_v37 = vpop.f32.mrf.mxu1 }
 0x23c   :  { %v731_v2 = vadd.f32 %v730_v3, %v705_v5 }
 0x23e   :  { %v751_v0 = vadd.f32 %v750_v37, %v731_v2 }
 0x240   :  { %v2347_v28 = vmul.f32 -1.442695, %v751_v0 }
 0x242   :  { %2409 = vpow2.f32 %v2347_v28  ;;  %v770_v63 = vpop.f32.mrf.mxu2  ;;  %v790_v12 = vpop.f32.mrf.mxu3 }
 0x243   :  { %v771_v1 = vadd.f32 %v770_v63, %v706_v4  ;;  %v810_v4 = vpop.f32.mrf.mxu0  ;;  %v830_v9 = vpop.f32.mrf.mxu1 }
 0x245   :  { %v791_v54 = vadd.f32 %v790_v12, %v771_v1  ;;  %v811_v12 = vadd.f32 %v810_v4, %v707_v44 }
 0x247   :  { %v2348_v53 = vmul.f32 -1.442695, %v791_v54  ;;  %v831_v13 = vadd.f32 %v830_v9, %v811_v12 }
 0x248   :  { %v2410_v55 = vpop.eup %2409 }
 0x249   :  { %v876_v52 = vadd.f32 1.0, %v2410_v55  ;;  %2411 = vpow2.f32 %v2348_v53 }
 0x24a   :  { %v850_v3 = vpop.f32.mrf.mxu2  ;;  %v870_v0 = vpop.f32.mrf.mxu3 }
 0x24b   :  { %2413 = vrcp.f32 %v876_v52  ;;  %v851_v37 = vadd.f32 %v850_v3, %v708_v6  ;;  %v888_v6 = vand.u32 2147483648, %v876_v52  ;;  %vm882_vm10 = vweird.f32 %v876_v52 }
 0x24d   :  { %v871_v28 = vadd.f32 %v870_v0, %v851_v37  ;;  %v886_v0 = vand.u32 2147483647, %v876_v52 }
 0x24f   :  { %v2412_v2 = vpop.eup %2411  ;;  %v2349_v1 = vmul.f32 -1.442695, %v871_v28  ;;  %vm887_vm14 = vcmp.eq.f32.partialorder %v886_v0, 8.507059e+37 }
 0x250   :  { %v895_v63 = vadd.f32 1.0, %v2412_v2 }
 0x251   :  { %v2414_v5 = vpop.eup %2413 }
 0x252   :  { %v878_v54 = vmul.f32 %v2414_v5, %v876_v52  ;;  %2415 = vrcp.f32 %v895_v63  ;;  %vm883_vm9 = vweird.f32 %v2414_v5  ;;  %v907_v28 = vand.u32 2147483648, %v895_v63 }
 0x253   :  { %2417 = vpow2.f32 %v2349_v1  ;;  %vm884_vm11 = vmor %vm882_vm10, %vm883_vm9  ;;  %v905_v4 = vand.u32 2147483647, %v895_v63  ;;  %vm901_vm13 = vweird.f32 %v895_v63 }
 0x254   :  { %v879_v10 = vsub.f32 1.0, %v878_v54  ;;  %2419 = vtanh.f32 %v831_v13 }
 0x255   :  { %vm906_vm0 = vcmp.eq.f32.partialorder %v905_v4, 8.507059e+37 }
 0x256   :  { %v880_v22 = vmul.f32 %v2414_v5, %v879_v10  ;;  %v889_v10 = vor.u32 1.1754944e-38, %v888_v6 }
 0x258   :  { %v2416_v55 = vpop.eup %2415  ;;  %v881_v47 = vadd.f32 %v2414_v5, %v880_v22  ;;  %v908_v22 = vor.u32 1.1754944e-38, %v907_v28 }
 0x259   :  { %v2418_v53 = vpop.eup %2417  ;;  %v897_v43 = vmul.f32 %v2416_v55, %v895_v63  ;;  %vm902_vm12 = vweird.f32 %v2416_v55 }
 0x25a   :  { %v915_v3 = vadd.f32 1.0, %v2418_v53  ;;  %v885_v2 = vsel %vm884_vm11, %v2414_v5, %v881_v47  ;;  %vm903_vm15 = vmor %vm901_vm13, %vm902_vm12  ;;  %v2420_v54 = vpop.eup %2419 }
 0x25b   :  { %v898_v37 = vsub.f32 1.0, %v897_v43  ;;  %v890_v1 = vsel %vm887_vm14, %v889_v10, %v885_v2 }
 0x25c   :  { %2421 = vrcp.f32 %v915_v3  ;;  %v932_v53 = vmul.f32 %v2420_v54, %v890_v1  ;;  %v927_v5 = vand.u32 2147483648, %v915_v3  ;;  %v925_v6 = vand.u32 2147483647, %v915_v3  ;;  %v6644_v1 = vld [vmem:[#allocation20_spill] sm:$0xff]  ;;  %v6645_v54 = vld [vmem:[#allocation54_spill] sm:$0xff] }
 0x25d   :  { %v899_v44 = vmul.f32 %v2416_v55, %v898_v37  ;;  %vm921_vm2 = vweird.f32 %v915_v3 }
 0x25e   :  { %vm926_vm4 = vcmp.eq.f32.partialorder %v925_v6, 8.507059e+37  ;;  %v6654_v6 = vld [vmem:[#allocation57_spill] sm:$0xff] }
 0x25f   :  { %v900_v9 = vadd.f32 %v2416_v55, %v899_v44 }
 0x261   :  { %v904_v12 = vsel %vm903_vm15, %v2416_v55, %v900_v9  ;;  %v928_v55 = vor.u32 1.1754944e-38, %v927_v5  ;;  %v6642_v9 = vld [vmem:[#allocation53_spill] sm:$0xff]  ;;  %v6653_v5 = vld [vmem:[#allocation56_spill] sm:$0xff] }
 0x262   :  { %v2422_v43 = vpop.eup %2421  ;;  %v909_v52 = vsel %vm906_vm0, %v908_v22, %v904_v12  ;;  %v6643_v22 = vld [vmem:[#allocation17_spill] sm:$0xff]  ;;  %v6646_v12 = vld [vmem:[#allocation55_spill] sm:$0xff] }
 0x263   :  { %v931_v13 = vmul.f32 %v909_v52, %v4070_v49  ;;  %v917_v20 = vmul.f32 %v2422_v43, %v915_v3  ;;  %vm922_vm1 = vweird.f32 %v2422_v43  ;;  %v6641_v3 = vld [vmem:[#allocation52_spill] sm:$0xff]  ;;  %v6648_v52 = vld [vmem:[#allocation29_spill] sm:$0xff] }
 0x264   :  { %vm923_vm3 = vmor %vm921_vm2, %vm922_vm1 }
 0x265   :  { %v4678_v37 = vadd.f32 %v932_v53, %v931_v13  ;;  %v918_v47 = vsub.f32 1.0, %v917_v20  ;;  %v6649_v13 = vld [vmem:[#allocation19_spill] sm:$0xff] }
 0x266   :  { %v6650_v53 = vld [vmem:[#allocation23_spill] sm:$0xff] }
 0x267   :  { %2423 = vtanh.f32 %v4678_v37  ;;  %v919_v63 = vmul.f32 %v2422_v43, %v918_v47  ;;  %v6651_v47 = vld [vmem:[#allocation33_spill] sm:$0xff] }
 0x269   :  { %v920_v0 = vadd.f32 %v2422_v43, %v919_v63  ;;  %v6652_v63 = vld [vmem:[#allocation36_spill] sm:$0xff] }
 0x26b   :  { %v924_v28 = vsel %vm923_vm3, %v2422_v43, %v920_v0  ;;  %v6647_v43 = vld [vmem:[#allocation25_spill] sm:$0xff] }
 0x26c   :  { %v929_v2 = vsel %vm926_vm4, %v928_v55, %v924_v28  ;;  %v6655_v0 = vld [vmem:[#allocation37_spill] sm:$0xff]  ;;  %v6657_v28 = vld [vmem:[#allocation22_spill] sm:$0xff] }
 0x26d   :  { %v2424_v44 = vpop.eup %2423  ;;  %v6656_v55 = vld [vmem:[#allocation41_spill] sm:$0xff] }
 0x26e   :  { %v935_v49 = vmul.f32 %v2424_v44, %v929_v2  ;;  %v6658_v44 = vld [vmem:[#allocation27_spill] sm:$0xff]  ;;  %v6659_v2 = vld [vmem:[#allocation46_spill] sm:$0xff] }
 0x270   :  { %939 = vst [vmem:[#allocation2 + $0x50] sm:$0x3] %v935_v49  ;;  %v941_v4 = vrot.slane %v935_v49, 2  ;;  %v947_v10 = vmul.f32 %v935_v49, %v6476_v50  ;;  %v948_v20 = vmul.f32 %v935_v49, %v6477_v19  ;;  %v6660_v49 = vld [vmem:[#allocation47_spill] sm:$0xff] }
 0x272   :  { %946 = vst [vmem:[#allocation2 + $0x38] sm:$0x3] %v941_v4  ;;  %981 = vmatmul.f32.vlgmr.msrb.gmra.mxu0 %v947_v10  ;;  %1001 = vmatmul.f32.vlgmr.msrb.gmra.mxu1 %v948_v20  ;;  %v6661_v4 = vld [vmem:[#allocation58_spill] sm:$0xff] }
 0x273   :  { %1021 = vmatmul.f32.vlgmr.msrb.gmra.mxu2 %v947_v10  ;;  %1041 = vmatmul.f32.vlgmr.msrb.gmra.mxu3 %v948_v20 }
 0x274   :  { %1217 = vmatpush.msrb.mxu0 %v3763_v40  ;;  %1237 = vmatpush.msrb.mxu1 %v3769_v18  ;;  %v6621_v40 = vld [vmem:[#allocation32_spill] sm:$0xff] }
 0x275   :  { %1257 = vmatpush.msrb.mxu2 %v4080_v48  ;;  %1277 = vmatpush.msrb.mxu3 %v4086_v15  ;;  %v6622_v18 = vld [vmem:[#allocation40_spill] sm:$0xff] }
 0x276   :  { %1218 = vmatpush.msrb.mxu0 %v3777_v16  ;;  %1238 = vmatpush.msrb.mxu1 %v3783_v17  ;;  %v6623_v16 = vld [vmem:[#allocation21_spill] sm:$0xff]  ;;  %v6624_v17 = vld [vmem:[#allocation24_spill] sm:$0xff] }
 0x277   :  { %1258 = vmatpush.msrb.mxu2 %v4094_v39  ;;  %1278 = vmatpush.msrb.mxu3 %v4100_v34 }
 0x278   :  { %1219 = vmatpush.msrb.mxu0 %v3791_v57  ;;  %1239 = vmatpush.msrb.mxu1 %v3797_v58  ;;  %v6625_v57 = vld [vmem:[#allocation44_spill] sm:$0xff]  ;;  %v6626_v58 = vld [vmem:[#allocation3_spill] sm:$0xff] }
 0x279   :  { %1259 = vmatpush.msrb.mxu2 %v4108_v29  ;;  %1279 = vmatpush.msrb.mxu3 %v4114_v7 }
 0x27a   :  { %1061 = vmatmul.f32.vlgmr.msra.gmra.mxu0 %v947_v10  ;;  %1081 = vmatmul.f32.vlgmr.msra.gmra.mxu1 %v948_v20 }
 0x27b   :  { %1101 = vmatmul.f32.vlgmr.msra.gmra.mxu2 %v947_v10  ;;  %1121 = vmatmul.f32.vlgmr.msra.gmra.mxu3 %v948_v20  ;;  %v6662_v10 = vld [vmem:[#allocation59_spill] sm:$0xff]  ;;  %v6663_v20 = vld [vmem:[#allocation48_spill] sm:$0xff] }
 0x27c   :  { %1220 = vmatpush.msrb.mxu0 %v3805_v61  ;;  %1240 = vmatpush.msrb.mxu1 %v3811_v62  ;;  %v6627_v61 = vld [vmem:[#allocation4_spill] sm:$0xff]  ;;  %v6628_v62 = vld [vmem:[#allocation5_spill] sm:$0xff] }
 0x27d   :  { %1260 = vmatpush.msrb.mxu2 %v4122_v26  ;;  %1280 = vmatpush.msrb.mxu3 %v4128_v33 }
 0x27e   :  { %1221 = vmatpush.msrb.mxu0 %v3819_v11  ;;  %1241 = vmatpush.msrb.mxu1 %v3825_v14  ;;  %v6629_v11 = vld [vmem:[#allocation6_spill] sm:$0xff]  ;;  %v6630_v14 = vld [vmem:[#allocation7_spill] sm:$0xff] }
 0x27f   :  { %1261 = vmatpush.msrb.mxu2 %v4136_v30  ;;  %1281 = vmatpush.msrb.mxu3 %v4142_v56 }
 0x280   :  { %1222 = vmatpush.msrb.mxu0 %v3833_v36  ;;  %1242 = vmatpush.msrb.mxu1 %v3839_v25  ;;  %v6631_v36 = vld [vmem:[#allocation8_spill] sm:$0xff]  ;;  %v6632_v25 = vld [vmem:[#allocation11_spill] sm:$0xff] }
 0x281   :  { %1262 = vmatpush.msrb.mxu2 %v4150_v23  ;;  %1282 = vmatpush.msrb.mxu3 %v4156_v46 }
 0x282   :  { %1223 = vmatpush.msrb.mxu0 %v3847_v31  ;;  %1243 = vmatpush.msrb.mxu1 %v3853_v32  ;;  %v6633_v31 = vld [vmem:[#allocation12_spill] sm:$0xff]  ;;  %v6634_v32 = vld [vmem:[#allocation15_spill] sm:$0xff] }
 0x283   :  { %1263 = vmatpush.msrb.mxu2 %v4164_v41  ;;  %1283 = vmatpush.msrb.mxu3 %v4170_v60 }
 0x284   :  { %1224 = vmatpush.msrb.mxu0 %v3861_v42  ;;  %1244 = vmatpush.msrb.mxu1 %v3867_v51  ;;  %v6635_v42 = vld [vmem:[#allocation16_spill] sm:$0xff]  ;;  %v6636_v51 = vld [vmem:[#allocation14_spill] sm:$0xff] }
 0x285   :  { %1264 = vmatpush.msrb.mxu2 %v4178_v45  ;;  %1284 = vmatpush.msrb.mxu3 %v4184_v8 }
 0x286   :  { %1225 = vmatpush.msrb.mxu0 %v3875_v59  ;;  %1245 = vmatpush.msrb.mxu1 %v3881_v24  ;;  %v6637_v59 = vld [vmem:[#allocation50_spill] sm:$0xff]  ;;  %v6638_v24 = vld [vmem:[#allocation51_spill] sm:$0xff] }
 0x287   :  { %1265 = vmatpush.msrb.mxu2 %v4192_v38  ;;  %1285 = vmatpush.msrb.mxu3 %v4198_v21 }
 0x288   :  { %1226 = vmatpush.msrb.mxu0 %v3889_v27  ;;  %1246 = vmatpush.msrb.mxu1 %v3895_v35  ;;  %v6639_v27 = vld [vmem:[#allocation13_spill] sm:$0xff]  ;;  %v6640_v35 = vld [vmem:[#allocation18_spill] sm:$0xff] }
 0x289   :  { %1266 = vmatpush.msrb.mxu2 %v6621_v40  ;;  %1286 = vmatpush.msrb.mxu3 %v6622_v18 }
 0x28a   :  { %1227 = vmatpush.msrb.mxu0 %v6623_v16  ;;  %1247 = vmatpush.msrb.mxu1 %v6624_v17  ;;  %v6664_v16 = vld [vmem:[#allocation49_spill] sm:$0xff]  ;;  %v6665_v17 = vld [vmem:[#allocation26_spill] sm:$0xff] }
 0x28b   :  { %1267 = vmatpush.msrb.mxu2 %v6625_v57  ;;  %1287 = vmatpush.msrb.mxu3 %v6626_v58 }
 0x28c   :  { %1228 = vmatpush.msrb.mxu0 %v6627_v61  ;;  %1248 = vmatpush.msrb.mxu1 %v6628_v62 }
 0x28d   :  { %1268 = vmatpush.msrb.mxu2 %v6629_v11  ;;  %1288 = vmatpush.msrb.mxu3 %v6630_v14 }
 0x28e   :  { %1229 = vmatpush.msrb.mxu0 %v6631_v36  ;;  %1249 = vmatpush.msrb.mxu1 %v6632_v25 }
 0x28f   :  { %1269 = vmatpush.msrb.mxu2 %v6633_v31  ;;  %1289 = vmatpush.msrb.mxu3 %v6634_v32 }
 0x290   :  { %1230 = vmatpush.msrb.mxu0 %v6635_v42  ;;  %1250 = vmatpush.msrb.mxu1 %v6636_v51 }
 0x291   :  { %1270 = vmatpush.msrb.mxu2 %v6637_v59  ;;  %1290 = vmatpush.msrb.mxu3 %v6638_v24 }
 0x292   :  { %1231 = vmatpush.msrb.mxu0 %v6639_v27  ;;  %1251 = vmatpush.msrb.mxu1 %v6640_v35 }
 0x293   :  { %1271 = vmatpush.msrb.mxu2 %v6641_v3  ;;  %1291 = vmatpush.msrb.mxu3 %v6642_v9 }
 0x294   :  { %1232 = vmatpush.msrb.mxu0 %v6643_v22  ;;  %1252 = vmatpush.msrb.mxu1 %v6644_v1 }
 0x295   :  { %1272 = vmatpush.msrb.mxu2 %v6645_v54  ;;  %1292 = vmatpush.msrb.mxu3 %v6646_v12 }
 0x296   :  { %1297 = vmatpush.msra.mxu0 %v6647_v43  ;;  %1317 = vmatpush.msra.mxu1 %v6648_v52  ;;  %v6666_v43 = vld [vmem:[#allocation31_spill] sm:$0xff]  ;;  %v6667_v52 = vld [vmem:[#allocation9_spill] sm:$0xff] }
 0x297   :  { %1337 = vmatpush.msra.mxu2 %v6649_v13  ;;  %1357 = vmatpush.msra.mxu3 %v6650_v53 }
 0x298   :  { %1298 = vmatpush.msra.mxu0 %v6651_v47  ;;  %1318 = vmatpush.msra.mxu1 %v6652_v63  ;;  %v6668_v47 = vld [vmem:[#allocation10_spill] sm:$0xff]  ;;  %v6669_v63 = vld [vmem:[#allocation60_spill] sm:$0xff] }
 0x299   :  { %1338 = vmatpush.msra.mxu2 %v6653_v5  ;;  %1358 = vmatpush.msra.mxu3 %v6654_v6  ;;  %v2356_v6 = vld [vmem:[%s6009_s0 + $0x48] sm:$0xff] }
 0x29a   :  { %1299 = vmatpush.msra.mxu0 %v6655_v0  ;;  %1319 = vmatpush.msra.mxu1 %v6656_v55  ;;  %v6670_v0 = vld [vmem:[#allocation61_spill] sm:$0xff]  ;;  %v6671_v55 = vld [vmem:[#allocation28_spill] sm:$0xff] }
 0x29b   :  { %1339 = vmatpush.msra.mxu2 %v6657_v28  ;;  %1359 = vmatpush.msra.mxu3 %v6658_v44 }
 0x29c   :  { %1300 = vmatpush.msra.mxu0 %v6659_v2  ;;  %1320 = vmatpush.msra.mxu1 %v6660_v49  ;;  %v6672_v2 = vld [vmem:[#allocation30_spill] sm:$0xff]  ;;  %v6673_v49 = vld [vmem:[#allocation35_spill] sm:$0xff] }
 0x29d   :  { %1340 = vmatpush.msra.mxu2 %v6661_v4  ;;  %1360 = vmatpush.msra.mxu3 %v6662_v10 }
 0x29e   :  { %1301 = vmatpush.msra.mxu0 %v6663_v20  ;;  %1321 = vmatpush.msra.mxu1 %v6664_v16  ;;  %v6674_v20 = vld [vmem:[#allocation62_spill] sm:$0xff]  ;;  %v6675_v16 = vld [vmem:[#allocation63_spill] sm:$0xff] }
 0x29f   :  { %1341 = vmatpush.msra.mxu2 %v6665_v17  ;;  %1361 = vmatpush.msra.mxu3 %v6666_v43  ;;  %v6676_v17 = vld [vmem:[#allocation34_spill] sm:$0xff]  ;;  %v6677_v43 = vld [vmem:[#allocation39_spill] sm:$0xff] }
 0x2a0   :  { %1302 = vmatpush.msra.mxu0 %v6667_v52  ;;  %1322 = vmatpush.msra.mxu1 %v6668_v47  ;;  %v6678_v52 = vld [vmem:[#allocation64_spill] sm:$0xff]  ;;  %v6679_v47 = vld [vmem:[#allocation65_spill] sm:$0xff] }
 0x2a1   :  { %1342 = vmatpush.msra.mxu2 %v6669_v63  ;;  %1362 = vmatpush.msra.mxu3 %v6670_v0  ;;  %v6680_v63 = vld [vmem:[#allocation38_spill] sm:$0xff]  ;;  %v6681_v0 = vld [vmem:[#allocation43_spill] sm:$0xff] }
 0x2a2   :  { %1303 = vmatpush.msra.mxu0 %v6671_v55  ;;  %1323 = vmatpush.msra.mxu1 %v6672_v2  ;;  %v6682_v55 = vld [vmem:[#allocation66_spill] sm:$0xff]  ;;  %v6683_v2 = vld [vmem:[#allocation67_spill] sm:$0xff] }
 0x2a3   :  { %1343 = vmatpush.msra.mxu2 %v6673_v49  ;;  %1363 = vmatpush.msra.mxu3 %v6674_v20  ;;  %v6684_v49 = vld [vmem:[#allocation42_spill] sm:$0xff]  ;;  %v6685_v20 = vld [vmem:[#allocation45_spill] sm:$0xff] }
 0x2a4   :  { %1304 = vmatpush.msra.mxu0 %v6675_v16  ;;  %1324 = vmatpush.msra.mxu1 %v6676_v17  ;;  %v6686_v16 = vld [vmem:[#allocation68_spill] sm:$0xff]  ;;  %v6687_v17 = vld [vmem:[#allocation69_spill] sm:$0xff] }
 0x2a5   :  { %1344 = vmatpush.msra.mxu2 %v6677_v43  ;;  %1364 = vmatpush.msra.mxu3 %v6678_v52  ;;  %v6688_v43 = vld [vmem:[#allocation70_spill] sm:$0xff]  ;;  %v6689_v52 = vld [vmem:[#allocation71_spill] sm:$0xff] }
 0x2a6   :  { %1305 = vmatpush.msra.mxu0 %v6679_v47  ;;  %1325 = vmatpush.msra.mxu1 %v6680_v63  ;;  %v6690_v47 = vld [vmem:[#allocation72_spill] sm:$0xff]  ;;  %v6691_v63 = vld [vmem:[#allocation73_spill] sm:$0xff] }
 0x2a7   :  { %1345 = vmatpush.msra.mxu2 %v6681_v0  ;;  %1365 = vmatpush.msra.mxu3 %v6682_v55  ;;  %v6692_v0 = vld [vmem:[#allocation74_spill] sm:$0xff]  ;;  %v6693_v55 = vld [vmem:[#allocation75_spill] sm:$0xff] }
 0x2a8   :  { %1306 = vmatpush.msra.mxu0 %v6683_v2  ;;  %1326 = vmatpush.msra.mxu1 %v6684_v49  ;;  %v6694_v2 = vld [vmem:[#allocation76_spill] sm:$0xff]  ;;  %v6695_v49 = vld [vmem:[#allocation77_spill] sm:$0xff] }
 0x2a9   :  { %1346 = vmatpush.msra.mxu2 %v6685_v20  ;;  %1366 = vmatpush.msra.mxu3 %v6686_v16  ;;  %v6696_v20 = vld [vmem:[#allocation78_spill] sm:$0xff]  ;;  %v6697_v16 = vld [vmem:[#allocation79_spill] sm:$0xff] }
 0x2aa   :  { %1307 = vmatpush.msra.mxu0 %v6687_v17  ;;  %1327 = vmatpush.msra.mxu1 %v6688_v43  ;;  %v6698_v17 = vld [vmem:[#allocation80_spill] sm:$0xff]  ;;  %v6699_v43 = vld [vmem:[#allocation81_spill] sm:$0xff] }
 0x2ab   :  { %1347 = vmatpush.msra.mxu2 %v6689_v52  ;;  %1367 = vmatpush.msra.mxu3 %v6690_v47  ;;  %v6700_v52 = vld [vmem:[#allocation82_spill] sm:$0xff]  ;;  %v6701_v47 = vld [vmem:[#allocation83_spill] sm:$0xff] }
 0x2ac   :  { %1308 = vmatpush.msra.mxu0 %v6691_v63  ;;  %1328 = vmatpush.msra.mxu1 %v6692_v0  ;;  %v6702_v63 = vld [vmem:[#allocation84_spill] sm:$0xff]  ;;  %v6703_v0 = vld [vmem:[#allocation85_spill] sm:$0xff] }
 0x2ad   :  { %1348 = vmatpush.msra.mxu2 %v6693_v55  ;;  %1368 = vmatpush.msra.mxu3 %v6694_v2  ;;  %v6704_v55 = vld [vmem:[#allocation86_spill] sm:$0xff]  ;;  %v6705_v2 = vld [vmem:[#allocation87_spill] sm:$0xff] }
 0x2ae   :  { %1309 = vmatpush.msra.mxu0 %v6695_v49  ;;  %1329 = vmatpush.msra.mxu1 %v6696_v20  ;;  %v6706_v49 = vld [vmem:[#allocation88_spill] sm:$0xff]  ;;  %v6707_v20 = vld [vmem:[#allocation89_spill] sm:$0xff] }
 0x2af   :  { %1349 = vmatpush.msra.mxu2 %v6697_v16  ;;  %1369 = vmatpush.msra.mxu3 %v6698_v17  ;;  %v6708_v16 = vld [vmem:[#allocation90_spill] sm:$0xff]  ;;  %v6709_v17 = vld [vmem:[#allocation91_spill] sm:$0xff] }
 0x2b0   :  { %1310 = vmatpush.msra.mxu0 %v6699_v43  ;;  %1330 = vmatpush.msra.mxu1 %v6700_v52  ;;  %v6710_v43 = vld [vmem:[#allocation92_spill] sm:$0xff]  ;;  %v957_v52 = vld.sshfl [vmem:[#allocation1] sm:$0xff pattern:$0x75316420] }
 0x2b1   :  { %1350 = vmatpush.msra.mxu2 %v6701_v47  ;;  %1370 = vmatpush.msra.mxu3 %v6702_v63  ;;  %v958_v47 = vld.sshfl [vmem:[#allocation1 + $0x8] sm:$0xff pattern:$0x75316420] }
 0x2b2   :  { %1311 = vmatpush.msra.mxu0 %v6703_v0  ;;  %1331 = vmatpush.msra.mxu1 %v6704_v55  ;;  %v2355_v0 = vld [vmem:[%s6009_s0 + $0x40] sm:$0xff] }
 0x2b3   :  { %1351 = vmatpush.msra.mxu2 %v6705_v2  ;;  %1371 = vmatpush.msra.mxu3 %v6706_v49  ;;  %1206 = vst [vmem:[#allocation1] ss:$2 sm:$0xff] %v2355_v0 }
 0x2b4   :  { %1312 = vmatpush.msra.mxu0 %v6707_v20  ;;  %1332 = vmatpush.msra.mxu1 %v6708_v16 }
 0x2b5   :  { %1352 = vmatpush.msra.mxu2 %v6709_v17  ;;  %1372 = vmatpush.msra.mxu3 %v6710_v43  ;;  %v959_v17 = vld.sshfl [vmem:[#allocation1 + $0x10] sm:$0xff pattern:$0x75316420]  ;;  %v960_v43 = vld.sshfl [vmem:[#allocation1 + $0x18] sm:$0xff pattern:$0x75316420] }
 0x2b6   :  { %1208 = vst [vmem:[#allocation1 + $0x10] ss:$2 sm:$0xff] %v2356_v6 }
 0x2ef   :  { %v982_v55 = vpop.f32.mrf.mxu0  ;;  %v1002_v2 = vpop.f32.mrf.mxu1 }
 0x2f0   :  { %v983_v63 = vadd.f32 %v982_v55, %v957_v52 }
 0x2f2   :  { %v1003_v10 = vadd.f32 %v1002_v2, %v983_v63 }
 0x2f4   :  { %v2352_v49 = vmul.f32 -1.442695, %v1003_v10 }
 0x2f6   :  { %2425 = vpow2.f32 %v2352_v49  ;;  %v1022_v20 = vpop.f32.mrf.mxu2  ;;  %v1042_v16 = vpop.f32.mrf.mxu3 }
 0x2f7   :  { %v1023_v4 = vadd.f32 %v1022_v20, %v958_v47  ;;  %v1062_v47 = vpop.f32.mrf.mxu0  ;;  %v1082_v13 = vpop.f32.mrf.mxu1 }
 0x2f8   :  { %v1063_v55 = vadd.f32 %v1062_v47, %v959_v17 }
 0x2f9   :  { %v1043_v44 = vadd.f32 %v1042_v16, %v1023_v4 }
 0x2fa   :  { %v1083_v6 = vadd.f32 %v1082_v13, %v1063_v55 }
 0x2fb   :  { %v2353_v28 = vmul.f32 -1.442695, %v1043_v44 }
 0x2fc   :  { %v2426_v5 = vpop.eup %2425 }
 0x2fd   :  { %v1128_v0 = vadd.f32 1.0, %v2426_v5  ;;  %2427 = vpow2.f32 %v2353_v28 }
 0x2fe   :  { %v1102_v52 = vpop.f32.mrf.mxu2  ;;  %v1122_v10 = vpop.f32.mrf.mxu3 }
 0x2ff   :  { %2429 = vrcp.f32 %v1128_v0  ;;  %v1103_v63 = vadd.f32 %v1102_v52, %v960_v43  ;;  %v1140_v43 = vand.u32 2147483648, %v1128_v0  ;;  %vm1134_vm6 = vweird.f32 %v1128_v0 }
 0x301   :  { %v1123_v2 = vadd.f32 %v1122_v10, %v1103_v63  ;;  %v1138_v10 = vand.u32 2147483647, %v1128_v0 }
 0x303   :  { %v2428_v49 = vpop.eup %2427  ;;  %v2354_v4 = vmul.f32 -1.442695, %v1123_v2  ;;  %vm1139_vm10 = vcmp.eq.f32.partialorder %v1138_v10, 8.507059e+37 }
 0x304   :  { %v1147_v20 = vadd.f32 1.0, %v2428_v49 }
 0x305   :  { %v2430_v16 = vpop.eup %2429 }
 0x306   :  { %v1130_v44 = vmul.f32 %v2430_v16, %v1128_v0  ;;  %2431 = vrcp.f32 %v1147_v20  ;;  %vm1135_vm5 = vweird.f32 %v2430_v16  ;;  %v1159_v2 = vand.u32 2147483648, %v1147_v20 }
 0x307   :  { %2433 = vpow2.f32 %v2354_v4  ;;  %vm1136_vm7 = vmor %vm1134_vm6, %vm1135_vm5  ;;  %v1157_v47 = vand.u32 2147483647, %v1147_v20  ;;  %vm1153_vm9 = vweird.f32 %v1147_v20 }
 0x308   :  { %v1131_v53 = vsub.f32 1.0, %v1130_v44  ;;  %2435 = vtanh.f32 %v1083_v6 }
 0x309   :  { %vm1158_vm12 = vcmp.eq.f32.partialorder %v1157_v47, 8.507059e+37 }
 0x30a   :  { %v1132_v12 = vmul.f32 %v2430_v16, %v1131_v53  ;;  %v1141_v53 = vor.u32 1.1754944e-38, %v1140_v43 }
 0x30c   :  { %v2432_v5 = vpop.eup %2431  ;;  %v1133_v1 = vadd.f32 %v2430_v16, %v1132_v12  ;;  %v1160_v12 = vor.u32 1.1754944e-38, %v1159_v2 }
 0x30d   :  { %v2434_v28 = vpop.eup %2433  ;;  %v1149_v54 = vmul.f32 %v2432_v5, %v1147_v20  ;;  %vm1154_vm8 = vweird.f32 %v2432_v5 }
 0x30e   :  { %v1167_v52 = vadd.f32 1.0, %v2434_v28  ;;  %v1137_v49 = vsel %vm1136_vm7, %v2430_v16, %v1133_v1  ;;  %vm1155_vm11 = vmor %vm1153_vm9, %vm1154_vm8  ;;  %v2436_v44 = vpop.eup %2435 }
 0x30f   :  { %v1150_v63 = vsub.f32 1.0, %v1149_v54  ;;  %v1142_v4 = vsel %vm1139_vm10, %v1141_v53, %v1137_v49 }
 0x310   :  { %2437 = vrcp.f32 %v1167_v52  ;;  %v1184_v28 = vmul.f32 %v2436_v44, %v1142_v4  ;;  %v1179_v16 = vand.u32 2147483648, %v1167_v52  ;;  %v1177_v43 = vand.u32 2147483647, %v1167_v52  ;;  %v4846_v4 = vld [vmem:[%s6007_s1 + $0x3c0] sm:$0xff]  ;;  %v5056_v44 = vld [vmem:[%s6007_s1 + $0x170] sm:$0xff] }
 0x311   :  { %v1151_v17 = vmul.f32 %v2432_v5, %v1150_v63  ;;  %vm1173_vm14 = vweird.f32 %v1167_v52  ;;  %6734 = vst [vmem:[#allocation11_spill] sm:$0xff] %v5056_v44 }
 0x312   :  { %vm1178_vm0 = vcmp.eq.f32.partialorder %v1177_v43, 8.507059e+37  ;;  %v6743_v43 = vld [vmem:[#allocation30_spill] sm:$0xff] }
 0x313   :  { %v1152_v13 = vadd.f32 %v2432_v5, %v1151_v17 }
 0x315   :  { %v1156_v55 = vsel %vm1155_vm11, %v2432_v5, %v1152_v13  ;;  %v1180_v5 = vor.u32 1.1754944e-38, %v1179_v16  ;;  %v4832_v13 = vld [vmem:[%s6007_s1 + $0x3e0] sm:$0xff]  ;;  %v5084_v16 = vld [vmem:[%s6007_s1 + $0x130] sm:$0xff] }
 0x316   :  { %v2438_v54 = vpop.eup %2437  ;;  %v1161_v0 = vsel %vm1158_vm12, %v1160_v12, %v1156_v55  ;;  %v4840_v12 = vld [vmem:[%s6007_s1 + $0x1c0] sm:$0xff]  ;;  %v5062_v55 = vld [vmem:[%s6007_s1 + $0x370] sm:$0xff]  ;;  %6742 = vst [vmem:[#allocation14_spill] sm:$0xff] %v5084_v16 }
 0x317   :  { %v1183_v6 = vmul.f32 %v1161_v0, %v4678_v37  ;;  %v1169_v22 = vmul.f32 %v2438_v54, %v1167_v52  ;;  %vm1174_vm13 = vweird.f32 %v2438_v54  ;;  %v4826_v52 = vld [vmem:[%s6007_s1 + $0x1e0] sm:$0xff]  ;;  %6735 = vst [vmem:[#allocation12_spill] sm:$0xff] %v5062_v55  ;;  %v6737_v0 = vld [vmem:[#allocation31_spill] sm:$0xff] }
 0x318   :  { %vm1175_vm15 = vmor %vm1173_vm14, %vm1174_vm13 }
 0x319   :  { %v4818_v63 = vadd.f32 %v1184_v28, %v1183_v6  ;;  %v1170_v1 = vsub.f32 1.0, %v1169_v22  ;;  %v5070_v6 = vld [vmem:[%s6007_s1 + $0x150] sm:$0xff] }
 0x31a   :  { %6738 = vst [vmem:[#allocation15_spill] sm:$0xff] %v5070_v6  ;;  %v5076_v28 = vld [vmem:[%s6007_s1 + $0x350] sm:$0xff] }
 0x31b   :  { %2439 = vtanh.f32 %v4818_v63  ;;  %v1171_v20 = vmul.f32 %v2438_v54, %v1170_v1  ;;  %6739 = vst [vmem:[#allocation16_spill] sm:$0xff] %v5076_v28  ;;  %v6740_v1 = vld [vmem:[#allocation60_spill] sm:$0xff] }
 0x31d   :  { %v1172_v10 = vadd.f32 %v2438_v54, %v1171_v20  ;;  %v6741_v20 = vld [vmem:[#allocation61_spill] sm:$0xff] }
 0x31f   :  { %v1176_v2 = vsel %vm1175_vm15, %v2438_v54, %v1172_v10  ;;  %v6736_v54 = vld [vmem:[#allocation26_spill] sm:$0xff]  ;;  %v6744_v10 = vld [vmem:[#allocation35_spill] sm:$0xff] }
 0x320   :  { %v1181_v49 = vsel %vm1178_vm0, %v1180_v5, %v1176_v2  ;;  %v6745_v5 = vld [vmem:[#allocation62_spill] sm:$0xff]  ;;  %v6746_v2 = vld [vmem:[#allocation63_spill] sm:$0xff] }
 0x321   :  { %v2440_v17 = vpop.eup %2439 }
 0x322   :  { %v1187_v37 = vmul.f32 %v2440_v17, %v1181_v49  ;;  %v6747_v17 = vld [vmem:[#allocation34_spill] sm:$0xff]  ;;  %v6748_v49 = vld [vmem:[#allocation39_spill] sm:$0xff] }
 0x324   :  { %1191 = vst [vmem:[#allocation2 + $0x8] sm:$0x3] %v1187_v37  ;;  %v1193_v47 = vrot.slane %v1187_v37, 2  ;;  %v1199_v53 = vmul.f32 %v1187_v37, %v6476_v50  ;;  %v1200_v22 = vmul.f32 %v1187_v37, %v6477_v19  ;;  %v6749_v37 = vld [vmem:[#allocation64_spill] sm:$0xff] }
 0x326   :  { %1198 = vst [vmem:[#allocation2 + $0x20] sm:$0x3] %v1193_v47  ;;  %1233 = vmatmul.f32.vlgmr.msrb.gmra.mxu0 %v1199_v53  ;;  %1253 = vmatmul.f32.vlgmr.msrb.gmra.mxu1 %v1200_v22  ;;  %v6750_v47 = vld [vmem:[#allocation65_spill] sm:$0xff] }
 0x327   :  { %1273 = vmatmul.f32.vlgmr.msrb.gmra.mxu2 %v1199_v53  ;;  %1293 = vmatmul.f32.vlgmr.msrb.gmra.mxu3 %v1200_v22 }
 0x328   :  { %1463 = vmatpush.msrb.mxu0 %v4826_v52  ;;  %1483 = vmatpush.msrb.mxu1 %v4832_v13 }
 0x329   :  { %1503 = vmatpush.msrb.mxu2 %v4080_v48  ;;  %1523 = vmatpush.msrb.mxu3 %v4086_v15  ;;  %v4854_v48 = vld [vmem:[%s6007_s1 + $0x1a0] sm:$0xff] }
 0x32a   :  { %1464 = vmatpush.msrb.mxu0 %v4840_v12  ;;  %1484 = vmatpush.msrb.mxu1 %v4846_v4  ;;  %v4860_v15 = vld [vmem:[%s6007_s1 + $0x3a0] sm:$0xff] }
 0x32b   :  { %1504 = vmatpush.msrb.mxu2 %v4094_v39  ;;  %1524 = vmatpush.msrb.mxu3 %v4100_v34  ;;  %v4868_v39 = vld [vmem:[%s6007_s1 + $0x180] sm:$0xff] }
 0x32c   :  { %1465 = vmatpush.msrb.mxu0 %v4854_v48  ;;  %1485 = vmatpush.msrb.mxu1 %v4860_v15  ;;  %v4874_v34 = vld [vmem:[%s6007_s1 + $0x380] sm:$0xff] }
 0x32d   :  { %1505 = vmatpush.msrb.mxu2 %v4108_v29  ;;  %1525 = vmatpush.msrb.mxu3 %v4114_v7  ;;  %v4882_v29 = vld [vmem:[%s6007_s1 + $0x160] sm:$0xff] }
 0x32e   :  { %1313 = vmatmul.f32.vlgmr.msra.gmra.mxu0 %v1199_v53  ;;  %1333 = vmatmul.f32.vlgmr.msra.gmra.mxu1 %v1200_v22  ;;  %v4888_v7 = vld [vmem:[%s6007_s1 + $0x360] sm:$0xff] }
 0x32f   :  { %1353 = vmatmul.f32.vlgmr.msra.gmra.mxu2 %v1199_v53  ;;  %1373 = vmatmul.f32.vlgmr.msra.gmra.mxu3 %v1200_v22  ;;  %v6751_v53 = vld [vmem:[#allocation38_spill] sm:$0xff]  ;;  %v6752_v22 = vld [vmem:[#allocation43_spill] sm:$0xff] }
 0x330   :  { %1466 = vmatpush.msrb.mxu0 %v4868_v39  ;;  %1486 = vmatpush.msrb.mxu1 %v4874_v34 }
 0x331   :  { %1506 = vmatpush.msrb.mxu2 %v4122_v26  ;;  %1526 = vmatpush.msrb.mxu3 %v4128_v33  ;;  %v4896_v26 = vld [vmem:[%s6007_s1 + $0x140] sm:$0xff] }
 0x332   :  { %1467 = vmatpush.msrb.mxu0 %v4882_v29  ;;  %1487 = vmatpush.msrb.mxu1 %v4888_v7  ;;  %v4902_v33 = vld [vmem:[%s6007_s1 + $0x340] sm:$0xff] }
 0x333   :  { %1507 = vmatpush.msrb.mxu2 %v4136_v30  ;;  %1527 = vmatpush.msrb.mxu3 %v4142_v56  ;;  %v4910_v30 = vld [vmem:[%s6007_s1 + $0x120] sm:$0xff] }
 0x334   :  { %1468 = vmatpush.msrb.mxu0 %v4896_v26  ;;  %1488 = vmatpush.msrb.mxu1 %v4902_v33  ;;  %v4916_v56 = vld [vmem:[%s6007_s1 + $0x320] sm:$0xff] }
 0x335   :  { %1508 = vmatpush.msrb.mxu2 %v4150_v23  ;;  %1528 = vmatpush.msrb.mxu3 %v4156_v46  ;;  %v4924_v23 = vld [vmem:[%s6007_s1 + $0x100] sm:$0xff] }
 0x336   :  { %1469 = vmatpush.msrb.mxu0 %v4910_v30  ;;  %1489 = vmatpush.msrb.mxu1 %v4916_v56  ;;  %v4930_v46 = vld [vmem:[%s6007_s1 + $0x300] sm:$0xff] }
 0x337   :  { %1509 = vmatpush.msrb.mxu2 %v4164_v41  ;;  %1529 = vmatpush.msrb.mxu3 %v4170_v60  ;;  %v4938_v41 = vld [vmem:[%s6007_s1 + $0xe0] sm:$0xff] }
 0x338   :  { %1470 = vmatpush.msrb.mxu0 %v4924_v23  ;;  %1490 = vmatpush.msrb.mxu1 %v4930_v46  ;;  %v4944_v60 = vld [vmem:[%s6007_s1 + $0x2e0] sm:$0xff] }
 0x339   :  { %1510 = vmatpush.msrb.mxu2 %v4178_v45  ;;  %1530 = vmatpush.msrb.mxu3 %v4184_v8  ;;  %v4952_v45 = vld [vmem:[%s6007_s1 + $0xc0] sm:$0xff] }
 0x33a   :  { %1471 = vmatpush.msrb.mxu0 %v4938_v41  ;;  %1491 = vmatpush.msrb.mxu1 %v4944_v60  ;;  %v4958_v8 = vld [vmem:[%s6007_s1 + $0x2c0] sm:$0xff] }
 0x33b   :  { %1511 = vmatpush.msrb.mxu2 %v4192_v38  ;;  %1531 = vmatpush.msrb.mxu3 %v4198_v21  ;;  %6711 = vst [vmem:[#allocation32_spill] sm:$0xff] %v4958_v8  ;;  %v4966_v38 = vld [vmem:[%s6007_s1 + $0xa0] sm:$0xff] }
 0x33c   :  { %1472 = vmatpush.msrb.mxu0 %v4952_v45  ;;  %1492 = vmatpush.msrb.mxu1 %v4958_v8  ;;  %6712 = vst [vmem:[#allocation40_spill] sm:$0xff] %v4966_v38  ;;  %v4972_v21 = vld [vmem:[%s6007_s1 + $0x2a0] sm:$0xff] }
 0x33d   :  { %1512 = vmatpush.msrb.mxu2 %v6621_v40  ;;  %1532 = vmatpush.msrb.mxu3 %v6622_v18  ;;  %6713 = vst [vmem:[#allocation21_spill] sm:$0xff] %v4972_v21  ;;  %v6714_v40 = vld [vmem:[#allocation17_spill] sm:$0xff]  ;;  %v6715_v18 = vld [vmem:[#allocation20_spill] sm:$0xff] }
 0x33e   :  { %1473 = vmatpush.msrb.mxu0 %v4966_v38  ;;  %1493 = vmatpush.msrb.mxu1 %v4972_v21 }
 0x33f   :  { %1513 = vmatpush.msrb.mxu2 %v6625_v57  ;;  %1533 = vmatpush.msrb.mxu3 %v6626_v58  ;;  %v6716_v57 = vld [vmem:[#allocation54_spill] sm:$0xff]  ;;  %v6717_v58 = vld [vmem:[#allocation55_spill] sm:$0xff] }
 0x340   :  { %1474 = vmatpush.msrb.mxu0 %v6627_v61  ;;  %1494 = vmatpush.msrb.mxu1 %v6628_v62  ;;  %v5000_v61 = vld [vmem:[%s6007_s1 + $0x1f0] sm:$0xff] }
 0x341   :  { %1514 = vmatpush.msrb.mxu2 %v6629_v11  ;;  %1534 = vmatpush.msrb.mxu3 %v6630_v14  ;;  %6718 = vst [vmem:[#allocation24_spill] sm:$0xff] %v5000_v61  ;;  %v5006_v62 = vld [vmem:[%s6007_s1 + $0x3f0] sm:$0xff]  ;;  %v6720_v11 = vld [vmem:[#allocation19_spill] sm:$0xff] }
 0x342   :  { %1475 = vmatpush.msrb.mxu0 %v6631_v36  ;;  %1495 = vmatpush.msrb.mxu1 %v6632_v25  ;;  %6719 = vst [vmem:[#allocation44_spill] sm:$0xff] %v5006_v62  ;;  %v6721_v14 = vld [vmem:[#allocation23_spill] sm:$0xff]  ;;  %v5014_v36 = vld [vmem:[%s6007_s1 + $0x1d0] sm:$0xff] }
 0x343   :  { %1515 = vmatpush.msrb.mxu2 %v6633_v31  ;;  %1535 = vmatpush.msrb.mxu3 %v6634_v32  ;;  %6722 = vst [vmem:[#allocation3_spill] sm:$0xff] %v5014_v36  ;;  %v5020_v25 = vld [vmem:[%s6007_s1 + $0x3d0] sm:$0xff]  ;;  %v6725_v32 = vld [vmem:[#allocation57_spill] sm:$0xff] }
 0x344   :  { %1476 = vmatpush.msrb.mxu0 %v6635_v42  ;;  %1496 = vmatpush.msrb.mxu1 %v6636_v51  ;;  %6723 = vst [vmem:[#allocation4_spill] sm:$0xff] %v5020_v25  ;;  %v6724_v31 = vld [vmem:[#allocation56_spill] sm:$0xff] }
 0x345   :  { %1516 = vmatpush.msrb.mxu2 %v6637_v59  ;;  %1536 = vmatpush.msrb.mxu3 %v6638_v24  ;;  %v5028_v42 = vld [vmem:[%s6007_s1 + $0x1b0] sm:$0xff]  ;;  %v6728_v59 = vld [vmem:[#allocation22_spill] sm:$0xff]  ;;  %v6729_v24 = vld [vmem:[#allocation27_spill] sm:$0xff] }
 0x346   :  { %1477 = vmatpush.msrb.mxu0 %v6639_v27  ;;  %1497 = vmatpush.msrb.mxu1 %v6640_v35  ;;  %6726 = vst [vmem:[#allocation5_spill] sm:$0xff] %v5028_v42  ;;  %v5034_v51 = vld [vmem:[%s6007_s1 + $0x3b0] sm:$0xff] }
 0x347   :  { %1517 = vmatpush.msrb.mxu2 %v6641_v3  ;;  %1537 = vmatpush.msrb.mxu3 %v6642_v9  ;;  %6727 = vst [vmem:[#allocation6_spill] sm:$0xff] %v5034_v51  ;;  %v5042_v27 = vld [vmem:[%s6007_s1 + $0x190] sm:$0xff]  ;;  %v6732_v3 = vld [vmem:[#allocation58_spill] sm:$0xff]  ;;  %v6733_v9 = vld [vmem:[#allocation59_spill] sm:$0xff] }
 0x348   :  { %1478 = vmatpush.msrb.mxu0 %v6714_v40  ;;  %1498 = vmatpush.msrb.mxu1 %v6715_v18  ;;  %6730 = vst [vmem:[#allocation7_spill] sm:$0xff] %v5042_v27  ;;  %v5048_v35 = vld [vmem:[%s6007_s1 + $0x390] sm:$0xff]  ;;  %v6753_v40 = vld [vmem:[#allocation66_spill] sm:$0xff]  ;;  %v6754_v18 = vld [vmem:[#allocation67_spill] sm:$0xff] }
 0x349   :  { %1518 = vmatpush.msrb.mxu2 %v6716_v57  ;;  %1538 = vmatpush.msrb.mxu3 %v6717_v58  ;;  %6731 = vst [vmem:[#allocation8_spill] sm:$0xff] %v5048_v35  ;;  %v6755_v57 = vld [vmem:[#allocation42_spill] sm:$0xff]  ;;  %v6756_v58 = vld [vmem:[#allocation45_spill] sm:$0xff] }
 0x34a   :  { %1543 = vmatpush.msra.mxu0 %v5000_v61  ;;  %1563 = vmatpush.msra.mxu1 %v5006_v62 }
 0x34b   :  { %1583 = vmatpush.msra.mxu2 %v6720_v11  ;;  %1603 = vmatpush.msra.mxu3 %v6721_v14  ;;  %v6757_v11 = vld [vmem:[#allocation68_spill] sm:$0xff]  ;;  %v6758_v14 = vld [vmem:[#allocation69_spill] sm:$0xff] }
 0x34c   :  { %1544 = vmatpush.msra.mxu0 %v5014_v36  ;;  %1564 = vmatpush.msra.mxu1 %v5020_v25 }
 0x34d   :  { %1584 = vmatpush.msra.mxu2 %v6724_v31  ;;  %1604 = vmatpush.msra.mxu3 %v6725_v32  ;;  %v6759_v31 = vld [vmem:[#allocation70_spill] sm:$0xff]  ;;  %v6760_v32 = vld [vmem:[#allocation71_spill] sm:$0xff] }
 0x34e   :  { %1545 = vmatpush.msra.mxu0 %v5028_v42  ;;  %1565 = vmatpush.msra.mxu1 %v5034_v51 }
 0x34f   :  { %1585 = vmatpush.msra.mxu2 %v6728_v59  ;;  %1605 = vmatpush.msra.mxu3 %v6729_v24  ;;  %v6761_v59 = vld [vmem:[#allocation72_spill] sm:$0xff]  ;;  %v6762_v24 = vld [vmem:[#allocation73_spill] sm:$0xff] }
 0x350   :  { %1546 = vmatpush.msra.mxu0 %v5042_v27  ;;  %1566 = vmatpush.msra.mxu1 %v5048_v35 }
 0x351   :  { %1586 = vmatpush.msra.mxu2 %v6732_v3  ;;  %1606 = vmatpush.msra.mxu3 %v6733_v9  ;;  %v6763_v3 = vld [vmem:[#allocation74_spill] sm:$0xff]  ;;  %v6764_v9 = vld [vmem:[#allocation75_spill] sm:$0xff] }
 0x352   :  { %1547 = vmatpush.msra.mxu0 %v5056_v44  ;;  %1567 = vmatpush.msra.mxu1 %v5062_v55 }
 0x353   :  { %1587 = vmatpush.msra.mxu2 %v6736_v54  ;;  %1607 = vmatpush.msra.mxu3 %v6737_v0  ;;  %v6765_v54 = vld [vmem:[#allocation76_spill] sm:$0xff]  ;;  %v6766_v0 = vld [vmem:[#allocation77_spill] sm:$0xff] }
 0x354   :  { %1548 = vmatpush.msra.mxu0 %v5070_v6  ;;  %1568 = vmatpush.msra.mxu1 %v5076_v28 }
 0x355   :  { %1588 = vmatpush.msra.mxu2 %v6740_v1  ;;  %1608 = vmatpush.msra.mxu3 %v6741_v20  ;;  %v6767_v1 = vld [vmem:[#allocation78_spill] sm:$0xff]  ;;  %v6768_v20 = vld [vmem:[#allocation79_spill] sm:$0xff] }
 0x356   :  { %1549 = vmatpush.msra.mxu0 %v5084_v16  ;;  %1569 = vmatpush.msra.mxu1 %v6743_v43  ;;  %v6769_v43 = vld [vmem:[#allocation80_spill] sm:$0xff] }
 0x357   :  { %1589 = vmatpush.msra.mxu2 %v6744_v10  ;;  %1609 = vmatpush.msra.mxu3 %v6745_v5  ;;  %v6770_v10 = vld [vmem:[#allocation81_spill] sm:$0xff]  ;;  %v6771_v5 = vld [vmem:[#allocation82_spill] sm:$0xff] }
 0x358   :  { %1550 = vmatpush.msra.mxu0 %v6746_v2  ;;  %1570 = vmatpush.msra.mxu1 %v6747_v17  ;;  %v6772_v2 = vld [vmem:[#allocation83_spill] sm:$0xff]  ;;  %v6773_v17 = vld [vmem:[#allocation84_spill] sm:$0xff] }
 0x359   :  { %1590 = vmatpush.msra.mxu2 %v6748_v49  ;;  %1610 = vmatpush.msra.mxu3 %v6749_v37  ;;  %v6774_v49 = vld [vmem:[#allocation85_spill] sm:$0xff]  ;;  %v6775_v37 = vld [vmem:[#allocation86_spill] sm:$0xff] }
 0x35a   :  { %1551 = vmatpush.msra.mxu0 %v6750_v47  ;;  %1571 = vmatpush.msra.mxu1 %v6751_v53  ;;  %v6776_v47 = vld [vmem:[#allocation87_spill] sm:$0xff]  ;;  %v6777_v53 = vld [vmem:[#allocation88_spill] sm:$0xff] }
 0x35b   :  { %1591 = vmatpush.msra.mxu2 %v6752_v22  ;;  %1611 = vmatpush.msra.mxu3 %v6753_v40  ;;  %v6778_v22 = vld [vmem:[#allocation89_spill] sm:$0xff]  ;;  %v6779_v40 = vld [vmem:[#allocation90_spill] sm:$0xff] }
 0x35c   :  { %1552 = vmatpush.msra.mxu0 %v6754_v18  ;;  %1572 = vmatpush.msra.mxu1 %v6755_v57  ;;  %v6780_v18 = vld [vmem:[#allocation91_spill] sm:$0xff]  ;;  %v6781_v57 = vld [vmem:[#allocation92_spill] sm:$0xff] }
 0x35d   :  { %1592 = vmatpush.msra.mxu2 %v6756_v58  ;;  %1612 = vmatpush.msra.mxu3 %v6757_v11  ;;  %v1209_v58 = vld.sshfl [vmem:[#allocation1] sm:$0xff pattern:$0x75316420] }
 0x35e   :  { %1553 = vmatpush.msra.mxu0 %v6758_v14  ;;  %1573 = vmatpush.msra.mxu1 %v6759_v31 }
 0x35f   :  { %1593 = vmatpush.msra.mxu2 %v6760_v32  ;;  %1613 = vmatpush.msra.mxu3 %v6761_v59 }
 0x360   :  { %1554 = vmatpush.msra.mxu0 %v6762_v24  ;;  %1574 = vmatpush.msra.mxu1 %v6763_v3  ;;  %v1210_v24 = vld.sshfl [vmem:[#allocation1 + $0x8] sm:$0xff pattern:$0x75316420] }
 0x361   :  { %1594 = vmatpush.msra.mxu2 %v6764_v9  ;;  %1614 = vmatpush.msra.mxu3 %v6765_v54 }
 0x362   :  { %1555 = vmatpush.msra.mxu0 %v6766_v0  ;;  %1575 = vmatpush.msra.mxu1 %v6767_v1 }
 0x363   :  { %1595 = vmatpush.msra.mxu2 %v6768_v20  ;;  %1615 = vmatpush.msra.mxu3 %v6769_v43 }
 0x364   :  { %1556 = vmatpush.msra.mxu0 %v6770_v10  ;;  %1576 = vmatpush.msra.mxu1 %v6771_v5  ;;  %v1212_v10 = vld.sshfl [vmem:[#allocation1 + $0x18] sm:$0xff pattern:$0x75316420] }
 0x365   :  { %1596 = vmatpush.msra.mxu2 %v6772_v2  ;;  %1616 = vmatpush.msra.mxu3 %v6773_v17 }
 0x366   :  { %1557 = vmatpush.msra.mxu0 %v6774_v49  ;;  %1577 = vmatpush.msra.mxu1 %v6775_v37 }
 0x367   :  { %1597 = vmatpush.msra.mxu2 %v6776_v47  ;;  %1617 = vmatpush.msra.mxu3 %v6777_v53  ;;  %v1211_v53 = vld.sshfl [vmem:[#allocation1 + $0x10] sm:$0xff pattern:$0x75316420] }
 0x368   :  { %1558 = vmatpush.msra.mxu0 %v6778_v22  ;;  %1578 = vmatpush.msra.mxu1 %v6779_v40 }
 0x369   :  { %1598 = vmatpush.msra.mxu2 %v6780_v18  ;;  %1618 = vmatpush.msra.mxu3 %v6781_v57 }
 0x3a3   :  { %v1234_v11 = vpop.f32.mrf.mxu0  ;;  %v1254_v31 = vpop.f32.mrf.mxu1 }
 0x3a4   :  { %v1235_v14 = vadd.f32 %v1234_v11, %v1209_v58 }
 0x3a6   :  { %v1255_v32 = vadd.f32 %v1254_v31, %v1235_v14 }
 0x3a8   :  { %v2357_v59 = vmul.f32 -1.442695, %v1255_v32 }
 0x3aa   :  { %2441 = vpow2.f32 %v2357_v59  ;;  %v1274_v3 = vpop.f32.mrf.mxu2  ;;  %v1294_v54 = vpop.f32.mrf.mxu3 }
 0x3ab   :  { %v1275_v9 = vadd.f32 %v1274_v3, %v1210_v24  ;;  %v1314_v22 = vpop.f32.mrf.mxu0  ;;  %v1334_v14 = vpop.f32.mrf.mxu1 }
 0x3ac   :  { %v1315_v58 = vadd.f32 %v1314_v22, %v1211_v53 }
 0x3ad   :  { %v1295_v0 = vadd.f32 %v1294_v54, %v1275_v9 }
 0x3ae   :  { %v1335_v32 = vadd.f32 %v1334_v14, %v1315_v58 }
 0x3af   :  { %v2358_v1 = vmul.f32 -1.442695, %v1295_v0 }
 0x3b0   :  { %v2442_v20 = vpop.eup %2441 }
 0x3b1   :  { %v1380_v43 = vadd.f32 1.0, %v2442_v20  ;;  %2443 = vpow2.f32 %v2358_v1 }
 0x3b2   :  { %v1354_v5 = vpop.f32.mrf.mxu2  ;;  %v1374_v17 = vpop.f32.mrf.mxu3 }
 0x3b3   :  { %2445 = vrcp.f32 %v1380_v43  ;;  %v1355_v2 = vadd.f32 %v1354_v5, %v1212_v10  ;;  %v1392_v54 = vand.u32 2147483648, %v1380_v43  ;;  %vm1386_vm2 = vweird.f32 %v1380_v43  ;;  %v2360_v10 = vld [vmem:[%s6009_s0 + $0x50] sm:$0xff] }
 0x3b4   :  { %v1390_v20 = vand.u32 2147483647, %v1380_v43  ;;  %1452 = vst [vmem:[#allocation1] ss:$2 sm:$0xff] %v2360_v10 }
 0x3b5   :  { %v1375_v49 = vadd.f32 %v1374_v17, %v1355_v2 }
 0x3b6   :  { %vm1391_vm6 = vcmp.eq.f32.partialorder %v1390_v20, 8.507059e+37 }
 0x3b7   :  { %v2444_v37 = vpop.eup %2443  ;;  %v2359_v40 = vmul.f32 -1.442695, %v1375_v49 }
 0x3b8   :  { %v1399_v47 = vadd.f32 1.0, %v2444_v37  ;;  %v1393_v37 = vor.u32 1.1754944e-38, %v1392_v54 }
 0x3b9   :  { %v2446_v18 = vpop.eup %2445 }
 0x3ba   :  { %v1382_v57 = vmul.f32 %v2446_v18, %v1380_v43  ;;  %2447 = vrcp.f32 %v1399_v47  ;;  %vm1387_vm1 = vweird.f32 %v2446_v18  ;;  %v1411_v5 = vand.u32 2147483648, %v1399_v47 }
 0x3bb   :  { %2449 = vpow2.f32 %v2359_v40  ;;  %vm1388_vm3 = vmor %vm1386_vm2, %vm1387_vm1  ;;  %v1409_v49 = vand.u32 2147483647, %v1399_v47  ;;  %vm1405_vm5 = vweird.f32 %v1399_v47 }
 0x3bc   :  { %v1383_v11 = vsub.f32 1.0, %v1382_v57  ;;  %2451 = vtanh.f32 %v1335_v32  ;;  %v1412_v22 = vor.u32 1.1754944e-38, %v1411_v5 }
 0x3bd   :  { %vm1410_vm8 = vcmp.eq.f32.partialorder %v1409_v49, 8.507059e+37  ;;  %v5146_v49 = vld [vmem:[%s6007_s1 + $0x3e8] sm:$0xff] }
 0x3be   :  { %v1384_v31 = vmul.f32 %v2446_v18, %v1383_v11 }
 0x3c0   :  { %v2448_v59 = vpop.eup %2447  ;;  %v1385_v9 = vadd.f32 %v2446_v18, %v1384_v31 }
 0x3c1   :  { %v2450_v24 = vpop.eup %2449  ;;  %v1401_v3 = vmul.f32 %v2448_v59, %v1399_v47  ;;  %vm1406_vm4 = vweird.f32 %v2448_v59 }
 0x3c2   :  { %v1419_v0 = vadd.f32 1.0, %v2450_v24  ;;  %v1389_v17 = vsel %vm1388_vm3, %v2446_v18, %v1385_v9  ;;  %vm1407_vm7 = vmor %vm1405_vm5, %vm1406_vm4  ;;  %v2452_v40 = vpop.eup %2451 }
 0x3c3   :  { %v1402_v1 = vsub.f32 1.0, %v1401_v3  ;;  %v1394_v43 = vsel %vm1391_vm6, %v1393_v37, %v1389_v17  ;;  %v5154_v37 = vld [vmem:[%s6007_s1 + $0x1c8] sm:$0xff] }
 0x3c4   :  { %2453 = vrcp.f32 %v1419_v0  ;;  %v1436_v31 = vmul.f32 %v2452_v40, %v1394_v43  ;;  %v1431_v3 = vand.u32 2147483648, %v1419_v0  ;;  %v1429_v9 = vand.u32 2147483647, %v1419_v0  ;;  %v5174_v43 = vld [vmem:[%s6007_s1 + $0x3a8] sm:$0xff] }
 0x3c5   :  { %v1403_v2 = vmul.f32 %v2448_v59, %v1402_v1  ;;  %vm1425_vm10 = vweird.f32 %v1419_v0  ;;  %v5182_v40 = vld [vmem:[%s6007_s1 + $0x188] sm:$0xff] }
 0x3c6   :  { %vm1430_vm12 = vcmp.eq.f32.partialorder %v1429_v9, 8.507059e+37  ;;  %v5252_v9 = vld [vmem:[%s6007_s1 + $0xe8] sm:$0xff] }
 0x3c7   :  { %v1404_v53 = vadd.f32 %v2448_v59, %v1403_v2 }
 0x3c9   :  { %v1408_v57 = vsel %vm1407_vm7, %v2448_v59, %v1404_v53  ;;  %v1432_v59 = vor.u32 1.1754944e-38, %v1431_v3  ;;  %v5160_v53 = vld [vmem:[%s6007_s1 + $0x3c8] sm:$0xff] }
 0x3ca   :  { %v2454_v58 = vpop.eup %2453  ;;  %v1413_v11 = vsel %vm1410_vm8, %v1412_v22, %v1408_v57  ;;  %v5168_v22 = vld [vmem:[%s6007_s1 + $0x1a8] sm:$0xff] }
 0x3cb   :  { %v1435_v14 = vmul.f32 %v1413_v11, %v4818_v63  ;;  %v1421_v32 = vmul.f32 %v2454_v58, %v1419_v0  ;;  %vm1426_vm9 = vweird.f32 %v2454_v58  ;;  %v5140_v0 = vld [vmem:[%s6007_s1 + $0x1e8] sm:$0xff] }
 0x3cc   :  { %vm1427_vm11 = vmor %vm1425_vm10, %vm1426_vm9  ;;  %v5188_v57 = vld [vmem:[%s6007_s1 + $0x388] sm:$0xff] }
 0x3cd   :  { %v5130_v24 = vadd.f32 %v1436_v31, %v1435_v14  ;;  %v1422_v18 = vsub.f32 1.0, %v1421_v32  ;;  %v5202_v11 = vld [vmem:[%s6007_s1 + $0x368] sm:$0xff] }
 0x3ce   :  { %v5210_v14 = vld [vmem:[%s6007_s1 + $0x148] sm:$0xff] }
 0x3cf   :  { %2455 = vtanh.f32 %v5130_v24  ;;  %v1423_v47 = vmul.f32 %v2454_v58, %v1422_v18  ;;  %v5216_v31 = vld [vmem:[%s6007_s1 + $0x348] sm:$0xff] }
 0x3d0   :  { %v5224_v32 = vld [vmem:[%s6007_s1 + $0x128] sm:$0xff] }
 0x3d1   :  { %v1424_v54 = vadd.f32 %v2454_v58, %v1423_v47  ;;  %v5230_v18 = vld [vmem:[%s6007_s1 + $0x328] sm:$0xff] }
 0x3d2   :  { %v5238_v47 = vld [vmem:[%s6007_s1 + $0x108] sm:$0xff] }
 0x3d3   :  { %v1428_v1 = vsel %vm1427_vm11, %v2454_v58, %v1424_v54  ;;  %v5196_v58 = vld [vmem:[%s6007_s1 + $0x168] sm:$0xff] }
 0x3d4   :  { %v1433_v10 = vsel %vm1430_vm12, %v1432_v59, %v1428_v1  ;;  %v5244_v3 = vld [vmem:[%s6007_s1 + $0x308] sm:$0xff] }
 0x3d5   :  { %v2456_v20 = vpop.eup %2455  ;;  %v5258_v54 = vld [vmem:[%s6007_s1 + $0x2e8] sm:$0xff] }
 0x3d6   :  { %v1439_v63 = vmul.f32 %v2456_v20, %v1433_v10  ;;  %v5266_v59 = vld [vmem:[%s6007_s1 + $0xc8] sm:$0xff] }
 0x3d7   :  { %6782 = vst [vmem:[#allocation50_spill] sm:$0xff] %v5266_v59  ;;  %v5272_v1 = vld [vmem:[%s6007_s1 + $0x2c8] sm:$0xff] }
 0x3d8   :  { %1440 = vst [vmem:[#allocation2 + $0x40] sm:$0x3] %v1439_v63  ;;  %v1442_v5 = vrot.slane %v1439_v63, 2  ;;  %v1445_v2 = vmul.f32 %v1439_v63, %v6476_v50  ;;  %v1446_v17 = vmul.f32 %v1439_v63, %v6477_v19  ;;  %v5280_v20 = vld [vmem:[%s6007_s1 + $0xa8] sm:$0xff]  ;;  %v5292_v63 = vld [vmem:[%s6007_s1 + $0x80] sm:$0xff] }
 0x3d9   :  { %6783 = vst [vmem:[#allocation51_spill] sm:$0xff] %v5272_v1  ;;  %v5286_v10 = vld [vmem:[%s6007_s1 + $0x2a8] sm:$0xff] }
 0x3da   :  { %1444 = vst [vmem:[#allocation2 + $0x48] sm:$0x3] %v1442_v5  ;;  %1479 = vmatmul.f32.vlgmr.msrb.gmra.mxu0 %v1445_v2  ;;  %1499 = vmatmul.f32.vlgmr.msrb.gmra.mxu1 %v1446_v17  ;;  %v5298_v5 = vld [vmem:[%s6007_s1 + $0x280] sm:$0xff] }
 0x3db   :  { %1519 = vmatmul.f32.vlgmr.msrb.gmra.mxu2 %v1445_v2  ;;  %1539 = vmatmul.f32.vlgmr.msrb.gmra.mxu3 %v1446_v17  ;;  %6784 = vst [vmem:[#allocation13_spill] sm:$0xff] %v5280_v20 }
 0x3dc   :  { %1709 = vmatpush.msrb.mxu0 %v4826_v52  ;;  %1729 = vmatpush.msrb.mxu1 %v4832_v13  ;;  %6785 = vst [vmem:[#allocation18_spill] sm:$0xff] %v5286_v10 }
 0x3dd   :  { %1749 = vmatpush.msrb.mxu2 %v5140_v0  ;;  %1769 = vmatpush.msrb.mxu3 %v5146_v49  ;;  %6786 = vst [vmem:[#allocation52_spill] sm:$0xff] %v5292_v63 }
 0x3de   :  { %1710 = vmatpush.msrb.mxu0 %v4840_v12  ;;  %1730 = vmatpush.msrb.mxu1 %v4846_v4  ;;  %6787 = vst [vmem:[#allocation53_spill] sm:$0xff] %v5298_v5 }
 0x3df   :  { %1750 = vmatpush.msrb.mxu2 %v5154_v37  ;;  %1770 = vmatpush.msrb.mxu3 %v5160_v53 }
 0x3e0   :  { %1711 = vmatpush.msrb.mxu0 %v4854_v48  ;;  %1731 = vmatpush.msrb.mxu1 %v4860_v15 }
 0x3e1   :  { %1751 = vmatpush.msrb.mxu2 %v5168_v22  ;;  %1771 = vmatpush.msrb.mxu3 %v5174_v43 }
 0x3e2   :  { %1559 = vmatmul.f32.vlgmr.msra.gmra.mxu0 %v1445_v2  ;;  %1579 = vmatmul.f32.vlgmr.msra.gmra.mxu1 %v1446_v17 }
 0x3e3   :  { %1599 = vmatmul.f32.vlgmr.msra.gmra.mxu2 %v1445_v2  ;;  %1619 = vmatmul.f32.vlgmr.msra.gmra.mxu3 %v1446_v17  ;;  %v5304_v2 = vld [vmem:[%s6007_s1 + $0x88] sm:$0xff] }
 0x3e4   :  { %1712 = vmatpush.msrb.mxu0 %v4868_v39  ;;  %1732 = vmatpush.msrb.mxu1 %v4874_v34  ;;  %6788 = vst [vmem:[#allocation25_spill] sm:$0xff] %v5304_v2  ;;  %v5310_v17 = vld [vmem:[%s6007_s1 + $0x288] sm:$0xff] }
 0x3e5   :  { %1752 = vmatpush.msrb.mxu2 %v5182_v40  ;;  %1772 = vmatpush.msrb.mxu3 %v5188_v57  ;;  %6789 = vst [vmem:[#allocation29_spill] sm:$0xff] %v5310_v17 }
 0x3e6   :  { %1713 = vmatpush.msrb.mxu0 %v4882_v29  ;;  %1733 = vmatpush.msrb.mxu1 %v4888_v7 }
 0x3e7   :  { %1753 = vmatpush.msrb.mxu2 %v5196_v58  ;;  %1773 = vmatpush.msrb.mxu3 %v5202_v11 }
 0x3e8   :  { %1714 = vmatpush.msrb.mxu0 %v4896_v26  ;;  %1734 = vmatpush.msrb.mxu1 %v4902_v33 }
 0x3e9   :  { %1754 = vmatpush.msrb.mxu2 %v5210_v14  ;;  %1774 = vmatpush.msrb.mxu3 %v5216_v31 }
 0x3ea   :  { %1715 = vmatpush.msrb.mxu0 %v4910_v30  ;;  %1735 = vmatpush.msrb.mxu1 %v4916_v56 }
 0x3eb   :  { %1755 = vmatpush.msrb.mxu2 %v5224_v32  ;;  %1775 = vmatpush.msrb.mxu3 %v5230_v18 }
 0x3ec   :  { %1716 = vmatpush.msrb.mxu0 %v4924_v23  ;;  %1736 = vmatpush.msrb.mxu1 %v4930_v46 }
 0x3ed   :  { %1756 = vmatpush.msrb.mxu2 %v5238_v47  ;;  %1776 = vmatpush.msrb.mxu3 %v5244_v3 }
 0x3ee   :  { %1717 = vmatpush.msrb.mxu0 %v4938_v41  ;;  %1737 = vmatpush.msrb.mxu1 %v4944_v60 }
 0x3ef   :  { %1757 = vmatpush.msrb.mxu2 %v5252_v9  ;;  %1777 = vmatpush.msrb.mxu3 %v5258_v54 }
 0x3f0   :  { %1718 = vmatpush.msrb.mxu0 %v4952_v45  ;;  %1738 = vmatpush.msrb.mxu1 %v4958_v8 }
 0x3f1   :  { %1758 = vmatpush.msrb.mxu2 %v5266_v59  ;;  %1778 = vmatpush.msrb.mxu3 %v5272_v1 }
 0x3f2   :  { %1719 = vmatpush.msrb.mxu0 %v4966_v38  ;;  %1739 = vmatpush.msrb.mxu1 %v4972_v21 }
 0x3f3   :  { %1759 = vmatpush.msrb.mxu2 %v5280_v20  ;;  %1779 = vmatpush.msrb.mxu3 %v5286_v10 }
 0x3f4   :  { %1720 = vmatpush.msrb.mxu0 %v5292_v63  ;;  %1740 = vmatpush.msrb.mxu1 %v5298_v5  ;;  %v5316_v63 = vld [vmem:[%s6007_s1 + $0x60] sm:$0xff] }
 0x3f5   :  { %1760 = vmatpush.msrb.mxu2 %v5304_v2  ;;  %1780 = vmatpush.msrb.mxu3 %v5310_v17  ;;  %6790 = vst [vmem:[#allocation33_spill] sm:$0xff] %v5316_v63  ;;  %v5322_v5 = vld [vmem:[%s6007_s1 + $0x260] sm:$0xff]  ;;  %v5328_v2 = vld [vmem:[%s6007_s1 + $0x68] sm:$0xff] }
 0x3f6   :  { %1721 = vmatpush.msrb.mxu0 %v5316_v63  ;;  %6791 = vst [vmem:[#allocation36_spill] sm:$0xff] %v5322_v5  ;;  %1741 = vmatpush.msrb.mxu1 %v5322_v5  ;;  %v5334_v17 = vld [vmem:[%s6007_s1 + $0x268] sm:$0xff]  ;;  %v5340_v63 = vld [vmem:[%s6007_s1 + $0x40] sm:$0xff] }
 0x3f7   :  { %6792 = vst [vmem:[#allocation37_spill] sm:$0xff] %v5328_v2  ;;  %1761 = vmatpush.msrb.mxu2 %v5328_v2  ;;  %1781 = vmatpush.msrb.mxu3 %v5334_v17  ;;  %v5346_v5 = vld [vmem:[%s6007_s1 + $0x240] sm:$0xff]  ;;  %v5352_v2 = vld [vmem:[%s6007_s1 + $0x48] sm:$0xff] }
 0x3f8   :  { %6793 = vst [vmem:[#allocation41_spill] sm:$0xff] %v5334_v17  ;;  %1722 = vmatpush.msrb.mxu0 %v5340_v63  ;;  %1742 = vmatpush.msrb.mxu1 %v5346_v5  ;;  %v5358_v17 = vld [vmem:[%s6007_s1 + $0x248] sm:$0xff] }
 0x3f9   :  { %6794 = vst [vmem:[#allocation46_spill] sm:$0xff] %v5340_v63  ;;  %1762 = vmatpush.msrb.mxu2 %v5352_v2  ;;  %1782 = vmatpush.msrb.mxu3 %v5358_v17  ;;  %v5364_v63 = vld [vmem:[%s6007_s1 + $0x20] sm:$0xff] }
 0x3fa   :  { %6795 = vst [vmem:[#allocation47_spill] sm:$0xff] %v5346_v5  ;;  %1723 = vmatpush.msrb.mxu0 %v5364_v63  ;;  %v5370_v5 = vld [vmem:[%s6007_s1 + $0x220] sm:$0xff] }
 0x3fb   :  { %6796 = vst [vmem:[#allocation48_spill] sm:$0xff] %v5352_v2  ;;  %1743 = vmatpush.msrb.mxu1 %v5370_v5  ;;  %v5376_v2 = vld [vmem:[%s6007_s1 + $0x28] sm:$0xff] }
 0x3fc   :  { %6797 = vst [vmem:[#allocation49_spill] sm:$0xff] %v5358_v17  ;;  %1763 = vmatpush.msrb.mxu2 %v5376_v2  ;;  %v5382_v17 = vld [vmem:[%s6007_s1 + $0x228] sm:$0xff] }
 0x3fd   :  { %6798 = vst [vmem:[#allocation9_spill] sm:$0xff] %v5364_v63  ;;  %1783 = vmatpush.msrb.mxu3 %v5382_v17  ;;  %v5388_v63 = vld [vmem:[%s6007_s1] sm:$0xff] }
 0x3fe   :  { %6799 = vst [vmem:[#allocation10_spill] sm:$0xff] %v5370_v5  ;;  %1724 = vmatpush.msrb.mxu0 %v5388_v63  ;;  %v5394_v5 = vld [vmem:[%s6007_s1 + $0x200] sm:$0xff] }
 0x3ff   :  { %6800 = vst [vmem:[#allocation28_spill] sm:$0xff] %v5376_v2  ;;  %1744 = vmatpush.msrb.mxu1 %v5394_v5  ;;  %v5400_v2 = vld [vmem:[%s6007_s1 + $0x8] sm:$0xff] }
 0x400   :  { %6801 = vst [vmem:[#allocation17_spill] sm:$0xff] %v5382_v17  ;;  %1764 = vmatpush.msrb.mxu2 %v5400_v2  ;;  %v5406_v17 = vld [vmem:[%s6007_s1 + $0x208] sm:$0xff]  ;;  %1789 = vmatpush.msra.mxu0 %v5000_v61 }
 0x401   :  { %6802 = vst [vmem:[#allocation20_spill] sm:$0xff] %v5388_v63  ;;  %1784 = vmatpush.msrb.mxu3 %v5406_v17  ;;  %1809 = vmatpush.msra.mxu1 %v5006_v62  ;;  %v5428_v62 = vld [vmem:[%s6007_s1 + $0x1d8] sm:$0xff] }
 0x402   :  { %6803 = vst [vmem:[#allocation54_spill] sm:$0xff] %v5394_v5  ;;  %v5414_v5 = vld [vmem:[%s6007_s1 + $0x1f8] sm:$0xff]  ;;  %1790 = vmatpush.msra.mxu0 %v5014_v36 }
 0x403   :  { %6804 = vst [vmem:[#allocation55_spill] sm:$0xff] %v5400_v2  ;;  %1829 = vmatpush.msra.mxu2 %v5414_v5  ;;  %v5420_v2 = vld [vmem:[%s6007_s1 + $0x3f8] sm:$0xff]  ;;  %1810 = vmatpush.msra.mxu1 %v5020_v25 }
 0x404   :  { %6805 = vst [vmem:[#allocation19_spill] sm:$0xff] %v5406_v17  ;;  %1849 = vmatpush.msra.mxu3 %v5420_v2  ;;  %1791 = vmatpush.msra.mxu0 %v5028_v42  ;;  %v5442_v25 = vld [vmem:[%s6007_s1 + $0x1b8] sm:$0xff] }
 0x405   :  { %6806 = vst [vmem:[#allocation23_spill] sm:$0xff] %v5414_v5  ;;  %1830 = vmatpush.msra.mxu2 %v5428_v62  ;;  %v5434_v5 = vld [vmem:[%s6007_s1 + $0x3d8] sm:$0xff]  ;;  %1811 = vmatpush.msra.mxu1 %v5034_v51 }
 0x406   :  { %6807 = vst [vmem:[#allocation56_spill] sm:$0xff] %v5420_v2  ;;  %1850 = vmatpush.msra.mxu3 %v5434_v5  ;;  %1792 = vmatpush.msra.mxu0 %v5042_v27  ;;  %v5456_v51 = vld [vmem:[%s6007_s1 + $0x198] sm:$0xff]  ;;  %v1456_v27 = vld.sshfl [vmem:[#allocation1 + $0x8] sm:$0xff pattern:$0x75316420] }
 0x407   :  { %6808 = vst [vmem:[#allocation57_spill] sm:$0xff] %v5428_v62  ;;  %1831 = vmatpush.msra.mxu2 %v5442_v25  ;;  %v5448_v62 = vld [vmem:[%s6007_s1 + $0x3b8] sm:$0xff]  ;;  %1812 = vmatpush.msra.mxu1 %v5048_v35 }
 0x408   :  { %6809 = vst [vmem:[#allocation22_spill] sm:$0xff] %v5434_v5  ;;  %1851 = vmatpush.msra.mxu3 %v5448_v62  ;;  %1793 = vmatpush.msra.mxu0 %v5056_v44  ;;  %v5470_v35 = vld [vmem:[%s6007_s1 + $0x178] sm:$0xff] }
 0x409   :  { %6810 = vst [vmem:[#allocation27_spill] sm:$0xff] %v5442_v25  ;;  %1832 = vmatpush.msra.mxu2 %v5456_v51  ;;  %v5462_v25 = vld [vmem:[%s6007_s1 + $0x398] sm:$0xff]  ;;  %1813 = vmatpush.msra.mxu1 %v5062_v55 }
 0x40a   :  { %6811 = vst [vmem:[#allocation58_spill] sm:$0xff] %v5448_v62  ;;  %1852 = vmatpush.msra.mxu3 %v5462_v25  ;;  %1794 = vmatpush.msra.mxu0 %v5070_v6  ;;  %v5484_v55 = vld [vmem:[%s6007_s1 + $0x158] sm:$0xff] }
 0x40b   :  { %6812 = vst [vmem:[#allocation59_spill] sm:$0xff] %v5456_v51  ;;  %1833 = vmatpush.msra.mxu2 %v5470_v35  ;;  %v5476_v51 = vld [vmem:[%s6007_s1 + $0x378] sm:$0xff]  ;;  %1814 = vmatpush.msra.mxu1 %v5076_v28  ;;  %v5497_v28 = vld [vmem:[%s6007_s1 + $0x330] sm:$0xff] }
 0x40c   :  { %6813 = vst [vmem:[#allocation26_spill] sm:$0xff] %v5462_v25  ;;  %1853 = vmatpush.msra.mxu3 %v5476_v51  ;;  %1795 = vmatpush.msra.mxu0 %v5084_v16  ;;  %v5515_v16 = vld [vmem:[%s6007_s1 + $0x110] sm:$0xff] }
 0x40d   :  { %6814 = vst [vmem:[#allocation31_spill] sm:$0xff] %v5470_v35  ;;  %1834 = vmatpush.msra.mxu2 %v5484_v55  ;;  %v5490_v35 = vld [vmem:[%s6007_s1 + $0x358] sm:$0xff]  ;;  %1815 = vmatpush.msra.mxu1 %v5497_v28 }
 0x40e   :  { %6815 = vst [vmem:[#allocation60_spill] sm:$0xff] %v5476_v51  ;;  %1854 = vmatpush.msra.mxu3 %v5490_v35  ;;  %1796 = vmatpush.msra.mxu0 %v5515_v16 }
 0x40f   :  { %6816 = vst [vmem:[#allocation61_spill] sm:$0xff] %v5484_v55  ;;  %v5503_v55 = vld [vmem:[%s6007_s1 + $0x138] sm:$0xff] }
 0x410   :  { %6817 = vst [vmem:[#allocation30_spill] sm:$0xff] %v5490_v35  ;;  %1835 = vmatpush.msra.mxu2 %v5503_v55  ;;  %v5509_v35 = vld [vmem:[%s6007_s1 + $0x338] sm:$0xff] }
 0x411   :  { %6818 = vst [vmem:[#allocation35_spill] sm:$0xff] %v5497_v28  ;;  %1855 = vmatpush.msra.mxu3 %v5509_v35  ;;  %v5521_v28 = vld [vmem:[%s6007_s1 + $0x310] sm:$0xff] }
 0x412   :  { %6819 = vst [vmem:[#allocation62_spill] sm:$0xff] %v5503_v55  ;;  %1816 = vmatpush.msra.mxu1 %v5521_v28  ;;  %v5527_v55 = vld [vmem:[%s6007_s1 + $0x118] sm:$0xff] }
 0x413   :  { %6820 = vst [vmem:[#allocation63_spill] sm:$0xff] %v5509_v35  ;;  %1836 = vmatpush.msra.mxu2 %v5527_v55  ;;  %v5533_v35 = vld [vmem:[%s6007_s1 + $0x318] sm:$0xff] }
 0x414   :  { %6821 = vst [vmem:[#allocation34_spill] sm:$0xff] %v5515_v16  ;;  %1856 = vmatpush.msra.mxu3 %v5533_v35  ;;  %v5539_v16 = vld [vmem:[%s6007_s1 + $0xf0] sm:$0xff] }
 0x415   :  { %6822 = vst [vmem:[#allocation39_spill] sm:$0xff] %v5521_v28  ;;  %1797 = vmatpush.msra.mxu0 %v5539_v16  ;;  %v5545_v28 = vld [vmem:[%s6007_s1 + $0x2f0] sm:$0xff] }
 0x416   :  { %6823 = vst [vmem:[#allocation64_spill] sm:$0xff] %v5527_v55  ;;  %1817 = vmatpush.msra.mxu1 %v5545_v28  ;;  %v5551_v55 = vld [vmem:[%s6007_s1 + $0xf8] sm:$0xff] }
 0x417   :  { %6824 = vst [vmem:[#allocation65_spill] sm:$0xff] %v5533_v35  ;;  %1837 = vmatpush.msra.mxu2 %v5551_v55  ;;  %v5557_v35 = vld [vmem:[%s6007_s1 + $0x2f8] sm:$0xff] }
 0x418   :  { %6825 = vst [vmem:[#allocation38_spill] sm:$0xff] %v5539_v16  ;;  %1857 = vmatpush.msra.mxu3 %v5557_v35  ;;  %v5563_v16 = vld [vmem:[%s6007_s1 + $0xd0] sm:$0xff] }
 0x419   :  { %6826 = vst [vmem:[#allocation43_spill] sm:$0xff] %v5545_v28  ;;  %1798 = vmatpush.msra.mxu0 %v5563_v16  ;;  %v5569_v28 = vld [vmem:[%s6007_s1 + $0x2d0] sm:$0xff] }
 0x41a   :  { %6827 = vst [vmem:[#allocation66_spill] sm:$0xff] %v5551_v55  ;;  %1818 = vmatpush.msra.mxu1 %v5569_v28  ;;  %v5575_v55 = vld [vmem:[%s6007_s1 + $0xd8] sm:$0xff] }
 0x41b   :  { %6828 = vst [vmem:[#allocation67_spill] sm:$0xff] %v5557_v35  ;;  %1838 = vmatpush.msra.mxu2 %v5575_v55  ;;  %v5581_v35 = vld [vmem:[%s6007_s1 + $0x2d8] sm:$0xff] }
 0x41c   :  { %6829 = vst [vmem:[#allocation42_spill] sm:$0xff] %v5563_v16  ;;  %1858 = vmatpush.msra.mxu3 %v5581_v35  ;;  %v5587_v16 = vld [vmem:[%s6007_s1 + $0xb0] sm:$0xff] }
 0x41d   :  { %6830 = vst [vmem:[#allocation45_spill] sm:$0xff] %v5569_v28  ;;  %1799 = vmatpush.msra.mxu0 %v5587_v16  ;;  %v5593_v28 = vld [vmem:[%s6007_s1 + $0x2b0] sm:$0xff] }
 0x41e   :  { %6831 = vst [vmem:[#allocation68_spill] sm:$0xff] %v5575_v55  ;;  %1819 = vmatpush.msra.mxu1 %v5593_v28  ;;  %v5599_v55 = vld [vmem:[%s6007_s1 + $0xb8] sm:$0xff] }
 0x41f   :  { %6832 = vst [vmem:[#allocation69_spill] sm:$0xff] %v5581_v35  ;;  %1839 = vmatpush.msra.mxu2 %v5599_v55  ;;  %v5605_v35 = vld [vmem:[%s6007_s1 + $0x2b8] sm:$0xff] }
 0x420   :  { %6833 = vst [vmem:[#allocation70_spill] sm:$0xff] %v5587_v16  ;;  %1859 = vmatpush.msra.mxu3 %v5605_v35  ;;  %v5611_v16 = vld [vmem:[%s6007_s1 + $0x90] sm:$0xff] }
 0x421   :  { %6834 = vst [vmem:[#allocation71_spill] sm:$0xff] %v5593_v28  ;;  %1800 = vmatpush.msra.mxu0 %v5611_v16  ;;  %v5617_v28 = vld [vmem:[%s6007_s1 + $0x290] sm:$0xff] }
 0x422   :  { %6835 = vst [vmem:[#allocation72_spill] sm:$0xff] %v5599_v55  ;;  %1820 = vmatpush.msra.mxu1 %v5617_v28  ;;  %v5623_v55 = vld [vmem:[%s6007_s1 + $0x98] sm:$0xff] }
 0x423   :  { %6836 = vst [vmem:[#allocation73_spill] sm:$0xff] %v5605_v35  ;;  %1840 = vmatpush.msra.mxu2 %v5623_v55  ;;  %v5629_v35 = vld [vmem:[%s6007_s1 + $0x298] sm:$0xff] }
 0x424   :  { %6837 = vst [vmem:[#allocation74_spill] sm:$0xff] %v5611_v16  ;;  %1860 = vmatpush.msra.mxu3 %v5629_v35  ;;  %v5635_v16 = vld [vmem:[%s6007_s1 + $0x70] sm:$0xff] }
 0x425   :  { %6838 = vst [vmem:[#allocation75_spill] sm:$0xff] %v5617_v28  ;;  %1801 = vmatpush.msra.mxu0 %v5635_v16  ;;  %v5641_v28 = vld [vmem:[%s6007_s1 + $0x270] sm:$0xff] }
 0x426   :  { %6839 = vst [vmem:[#allocation76_spill] sm:$0xff] %v5623_v55  ;;  %1821 = vmatpush.msra.mxu1 %v5641_v28  ;;  %v5647_v55 = vld [vmem:[%s6007_s1 + $0x78] sm:$0xff] }
 0x427   :  { %6840 = vst [vmem:[#allocation77_spill] sm:$0xff] %v5629_v35  ;;  %1841 = vmatpush.msra.mxu2 %v5647_v55  ;;  %v5653_v35 = vld [vmem:[%s6007_s1 + $0x278] sm:$0xff] }
 0x428   :  { %6841 = vst [vmem:[#allocation78_spill] sm:$0xff] %v5635_v16  ;;  %1861 = vmatpush.msra.mxu3 %v5653_v35  ;;  %v5659_v16 = vld [vmem:[%s6007_s1 + $0x50] sm:$0xff] }
 0x429   :  { %6842 = vst [vmem:[#allocation79_spill] sm:$0xff] %v5641_v28  ;;  %1802 = vmatpush.msra.mxu0 %v5659_v16  ;;  %v5665_v28 = vld [vmem:[%s6007_s1 + $0x250] sm:$0xff] }
 0x42a   :  { %6843 = vst [vmem:[#allocation80_spill] sm:$0xff] %v5647_v55  ;;  %1822 = vmatpush.msra.mxu1 %v5665_v28  ;;  %v5671_v55 = vld [vmem:[%s6007_s1 + $0x58] sm:$0xff] }
 0x42b   :  { %6844 = vst [vmem:[#allocation81_spill] sm:$0xff] %v5653_v35  ;;  %1842 = vmatpush.msra.mxu2 %v5671_v55  ;;  %v5677_v35 = vld [vmem:[%s6007_s1 + $0x258] sm:$0xff] }
 0x42c   :  { %6845 = vst [vmem:[#allocation82_spill] sm:$0xff] %v5659_v16  ;;  %1862 = vmatpush.msra.mxu3 %v5677_v35  ;;  %v5683_v16 = vld [vmem:[%s6007_s1 + $0x30] sm:$0xff] }
 0x42d   :  { %6846 = vst [vmem:[#allocation83_spill] sm:$0xff] %v5665_v28  ;;  %1803 = vmatpush.msra.mxu0 %v5683_v16  ;;  %v5689_v28 = vld [vmem:[%s6007_s1 + $0x230] sm:$0xff] }
 0x42e   :  { %6847 = vst [vmem:[#allocation84_spill] sm:$0xff] %v5671_v55  ;;  %1823 = vmatpush.msra.mxu1 %v5689_v28  ;;  %v5695_v55 = vld [vmem:[%s6007_s1 + $0x38] sm:$0xff] }
 0x42f   :  { %6848 = vst [vmem:[#allocation85_spill] sm:$0xff] %v5677_v35  ;;  %1843 = vmatpush.msra.mxu2 %v5695_v55  ;;  %v5701_v35 = vld [vmem:[%s6007_s1 + $0x238] sm:$0xff] }
 0x430   :  { %6849 = vst [vmem:[#allocation86_spill] sm:$0xff] %v5683_v16  ;;  %1863 = vmatpush.msra.mxu3 %v5701_v35  ;;  %v5707_v16 = vld [vmem:[%s6007_s1 + $0x10] sm:$0xff] }
 0x431   :  { %6850 = vst [vmem:[#allocation87_spill] sm:$0xff] %v5689_v28  ;;  %1804 = vmatpush.msra.mxu0 %v5707_v16  ;;  %v5713_v28 = vld [vmem:[%s6007_s1 + $0x210] sm:$0xff] }
 0x432   :  { %6851 = vst [vmem:[#allocation88_spill] sm:$0xff] %v5695_v55  ;;  %1824 = vmatpush.msra.mxu1 %v5713_v28  ;;  %v5719_v55 = vld [vmem:[%s6007_s1 + $0x18] sm:$0xff] }
 0x433   :  { %6852 = vst [vmem:[#allocation89_spill] sm:$0xff] %v5701_v35  ;;  %1844 = vmatpush.msra.mxu2 %v5719_v55  ;;  %v5725_v35 = vld [vmem:[%s6007_s1 + $0x218] sm:$0xff] }
 0x434   :  { %6853 = vst [vmem:[#allocation90_spill] sm:$0xff] %v5707_v16  ;;  %1864 = vmatpush.msra.mxu3 %v5725_v35  ;;  %v2361_v16 = vld [vmem:[%s6009_s0 + $0x58] sm:$0xff] }
 0x435   :  { %6854 = vst [vmem:[#allocation91_spill] sm:$0xff] %v5713_v28  ;;  %v1455_v28 = vld.sshfl [vmem:[#allocation1] sm:$0xff pattern:$0x75316420] }
 0x436   :  { %6855 = vst [vmem:[#allocation92_spill] sm:$0xff] %v5719_v55 }
 0x437   :  { %6856 = vst [vmem:[#allocation93_spill] sm:$0xff] %v5725_v35 }
 0x438   :  { %1454 = vst [vmem:[#allocation1 + $0x10] ss:$2 sm:$0xff] %v2361_v16 }
 0x43f   :  { %v1458_v61 = vld.sshfl [vmem:[#allocation1 + $0x18] sm:$0xff pattern:$0x75316420] }
 0x457   :  { %v1480_v51 = vpop.f32.mrf.mxu0  ;;  %v1500_v25 = vpop.f32.mrf.mxu1 }
 0x458   :  { %v1481_v6 = vadd.f32 %v1480_v51, %v1455_v28 }
 0x45a   :  { %v1501_v44 = vadd.f32 %v1500_v25, %v1481_v6  ;;  %v1457_v25 = vld.sshfl [vmem:[#allocation1 + $0x10] sm:$0xff pattern:$0x75316420] }
 0x45c   :  { %v2362_v62 = vmul.f32 -1.442695, %v1501_v44 }
 0x45e   :  { %2457 = vpow2.f32 %v2362_v62  ;;  %v1520_v55 = vpop.f32.mrf.mxu2  ;;  %v1540_v42 = vpop.f32.mrf.mxu3 }
 0x45f   :  { %v1521_v5 = vadd.f32 %v1520_v55, %v1456_v27  ;;  %v1560_v44 = vpop.f32.mrf.mxu0  ;;  %v1580_v55 = vpop.f32.mrf.mxu1 }
 0x460   :  { %v1561_v27 = vadd.f32 %v1560_v44, %v1457_v25 }
 0x461   :  { %v1541_v2 = vadd.f32 %v1540_v42, %v1521_v5 }
 0x463   :  { %v2363_v36 = vmul.f32 -1.442695, %v1541_v2 }
 0x464   :  { %v2458_v17 = vpop.eup %2457 }
 0x465   :  { %v1626_v35 = vadd.f32 1.0, %v2458_v17  ;;  %2459 = vpow2.f32 %v2363_v36  ;;  %v1581_v36 = vadd.f32 %v1580_v55, %v1561_v27 }
 0x466   :  { %v1600_v63 = vpop.f32.mrf.mxu2  ;;  %v1620_v10 = vpop.f32.mrf.mxu3 }
 0x467   :  { %2461 = vrcp.f32 %v1626_v35  ;;  %v1601_v16 = vadd.f32 %v1600_v63, %v1458_v61  ;;  %vm1632_vm14 = vweird.f32 %v1626_v35 }
 0x469   :  { %v1621_v20 = vadd.f32 %v1620_v10, %v1601_v16  ;;  %v1638_v10 = vand.u32 2147483648, %v1626_v35 }
 0x46b   :  { %v2460_v51 = vpop.eup %2459  ;;  %v2364_v6 = vmul.f32 -1.442695, %v1621_v20  ;;  %v1639_v27 = vor.u32 1.1754944e-38, %v1638_v10 }
 0x46c   :  { %v1645_v28 = vadd.f32 1.0, %v2460_v51  ;;  %v1636_v51 = vand.u32 2147483647, %v1626_v35 }
 0x46d   :  { %v2462_v62 = vpop.eup %2461 }
 0x46e   :  { %v1628_v21 = vmul.f32 %v2462_v62, %v1626_v35  ;;  %2463 = vrcp.f32 %v1645_v28  ;;  %vm1633_vm13 = vweird.f32 %v2462_v62  ;;  %v1657_v20 = vand.u32 2147483648, %v1645_v28 }
 0x46f   :  { %2465 = vpow2.f32 %v2364_v6  ;;  %vm1634_vm15 = vmor %vm1632_vm14, %vm1633_vm13  ;;  %v1655_v6 = vand.u32 2147483647, %v1645_v28  ;;  %vm1651_vm1 = vweird.f32 %v1645_v28  ;;  %vm1637_vm2 = vcmp.eq.f32.partialorder %v1636_v51, 8.507059e+37 }
 0x470   :  { %v1629_v42 = vsub.f32 1.0, %v1628_v21  ;;  %2467 = vtanh.f32 %v1581_v36  ;;  %v2365_v21 = vld [vmem:[%s6009_s0 + $0x60] sm:$0xff] }
 0x471   :  { %1698 = vst [vmem:[#allocation1] ss:$2 sm:$0xff] %v2365_v21  ;;  %vm1656_vm4 = vcmp.eq.f32.partialorder %v1655_v6, 8.507059e+37  ;;  %v6895_v6 = vld [vmem:[#allocation27_spill] sm:$0xff] }
 0x472   :  { %v1630_v5 = vmul.f32 %v2462_v62, %v1629_v42 }
 0x474   :  { %v2464_v2 = vpop.eup %2463  ;;  %v1631_v61 = vadd.f32 %v2462_v62, %v1630_v5 }
 0x475   :  { %v2466_v17 = vpop.eup %2465  ;;  %v1647_v38 = vmul.f32 %v2464_v2, %v1645_v28  ;;  %vm1652_vm0 = vweird.f32 %v2464_v2 }
 0x476   :  { %v1665_v63 = vadd.f32 1.0, %v2466_v17  ;;  %v1635_v44 = vsel %vm1634_vm15, %v2462_v62, %v1631_v61  ;;  %vm1653_vm3 = vmor %vm1651_vm1, %vm1652_vm0  ;;  %v2468_v55 = vpop.eup %2467 }
 0x477   :  { %v1648_v16 = vsub.f32 1.0, %v1647_v38  ;;  %v1658_v38 = vor.u32 1.1754944e-38, %v1657_v20  ;;  %v1640_v35 = vsel %vm1637_vm2, %v1639_v27, %v1635_v44  ;;  %v6896_v27 = vld [vmem:[#allocation58_spill] sm:$0xff] }
 0x478   :  { %2469 = vrcp.f32 %v1665_v63  ;;  %v1682_v59 = vmul.f32 %v2468_v55, %v1640_v35  ;;  %v1677_v61 = vand.u32 2147483648, %v1665_v63  ;;  %v1675_v10 = vand.u32 2147483647, %v1665_v63  ;;  %v6899_v35 = vld [vmem:[#allocation59_spill] sm:$0xff]  ;;  %v6900_v55 = vld [vmem:[#allocation26_spill] sm:$0xff] }
 0x479   :  { %v1649_v25 = vmul.f32 %v2464_v2, %v1648_v16  ;;  %vm1671_vm6 = vweird.f32 %v1665_v63 }
 0x47a   :  { %vm1676_vm8 = vcmp.eq.f32.partialorder %v1675_v10, 8.507059e+37  ;;  %v6908_v10 = vld [vmem:[#allocation30_spill] sm:$0xff] }
 0x47b   :  { %v1650_v42 = vadd.f32 %v2464_v2, %v1649_v25 }
 0x47d   :  { %v1654_v5 = vsel %vm1653_vm3, %v2464_v2, %v1650_v42  ;;  %v1678_v2 = vor.u32 1.1754944e-38, %v1677_v61  ;;  %v6897_v42 = vld [vmem:[#allocation8_spill] sm:$0xff]  ;;  %v6907_v61 = vld [vmem:[#allocation61_spill] sm:$0xff] }
 0x47e   :  { %v2470_v36 = vpop.eup %2469  ;;  %v1659_v17 = vsel %vm1656_vm4, %v1658_v38, %v1654_v5  ;;  %v6898_v38 = vld [vmem:[#allocation11_spill] sm:$0xff]  ;;  %v6901_v5 = vld [vmem:[#allocation12_spill] sm:$0xff] }
 0x47f   :  { %v1681_v1 = vmul.f32 %v1659_v17, %v5130_v24  ;;  %v1667_v16 = vmul.f32 %v2470_v36, %v1665_v63  ;;  %vm1672_vm5 = vweird.f32 %v2470_v36  ;;  %v6894_v63 = vld [vmem:[#allocation7_spill] sm:$0xff] }
 0x480   :  { %vm1673_vm7 = vmor %vm1671_vm6, %vm1672_vm5  ;;  %v6903_v17 = vld [vmem:[#allocation31_spill] sm:$0xff] }
 0x481   :  { %v5735_v8 = vadd.f32 %v1682_v59, %v1681_v1  ;;  %v1668_v62 = vsub.f32 1.0, %v1667_v16  ;;  %v6904_v16 = vld [vmem:[#allocation60_spill] sm:$0xff] }
 0x483   :  { %2471 = vtanh.f32 %v5735_v8  ;;  %v1669_v28 = vmul.f32 %v2470_v36, %v1668_v62  ;;  %v6905_v62 = vld [vmem:[#allocation16_spill] sm:$0xff] }
 0x485   :  { %v1670_v51 = vadd.f32 %v2470_v36, %v1669_v28  ;;  %v6906_v28 = vld [vmem:[#allocation14_spill] sm:$0xff] }
 0x487   :  { %v1674_v20 = vsel %vm1673_vm7, %v2470_v36, %v1670_v51  ;;  %v6902_v36 = vld [vmem:[#allocation15_spill] sm:$0xff] }
 0x488   :  { %v1679_v25 = vsel %vm1676_vm8, %v1678_v2, %v1674_v20  ;;  %v6909_v51 = vld [vmem:[#allocation35_spill] sm:$0xff]  ;;  %v6910_v2 = vld [vmem:[#allocation34_spill] sm:$0xff] }
 0x489   :  { %v2472_v21 = vpop.eup %2471  ;;  %v6911_v20 = vld [vmem:[#allocation62_spill] sm:$0xff] }
 0x48a   :  { %v1685_v24 = vmul.f32 %v2472_v21, %v1679_v25  ;;  %v6912_v21 = vld [vmem:[#allocation63_spill] sm:$0xff] }
 0x48b   :  { %v6913_v25 = vld [vmem:[#allocation39_spill] sm:$0xff] }
 0x48c   :  { %1686 = vst [vmem:[#allocation2 + $0x10] sm:$0x3] %v1685_v24  ;;  %v1688_v44 = vrot.slane %v1685_v24, 2  ;;  %v1691_v59 = vmul.f32 %v1685_v24, %v6476_v50  ;;  %v1692_v1 = vmul.f32 %v1685_v24, %v6477_v19  ;;  %v6914_v24 = vld [vmem:[#allocation38_spill] sm:$0xff] }
 0x48e   :  { %1690 = vst [vmem:[#allocation2 + $0x68] sm:$0x3] %v1688_v44  ;;  %1725 = vmatmul.f32.vlgmr.msrb.gmra.mxu0 %v1691_v59  ;;  %1745 = vmatmul.f32.vlgmr.msrb.gmra.mxu1 %v1692_v1  ;;  %v6915_v44 = vld [vmem:[#allocation64_spill] sm:$0xff] }
 0x48f   :  { %1765 = vmatmul.f32.vlgmr.msrb.gmra.mxu2 %v1691_v59  ;;  %1785 = vmatmul.f32.vlgmr.msrb.gmra.mxu3 %v1692_v1 }
 0x490   :  { %1955 = vmatpush.msrb.mxu0 %v4826_v52  ;;  %1975 = vmatpush.msrb.mxu1 %v4832_v13  ;;  %v6857_v52 = vld [vmem:[#allocation32_spill] sm:$0xff]  ;;  %v6858_v13 = vld [vmem:[#allocation50_spill] sm:$0xff] }
 0x491   :  { %1995 = vmatpush.msrb.mxu2 %v5140_v0  ;;  %2015 = vmatpush.msrb.mxu3 %v5146_v49  ;;  %v6876_v0 = vld [vmem:[#allocation9_spill] sm:$0xff]  ;;  %v6877_v49 = vld [vmem:[#allocation10_spill] sm:$0xff] }
 0x492   :  { %1956 = vmatpush.msrb.mxu0 %v4840_v12  ;;  %1976 = vmatpush.msrb.mxu1 %v4846_v4  ;;  %v6859_v12 = vld [vmem:[#allocation51_spill] sm:$0xff]  ;;  %v6860_v4 = vld [vmem:[#allocation40_spill] sm:$0xff] }
 0x493   :  { %1996 = vmatpush.msrb.mxu2 %v5154_v37  ;;  %2016 = vmatpush.msrb.mxu3 %v5160_v53  ;;  %v6878_v37 = vld [vmem:[#allocation28_spill] sm:$0xff]  ;;  %v6879_v53 = vld [vmem:[#allocation17_spill] sm:$0xff] }
 0x494   :  { %1957 = vmatpush.msrb.mxu0 %v4854_v48  ;;  %1977 = vmatpush.msrb.mxu1 %v4860_v15  ;;  %v6861_v48 = vld [vmem:[#allocation21_spill] sm:$0xff] }
 0x495   :  { %1997 = vmatpush.msrb.mxu2 %v5168_v22  ;;  %2017 = vmatpush.msrb.mxu3 %v5174_v43  ;;  %v6862_v15 = vld [vmem:[#allocation13_spill] sm:$0xff]  ;;  %v6880_v22 = vld [vmem:[#allocation20_spill] sm:$0xff]  ;;  %v6881_v43 = vld [vmem:[#allocation54_spill] sm:$0xff] }
 0x496   :  { %1805 = vmatmul.f32.vlgmr.msra.gmra.mxu0 %v1691_v59  ;;  %1825 = vmatmul.f32.vlgmr.msra.gmra.mxu1 %v1692_v1 }
 0x497   :  { %1845 = vmatmul.f32.vlgmr.msra.gmra.mxu2 %v1691_v59  ;;  %1865 = vmatmul.f32.vlgmr.msra.gmra.mxu3 %v1692_v1  ;;  %v6916_v59 = vld [vmem:[#allocation65_spill] sm:$0xff]  ;;  %v6917_v1 = vld [vmem:[#allocation43_spill] sm:$0xff] }
 0x498   :  { %1958 = vmatpush.msrb.mxu0 %v4868_v39  ;;  %1978 = vmatpush.msrb.mxu1 %v4874_v34  ;;  %v6863_v39 = vld [vmem:[#allocation18_spill] sm:$0xff]  ;;  %v6864_v34 = vld [vmem:[#allocation52_spill] sm:$0xff] }
 0x499   :  { %1998 = vmatpush.msrb.mxu2 %v5182_v40  ;;  %2018 = vmatpush.msrb.mxu3 %v5188_v57  ;;  %v6882_v40 = vld [vmem:[#allocation24_spill] sm:$0xff]  ;;  %v6883_v57 = vld [vmem:[#allocation55_spill] sm:$0xff] }
 0x49a   :  { %1959 = vmatpush.msrb.mxu0 %v4882_v29  ;;  %1979 = vmatpush.msrb.mxu1 %v4888_v7  ;;  %v6865_v29 = vld [vmem:[#allocation53_spill] sm:$0xff] }
 0x49b   :  { %1999 = vmatpush.msrb.mxu2 %v5196_v58  ;;  %2019 = vmatpush.msrb.mxu3 %v5202_v11  ;;  %v6866_v7 = vld [vmem:[#allocation25_spill] sm:$0xff]  ;;  %v6884_v58 = vld [vmem:[#allocation19_spill] sm:$0xff]  ;;  %v6885_v11 = vld [vmem:[#allocation44_spill] sm:$0xff] }
 0x49c   :  { %1960 = vmatpush.msrb.mxu0 %v4896_v26  ;;  %1980 = vmatpush.msrb.mxu1 %v4902_v33  ;;  %v6867_v26 = vld [vmem:[#allocation29_spill] sm:$0xff] }
 0x49d   :  { %2000 = vmatpush.msrb.mxu2 %v5210_v14  ;;  %2020 = vmatpush.msrb.mxu3 %v5216_v31  ;;  %v6868_v33 = vld [vmem:[#allocation33_spill] sm:$0xff]  ;;  %v6886_v14 = vld [vmem:[#allocation3_spill] sm:$0xff] }
 0x49e   :  { %1961 = vmatpush.msrb.mxu0 %v4910_v30  ;;  %1981 = vmatpush.msrb.mxu1 %v4916_v56  ;;  %v6869_v30 = vld [vmem:[#allocation36_spill] sm:$0xff]  ;;  %v6870_v56 = vld [vmem:[#allocation37_spill] sm:$0xff]  ;;  %v6887_v31 = vld [vmem:[#allocation23_spill] sm:$0xff] }
 0x49f   :  { %2001 = vmatpush.msrb.mxu2 %v5224_v32  ;;  %2021 = vmatpush.msrb.mxu3 %v5230_v18  ;;  %v6888_v32 = vld [vmem:[#allocation56_spill] sm:$0xff] }
 0x4a0   :  { %1962 = vmatpush.msrb.mxu0 %v4924_v23  ;;  %1982 = vmatpush.msrb.mxu1 %v4930_v46  ;;  %v6871_v23 = vld [vmem:[#allocation41_spill] sm:$0xff]  ;;  %v6872_v46 = vld [vmem:[#allocation46_spill] sm:$0xff]  ;;  %v6889_v18 = vld [vmem:[#allocation4_spill] sm:$0xff] }
 0x4a1   :  { %2002 = vmatpush.msrb.mxu2 %v5238_v47  ;;  %2022 = vmatpush.msrb.mxu3 %v5244_v3  ;;  %v6890_v47 = vld [vmem:[#allocation5_spill] sm:$0xff] }
 0x4a2   :  { %1963 = vmatpush.msrb.mxu0 %v4938_v41  ;;  %1983 = vmatpush.msrb.mxu1 %v4944_v60  ;;  %v6873_v41 = vld [vmem:[#allocation47_spill] sm:$0xff]  ;;  %v6874_v60 = vld [vmem:[#allocation48_spill] sm:$0xff]  ;;  %v6891_v3 = vld [vmem:[#allocation57_spill] sm:$0xff] }
 0x4a3   :  { %2003 = vmatpush.msrb.mxu2 %v5252_v9  ;;  %2023 = vmatpush.msrb.mxu3 %v5258_v54  ;;  %v6892_v9 = vld [vmem:[#allocation22_spill] sm:$0xff] }
 0x4a4   :  { %1964 = vmatpush.msrb.mxu0 %v4952_v45  ;;  %1984 = vmatpush.msrb.mxu1 %v6857_v52  ;;  %v6875_v45 = vld [vmem:[#allocation49_spill] sm:$0xff]  ;;  %v6893_v54 = vld [vmem:[#allocation6_spill] sm:$0xff] }
 0x4a5   :  { %2004 = vmatpush.msrb.mxu2 %v6858_v13  ;;  %2024 = vmatpush.msrb.mxu3 %v6859_v12  ;;  %v6918_v52 = vld [vmem:[#allocation42_spill] sm:$0xff]  ;;  %v6920_v12 = vld [vmem:[#allocation67_spill] sm:$0xff] }
 0x4a6   :  { %1965 = vmatpush.msrb.mxu0 %v6860_v4  ;;  %1985 = vmatpush.msrb.mxu1 %v6861_v48  ;;  %v6919_v13 = vld [vmem:[#allocation66_spill] sm:$0xff]  ;;  %v6921_v4 = vld [vmem:[#allocation45_spill] sm:$0xff] }
 0x4a7   :  { %2005 = vmatpush.msrb.mxu2 %v6862_v15  ;;  %2025 = vmatpush.msrb.mxu3 %v6863_v39  ;;  %v6922_v48 = vld [vmem:[#allocation70_spill] sm:$0xff]  ;;  %v6923_v15 = vld [vmem:[#allocation68_spill] sm:$0xff]  ;;  %v6924_v39 = vld [vmem:[#allocation69_spill] sm:$0xff] }
 0x4a8   :  { %1966 = vmatpush.msrb.mxu0 %v6864_v34  ;;  %1986 = vmatpush.msrb.mxu1 %v6865_v29  ;;  %v6925_v34 = vld [vmem:[#allocation71_spill] sm:$0xff]  ;;  %v6926_v29 = vld [vmem:[#allocation74_spill] sm:$0xff] }
 0x4a9   :  { %2006 = vmatpush.msrb.mxu2 %v6866_v7  ;;  %2026 = vmatpush.msrb.mxu3 %v6867_v26  ;;  %v6927_v7 = vld [vmem:[#allocation72_spill] sm:$0xff]  ;;  %v6928_v26 = vld [vmem:[#allocation73_spill] sm:$0xff] }
 0x4aa   :  { %1967 = vmatpush.msrb.mxu0 %v6868_v33  ;;  %1987 = vmatpush.msrb.mxu1 %v6869_v30  ;;  %v6929_v33 = vld [vmem:[#allocation75_spill] sm:$0xff]  ;;  %v6930_v30 = vld [vmem:[#allocation78_spill] sm:$0xff] }
 0x4ab   :  { %2007 = vmatpush.msrb.mxu2 %v6870_v56  ;;  %2027 = vmatpush.msrb.mxu3 %v6871_v23  ;;  %v6931_v56 = vld [vmem:[#allocation76_spill] sm:$0xff]  ;;  %v6932_v23 = vld [vmem:[#allocation77_spill] sm:$0xff] }
 0x4ac   :  { %1968 = vmatpush.msrb.mxu0 %v6872_v46  ;;  %1988 = vmatpush.msrb.mxu1 %v6873_v41  ;;  %v6933_v46 = vld [vmem:[#allocation79_spill] sm:$0xff]  ;;  %v6934_v41 = vld [vmem:[#allocation82_spill] sm:$0xff] }
 0x4ad   :  { %2008 = vmatpush.msrb.mxu2 %v6874_v60  ;;  %2028 = vmatpush.msrb.mxu3 %v6875_v45  ;;  %v6935_v60 = vld [vmem:[#allocation80_spill] sm:$0xff]  ;;  %v6936_v45 = vld [vmem:[#allocation81_spill] sm:$0xff] }
 0x4ae   :  { %1969 = vmatpush.msrb.mxu0 %v6876_v0  ;;  %1989 = vmatpush.msrb.mxu1 %v6877_v49  ;;  %v6937_v0 = vld [vmem:[#allocation83_spill] sm:$0xff]  ;;  %v6938_v49 = vld [vmem:[#allocation86_spill] sm:$0xff] }
 0x4af   :  { %2009 = vmatpush.msrb.mxu2 %v6878_v37  ;;  %2029 = vmatpush.msrb.mxu3 %v6879_v53  ;;  %v6939_v37 = vld [vmem:[#allocation84_spill] sm:$0xff]  ;;  %v6940_v53 = vld [vmem:[#allocation85_spill] sm:$0xff] }
 0x4b0   :  { %1970 = vmatpush.msrb.mxu0 %v6880_v22  ;;  %1990 = vmatpush.msrb.mxu1 %v6881_v43  ;;  %v6941_v22 = vld [vmem:[#allocation87_spill] sm:$0xff]  ;;  %v6942_v43 = vld [vmem:[#allocation90_spill] sm:$0xff] }
 0x4b1   :  { %2010 = vmatpush.msrb.mxu2 %v6883_v57  ;;  %2030 = vmatpush.msrb.mxu3 %v6884_v58  ;;  %v6944_v57 = vld [vmem:[#allocation89_spill] sm:$0xff]  ;;  %v6945_v58 = vld [vmem:[#allocation91_spill] sm:$0xff] }
 0x4b2   :  { %2035 = vmatpush.msra.mxu0 %v6882_v40  ;;  %2055 = vmatpush.msra.mxu1 %v6885_v11  ;;  %v6943_v40 = vld [vmem:[#allocation88_spill] sm:$0xff] }
 0x4b3   :  { %2075 = vmatpush.msra.mxu2 %v6887_v31  ;;  %2095 = vmatpush.msra.mxu3 %v6888_v32  ;;  %v6946_v11 = vld [vmem:[#allocation92_spill] sm:$0xff]  ;;  %v2366_v31 = vld [vmem:[%s6009_s0 + $0x68] sm:$0xff]  ;;  %v1701_v32 = vld.sshfl [vmem:[#allocation1] sm:$0xff pattern:$0x75316420] }
 0x4b4   :  { %2036 = vmatpush.msra.mxu0 %v6886_v14  ;;  %2056 = vmatpush.msra.mxu1 %v6889_v18  ;;  %v6947_v14 = vld [vmem:[#allocation93_spill] sm:$0xff]  ;;  %1700 = vst [vmem:[#allocation1 + $0x10] ss:$2 sm:$0xff] %v2366_v31 }
 0x4b5   :  { %2076 = vmatpush.msra.mxu2 %v6891_v3  ;;  %2096 = vmatpush.msra.mxu3 %v6892_v9 }
 0x4b6   :  { %2037 = vmatpush.msra.mxu0 %v6890_v47  ;;  %2057 = vmatpush.msra.mxu1 %v6893_v54 }
 0x4b7   :  { %2077 = vmatpush.msra.mxu2 %v6895_v6  ;;  %2097 = vmatpush.msra.mxu3 %v6896_v27 }
 0x4b8   :  { %2038 = vmatpush.msra.mxu0 %v6894_v63  ;;  %2058 = vmatpush.msra.mxu1 %v6897_v42  ;;  %v1702_v63 = vld.sshfl [vmem:[#allocation1 + $0x8] sm:$0xff pattern:$0x75316420] }
 0x4b9   :  { %2078 = vmatpush.msra.mxu2 %v6899_v35  ;;  %2098 = vmatpush.msra.mxu3 %v6900_v55 }
 0x4ba   :  { %2039 = vmatpush.msra.mxu0 %v6898_v38  ;;  %2059 = vmatpush.msra.mxu1 %v6901_v5 }
 0x4bb   :  { %2079 = vmatpush.msra.mxu2 %v6903_v17  ;;  %2099 = vmatpush.msra.mxu3 %v6904_v16 }
 0x4bc   :  { %2040 = vmatpush.msra.mxu0 %v6902_v36  ;;  %2060 = vmatpush.msra.mxu1 %v6905_v62  ;;  %v1704_v36 = vld.sshfl [vmem:[#allocation1 + $0x18] sm:$0xff pattern:$0x75316420] }
 0x4bd   :  { %2080 = vmatpush.msra.mxu2 %v6907_v61  ;;  %2100 = vmatpush.msra.mxu3 %v6908_v10 }
 0x4be   :  { %2041 = vmatpush.msra.mxu0 %v6906_v28  ;;  %2061 = vmatpush.msra.mxu1 %v6909_v51  ;;  %v1703_v51 = vld.sshfl [vmem:[#allocation1 + $0x10] sm:$0xff pattern:$0x75316420] }
 0x4bf   :  { %2081 = vmatpush.msra.mxu2 %v6911_v20  ;;  %2101 = vmatpush.msra.mxu3 %v6912_v21 }
 0x4c0   :  { %2042 = vmatpush.msra.mxu0 %v6910_v2  ;;  %2062 = vmatpush.msra.mxu1 %v6913_v25 }
 0x4c1   :  { %2082 = vmatpush.msra.mxu2 %v6915_v44  ;;  %2102 = vmatpush.msra.mxu3 %v6916_v59 }
 0x4c2   :  { %2043 = vmatpush.msra.mxu0 %v6914_v24  ;;  %2063 = vmatpush.msra.mxu1 %v6917_v1 }
 0x4c3   :  { %2083 = vmatpush.msra.mxu2 %v6919_v13  ;;  %2103 = vmatpush.msra.mxu3 %v6920_v12 }
 0x4c4   :  { %2044 = vmatpush.msra.mxu0 %v6918_v52  ;;  %2064 = vmatpush.msra.mxu1 %v6921_v4 }
 0x4c5   :  { %2084 = vmatpush.msra.mxu2 %v6923_v15  ;;  %2104 = vmatpush.msra.mxu3 %v6924_v39 }
 0x4c6   :  { %2045 = vmatpush.msra.mxu0 %v6922_v48  ;;  %2065 = vmatpush.msra.mxu1 %v6925_v34 }
 0x4c7   :  { %2085 = vmatpush.msra.mxu2 %v6927_v7  ;;  %2105 = vmatpush.msra.mxu3 %v6928_v26 }
 0x4c8   :  { %2046 = vmatpush.msra.mxu0 %v6926_v29  ;;  %2066 = vmatpush.msra.mxu1 %v6929_v33 }
 0x4c9   :  { %2086 = vmatpush.msra.mxu2 %v6931_v56  ;;  %2106 = vmatpush.msra.mxu3 %v6932_v23 }
 0x4ca   :  { %2047 = vmatpush.msra.mxu0 %v6930_v30  ;;  %2067 = vmatpush.msra.mxu1 %v6933_v46 }
 0x4cb   :  { %2087 = vmatpush.msra.mxu2 %v6935_v60  ;;  %2107 = vmatpush.msra.mxu3 %v6936_v45 }
 0x4cc   :  { %2048 = vmatpush.msra.mxu0 %v6934_v41  ;;  %2068 = vmatpush.msra.mxu1 %v6937_v0 }
 0x4cd   :  { %2088 = vmatpush.msra.mxu2 %v6939_v37  ;;  %2108 = vmatpush.msra.mxu3 %v6940_v53 }
 0x4ce   :  { %2049 = vmatpush.msra.mxu0 %v6938_v49  ;;  %2069 = vmatpush.msra.mxu1 %v6941_v22 }
 0x4cf   :  { %2089 = vmatpush.msra.mxu2 %v6943_v40  ;;  %2109 = vmatpush.msra.mxu3 %v6944_v57 }
 0x4d0   :  { %2050 = vmatpush.msra.mxu0 %v6942_v43  ;;  %2070 = vmatpush.msra.mxu1 %v6945_v58 }
 0x4d1   :  { %2090 = vmatpush.msra.mxu2 %v6946_v11  ;;  %2110 = vmatpush.msra.mxu3 %v6947_v14 }
 0x50b   :  { %v1726_v18 = vpop.f32.mrf.mxu0  ;;  %v1746_v3 = vpop.f32.mrf.mxu1 }
 0x50c   :  { %v1727_v47 = vadd.f32 %v1726_v18, %v1701_v32 }
 0x50e   :  { %v1747_v9 = vadd.f32 %v1746_v3, %v1727_v47 }
 0x510   :  { %v2367_v54 = vmul.f32 -1.442695, %v1747_v9 }
 0x512   :  { %2473 = vpow2.f32 %v2367_v54  ;;  %v1766_v6 = vpop.f32.mrf.mxu2  ;;  %v1786_v42 = vpop.f32.mrf.mxu3 }
 0x513   :  { %v1767_v27 = vadd.f32 %v1766_v6, %v1702_v63  ;;  %v1806_v2 = vpop.f32.mrf.mxu0  ;;  %v1826_v59 = vpop.f32.mrf.mxu1  ;;  %v2214_v63 = vld [vmem:[%s6011_s4 + $0x78] sm:$0xff]  ;;  %v2213_v6 = vld [vmem:[%s6011_s4 + $0x70] sm:$0xff] }
 0x514   :  { %v1807_v24 = vadd.f32 %v1806_v2, %v1703_v51  ;;  %v2185_v51 = vld [vmem:[#allocation2 + $0x58] sm:$0xff]  ;;  %v2187_v2 = vld [vmem:[#allocation2 + $0x50] sm:$0xff] }
 0x515   :  { %v1787_v38 = vadd.f32 %v1786_v42, %v1767_v27  ;;  %v2210_v27 = vld [vmem:[%s6011_s4 + $0x58] sm:$0xff]  ;;  %v2209_v42 = vld [vmem:[%s6011_s4 + $0x50] sm:$0xff] }
 0x516   :  { %v1827_v52 = vadd.f32 %v1826_v59, %v1807_v24  ;;  %v2193_v24 = vld [vmem:[#allocation2 + $0x10] sm:$0xff] }
 0x517   :  { %v2368_v35 = vmul.f32 -1.442695, %v1787_v38  ;;  %v2208_v38 = vld [vmem:[%s6011_s4 + $0x48] sm:$0xff]  ;;  %v2371_v59 = vld [vmem:[%s6009_s0 + $0x78] sm:$0xff] }
 0x518   :  { %v2474_v55 = vpop.eup %2473  ;;  %1946 = vst [vmem:[#allocation1 + $0x10] ss:$2 sm:$0xff] %v2371_v59 }
 0x519   :  { %v1872_v5 = vadd.f32 1.0, %v2474_v55  ;;  %2475 = vpow2.f32 %v2368_v35  ;;  %v2207_v35 = vld [vmem:[%s6011_s4 + $0x40] sm:$0xff]  ;;  %v2206_v55 = vld [vmem:[%s6011_s4 + $0x38] sm:$0xff] }
 0x51a   :  { %v1846_v17 = vpop.f32.mrf.mxu2  ;;  %v1866_v62 = vpop.f32.mrf.mxu3 }
 0x51b   :  { %2477 = vrcp.f32 %v1872_v5  ;;  %v1847_v16 = vadd.f32 %v1846_v17, %v1704_v36  ;;  %v1884_v15 = vand.u32 2147483648, %v1872_v5  ;;  %vm1878_vm10 = vweird.f32 %v1872_v5  ;;  %v2204_v36 = vld [vmem:[%s6011_s4 + $0x28] sm:$0xff]  ;;  %v2203_v17 = vld [vmem:[%s6011_s4 + $0x20] sm:$0xff] }
 0x51c   :  { %v1882_v29 = vand.u32 2147483647, %v1872_v5 }
 0x51d   :  { %v1867_v28 = vadd.f32 %v1866_v62, %v1847_v16  ;;  %v1885_v56 = vor.u32 1.1754944e-38, %v1884_v15  ;;  %v2202_v16 = vld [vmem:[%s6011_s4 + $0x18] sm:$0xff]  ;;  %v2201_v62 = vld [vmem:[%s6011_s4 + $0x10] sm:$0xff] }
 0x51e   :  { %vm1883_vm14 = vcmp.eq.f32.partialorder %v1882_v29, 8.507059e+37  ;;  %v2229_v15 = vld [vmem:[%s6011_s4 + $0xf0] sm:$0xff]  ;;  %v2228_v29 = vld [vmem:[%s6011_s4 + $0xe8] sm:$0xff] }
 0x51f   :  { %v2476_v61 = vpop.eup %2475  ;;  %v2369_v20 = vmul.f32 -1.442695, %v1867_v28  ;;  %v2200_v28 = vld [vmem:[%s6011_s4 + $0x8] sm:$0xff] }
 0x520   :  { %v1891_v10 = vadd.f32 1.0, %v2476_v61  ;;  %v2199_v61 = vld [vmem:[%s6011_s4] sm:$0xff] }
 0x521   :  { %v2478_v21 = vpop.eup %2477 }
 0x522   :  { %v1874_v25 = vmul.f32 %v2478_v21, %v1872_v5  ;;  %2479 = vrcp.f32 %v1891_v10  ;;  %vm1879_vm9 = vweird.f32 %v2478_v21  ;;  %v1903_v7 = vand.u32 2147483648, %v1891_v10  ;;  %v2205_v5 = vld [vmem:[%s6011_s4 + $0x30] sm:$0xff] }
 0x523   :  { %2481 = vpow2.f32 %v2369_v20  ;;  %vm1880_vm11 = vmor %vm1878_vm10, %vm1879_vm9  ;;  %v1901_v30 = vand.u32 2147483647, %v1891_v10  ;;  %vm1897_vm13 = vweird.f32 %v1891_v10  ;;  %v2370_v20 = vld [vmem:[%s6009_s0 + $0x70] sm:$0xff] }
 0x524   :  { %v1875_v44 = vsub.f32 1.0, %v1874_v25  ;;  %2483 = vtanh.f32 %v1827_v52  ;;  %v1904_v46 = vor.u32 1.1754944e-38, %v1903_v7  ;;  %1944 = vst [vmem:[#allocation1] ss:$2 sm:$0xff] %v2370_v20  ;;  %v2191_v25 = vld [vmem:[#allocation2 + $0x40] sm:$0xff] }
 0x525   :  { %vm1902_vm0 = vcmp.eq.f32.partialorder %v1901_v30, 8.507059e+37  ;;  %v2227_v30 = vld [vmem:[%s6011_s4 + $0xe0] sm:$0xff] }
 0x526   :  { %v1876_v1 = vmul.f32 %v2478_v21, %v1875_v44 }
 0x528   :  { %v2480_v13 = vpop.eup %2479  ;;  %v1877_v48 = vadd.f32 %v2478_v21, %v1876_v1 }
 0x529   :  { %v2482_v12 = vpop.eup %2481  ;;  %v1893_v4 = vmul.f32 %v2480_v13, %v1891_v10  ;;  %vm1898_vm12 = vweird.f32 %v2480_v13  ;;  %v2183_v10 = vld [vmem:[#allocation2 + $0x30] sm:$0xff] }
 0x52a   :  { %v1911_v39 = vadd.f32 1.0, %v2482_v12  ;;  %v1881_v33 = vsel %vm1880_vm11, %v2478_v21, %v1877_v48  ;;  %vm1899_vm15 = vmor %vm1897_vm13, %vm1898_vm12  ;;  %v2484_v60 = vpop.eup %2483  ;;  %v2189_v21 = vld [vmem:[#allocation2 + $0x8] sm:$0xff] }
 0x52b   :  { %v1894_v34 = vsub.f32 1.0, %v1893_v4  ;;  %v1886_v41 = vsel %vm1883_vm14, %v1885_v56, %v1881_v33  ;;  %v1947_v1 = vld.sshfl [vmem:[#allocation1] sm:$0xff pattern:$0x75316420]  ;;  %v2230_v4 = vld [vmem:[%s6011_s4 + $0xf8] sm:$0xff] }
 0x52c   :  { %2485 = vrcp.f32 %v1911_v39  ;;  %v1928_v53 = vmul.f32 %v2484_v60, %v1886_v41  ;;  %v1923_v58 = vand.u32 2147483648, %v1911_v39  ;;  %v1921_v11 = vand.u32 2147483647, %v1911_v39  ;;  %v2225_v41 = vld [vmem:[%s6011_s4 + $0xd0] sm:$0xff] }
 0x52d   :  { %v1895_v26 = vmul.f32 %v2480_v13, %v1894_v34  ;;  %vm1917_vm2 = vweird.f32 %v1911_v39  ;;  %v1948_v34 = vld.sshfl [vmem:[#allocation1 + $0x8] sm:$0xff pattern:$0x75316420] }
 0x52e   :  { %v1924_v31 = vor.u32 1.1754944e-38, %v1923_v58  ;;  %vm1922_vm4 = vcmp.eq.f32.partialorder %v1921_v11, 8.507059e+37 }
 0x52f   :  { %v1896_v23 = vadd.f32 %v2480_v13, %v1895_v26 }
 0x531   :  { %v1900_v45 = vsel %vm1899_vm15, %v2480_v13, %v1896_v23  ;;  %v2226_v23 = vld [vmem:[%s6011_s4 + $0xd8] sm:$0xff] }
 0x532   :  { %v2486_v0 = vpop.eup %2485  ;;  %v1905_v49 = vsel %vm1902_vm0, %v1904_v46, %v1900_v45 }
 0x533   :  { %v1927_v37 = vmul.f32 %v1905_v49, %v5735_v8  ;;  %v1913_v22 = vmul.f32 %v2486_v0, %v1911_v39  ;;  %vm1918_vm1 = vweird.f32 %v2486_v0  ;;  %v2224_v49 = vld [vmem:[%s6011_s4 + $0xc8] sm:$0xff] }
 0x534   :  { %vm1919_vm3 = vmor %vm1917_vm2, %vm1918_vm1 }
 0x535   :  { %v5872_v43 = vadd.f32 %v1928_v53, %v1927_v37  ;;  %v1914_v40 = vsub.f32 1.0, %v1913_v22  ;;  %v2223_v53 = vld [vmem:[%s6011_s4 + $0xc0] sm:$0xff] }
 0x537   :  { %2487 = vtanh.f32 %v5872_v43  ;;  %v1915_v57 = vmul.f32 %v2486_v0, %v1914_v40 }
 0x539   :  { %v1916_v14 = vadd.f32 %v2486_v0, %v1915_v57  ;;  %v2222_v57 = vld [vmem:[%s6011_s4 + $0xb8] sm:$0xff] }
 0x53b   :  { %v1920_v32 = vsel %vm1919_vm3, %v2486_v0, %v1916_v14  ;;  %v1950_v0 = vld.sshfl [vmem:[#allocation1 + $0x18] sm:$0xff pattern:$0x75316420]  ;;  %v2221_v14 = vld [vmem:[%s6011_s4 + $0xb0] sm:$0xff] }
 0x53c   :  { %v1925_v47 = vsel %vm1922_vm4, %v1924_v31, %v1920_v32  ;;  %v1949_v32 = vld.sshfl [vmem:[#allocation1 + $0x10] sm:$0xff pattern:$0x75316420] }
 0x53d   :  { %v2488_v18 = vpop.eup %2487 }
 0x53e   :  { %v1931_v8 = vmul.f32 %v2488_v18, %v1925_v47 }
 0x540   :  { %1932 = vst [vmem:[#allocation2 + $0x60] sm:$0x3] %v1931_v8  ;;  %v1934_v3 = vrot.slane %v1931_v8, 2  ;;  %v1937_v9 = vmul.f32 %v1931_v8, %v6476_v50  ;;  %v1938_v54 = vmul.f32 %v1931_v8, %v6477_v19  ;;  %v2212_v50 = vld [vmem:[%s6011_s4 + $0x68] sm:$0xff]  ;;  %v2211_v19 = vld [vmem:[%s6011_s4 + $0x60] sm:$0xff] }
 0x542   :  { %1936 = vst [vmem:[#allocation2 + $0x18] sm:$0x3] %v1934_v3  ;;  %1971 = vmatmul.f32.vlgmr.msrb.gmra.mxu0 %v1937_v9  ;;  %1991 = vmatmul.f32.vlgmr.msrb.gmra.mxu1 %v1938_v54  ;;  %v2220_v3 = vld [vmem:[%s6011_s4 + $0xa8] sm:$0xff] }
 0x543   :  { %2011 = vmatmul.f32.vlgmr.msrb.gmra.mxu2 %v1937_v9  ;;  %2031 = vmatmul.f32.vlgmr.msrb.gmra.mxu3 %v1938_v54 }
 0x544   :  { %2235 = vmatpush.msrb.mxu0 %v2214_v63  ;;  %2276 = vmatpush.msrb.mxu1 %v2230_v4 }
 0x546   :  { %2236 = vmatpush.msrb.mxu0 %v2213_v6  ;;  %2277 = vmatpush.msrb.mxu1 %v2229_v15 }
 0x547   :  { %v2195_v44 = vld [vmem:[#allocation2 + $0x60] sm:$0xff] }
 0x548   :  { %2237 = vmatpush.msrb.mxu0 %v2212_v50  ;;  %2278 = vmatpush.msrb.mxu1 %v2228_v29  ;;  %v2218_v50 = vld [vmem:[%s6011_s4 + $0x98] sm:$0xff] }
 0x54a   :  { %2238 = vmatpush.msrb.mxu0 %v2211_v19  ;;  %2071 = vmatmul.f32.vlgmr.msra.gmra.mxu1 %v1938_v54  ;;  %v2217_v19 = vld [vmem:[%s6011_s4 + $0x90] sm:$0xff] }
 0x54b   :  { %2051 = vmatmul.f32.vlgmr.msra.gmra.mxu0 %v1937_v9  ;;  %2091 = vmatmul.f32.vlgmr.msra.gmra.mxu2 %v1937_v9 }
 0x54c   :  { %2111 = vmatmul.f32.vlgmr.msra.gmra.mxu3 %v1938_v54  ;;  %2239 = vmatpush.msrb.mxu0 %v2210_v27  ;;  %v2219_v54 = vld [vmem:[%s6011_s4 + $0xa0] sm:$0xff] }
 0x54d   :  { %2279 = vmatpush.msrb.mxu1 %v2227_v30 }
 0x54e   :  { %2240 = vmatpush.msrb.mxu0 %v2209_v42 }
 0x54f   :  { %2280 = vmatpush.msrb.mxu1 %v2226_v23 }
 0x550   :  { %2241 = vmatpush.msrb.mxu0 %v2208_v38 }
 0x551   :  { %2281 = vmatpush.msrb.mxu1 %v2225_v41 }
 0x552   :  { %2242 = vmatpush.msrb.mxu0 %v2207_v35  ;;  %v2216_v35 = vld [vmem:[%s6011_s4 + $0x88] sm:$0xff] }
 0x553   :  { %2282 = vmatpush.msrb.mxu1 %v2224_v49  ;;  %v2188_v49 = vld [vmem:[#allocation2 + $0x68] sm:$0xff] }
 0x554   :  { %2243 = vmatpush.msrb.mxu0 %v2206_v55 }
 0x555   :  { %2283 = vmatpush.msrb.mxu1 %v2223_v53  ;;  %v2192_v53 = vld [vmem:[#allocation2 + $0x20] sm:$0xff] }
 0x556   :  { %2244 = vmatpush.msrb.mxu0 %v2205_v5 }
 0x557   :  { %2284 = vmatpush.msrb.mxu1 %v2222_v57  ;;  %v2198_v57 = vld [vmem:[#allocation2 + $0x28] sm:$0xff] }
 0x558   :  { %2245 = vmatpush.msrb.mxu0 %v2204_v36 }
 0x559   :  { %2285 = vmatpush.msrb.mxu1 %v2221_v14  ;;  %v2376_v14 = vld [vmem:[%s6012_s5] ss:$0 sm:$0xff] }
 0x55a   :  { %2246 = vmatpush.msrb.mxu0 %v2203_v17 }
 0x55b   :  { %2286 = vmatpush.msrb.mxu1 %v2220_v3 }
 0x55c   :  { %2247 = vmatpush.msrb.mxu0 %v2202_v16  ;;  %v2215_v16 = vld [vmem:[%s6011_s4 + $0x80] sm:$0xff] }
 0x55d   :  { %2287 = vmatpush.msrb.mxu1 %v2219_v54 }
 0x55e   :  { %2248 = vmatpush.msrb.mxu0 %v2201_v62 }
 0x55f   :  { %2288 = vmatpush.msrb.mxu1 %v2218_v50 }
 0x560   :  { %2249 = vmatpush.msrb.mxu0 %v2200_v28 }
 0x561   :  { %2289 = vmatpush.msrb.mxu1 %v2217_v19 }
 0x562   :  { %2250 = vmatpush.msrb.mxu0 %v2199_v61 }
 0x563   :  { %2251 = vmatmul.f32.vlgmr.msrb.gmra.mxu0 %v2183_v10  ;;  %2290 = vmatpush.msrb.mxu1 %v2216_v35 }
 0x565   :  { %2291 = vmatpush.msrb.mxu1 %v2215_v16 }
 0x56b   :  { %2254 = vmatmul.f32.gmra.mxu0 %v2185_v51 }
 0x573   :  { %2257 = vmatmul.f32.gmra.mxu0 %v2187_v2 }
 0x57b   :  { %2260 = vmatmul.f32.gmra.mxu0 %v2189_v21 }
 0x583   :  { %2263 = vmatmul.f32.gmra.mxu0 %v2191_v25 }
 0x58b   :  { %2266 = vmatmul.f32.gmra.mxu0 %v2193_v24 }
 0x593   :  { %2269 = vmatmul.f32.gmra.mxu0 %v2195_v44 }
 0x5bf   :  { %v1972_v52 = vpop.f32.mrf.mxu0  ;;  %v1992_v12 = vpop.f32.mrf.mxu1 }
 0x5c0   :  { %v1973_v13 = vadd.f32 %v1972_v52, %v1947_v1 }
 0x5c2   :  { %v1993_v48 = vadd.f32 %v1992_v12, %v1973_v13 }
 0x5c4   :  { %v2372_v39 = vmul.f32 -1.442695, %v1993_v48 }
 0x5c6   :  { %2489 = vpow2.f32 %v2372_v39  ;;  %v2012_v7 = vpop.f32.mrf.mxu2  ;;  %v2032_v33 = vpop.f32.mrf.mxu3 }
 0x5c7   :  { %v2013_v26 = vadd.f32 %v2012_v7, %v1948_v34  ;;  %v2072_v27 = vpop.f32.mrf.mxu1 }
 0x5c8   :  { %v2052_v18 = vpop.f32.mrf.mxu0 }
 0x5c9   :  { %v2033_v56 = vadd.f32 %v2032_v33, %v2013_v26  ;;  %v2053_v63 = vadd.f32 %v2052_v18, %v1949_v32 }
 0x5cb   :  { %v2373_v46 = vmul.f32 -1.442695, %v2033_v56  ;;  %v2073_v38 = vadd.f32 %v2072_v27, %v2053_v63 }
 0x5cc   :  { %v2490_v60 = vpop.eup %2489 }
 0x5cd   :  { %v2118_v45 = vadd.f32 1.0, %v2490_v60  ;;  %2491 = vpow2.f32 %v2373_v46 }
 0x5ce   :  { %v2092_v37 = vpop.f32.mrf.mxu2 }
 0x5cf   :  { %2493 = vrcp.f32 %v2118_v45  ;;  %v2093_v22 = vadd.f32 %v2092_v37, %v1950_v0  ;;  %v2112_v40 = vpop.f32.mrf.mxu3  ;;  %v2130_v62 = vand.u32 2147483648, %v2118_v45  ;;  %vm2124_vm6 = vweird.f32 %v2118_v45  ;;  %v2186_v0 = vld [vmem:[#allocation2 + $0x18] sm:$0xff]  ;;  %v2190_v37 = vld [vmem:[#allocation2 + $0x48] sm:$0xff] }
 0x5d0   :  { %v2128_v10 = vand.u32 2147483647, %v2118_v45 }
 0x5d1   :  { %v2113_v58 = vadd.f32 %v2112_v40, %v2093_v22  ;;  %v2131_v25 = vor.u32 1.1754944e-38, %v2130_v62  ;;  %v2194_v22 = vld [vmem:[#allocation2 + $0x38] sm:$0xff]  ;;  %v2196_v40 = vld [vmem:[#allocation2 + $0x70] sm:$0xff] }
 0x5d2   :  { %vm2129_vm10 = vcmp.eq.f32.partialorder %v2128_v10, 8.507059e+37 }
 0x5d3   :  { %v2492_v11 = vpop.eup %2491  ;;  %v2374_v47 = vmul.f32 -1.442695, %v2113_v58 }
 0x5d4   :  { %v2137_v31 = vadd.f32 1.0, %v2492_v11 }
 0x5d5   :  { %v2494_v8 = vpop.eup %2493 }
 0x5d6   :  { %v2120_v9 = vmul.f32 %v2494_v8, %v2118_v45  ;;  %2495 = vrcp.f32 %v2137_v31  ;;  %vm2125_vm5 = vweird.f32 %v2494_v8  ;;  %v2149_v51 = vand.u32 2147483648, %v2137_v31 }
 0x5d7   :  { %2497 = vpow2.f32 %v2374_v47  ;;  %vm2126_vm7 = vmor %vm2124_vm6, %vm2125_vm5  ;;  %v2147_v21 = vand.u32 2147483647, %v2137_v31  ;;  %vm2143_vm9 = vweird.f32 %v2137_v31 }
 0x5d8   :  { %v2121_v6 = vsub.f32 1.0, %v2120_v9  ;;  %2499 = vtanh.f32 %v2073_v38  ;;  %v2150_v44 = vor.u32 1.1754944e-38, %v2149_v51 }
 0x5d9   :  { %vm2148_vm12 = vcmp.eq.f32.partialorder %v2147_v21, 8.507059e+37 }
 0x5da   :  { %v2122_v42 = vmul.f32 %v2494_v8, %v2121_v6 }
 0x5dc   :  { %v2496_v55 = vpop.eup %2495  ;;  %v2123_v17 = vadd.f32 %v2494_v8, %v2122_v42 }
 0x5dd   :  { %v2498_v5 = vpop.eup %2497  ;;  %v2139_v36 = vmul.f32 %v2496_v55, %v2137_v31  ;;  %vm2144_vm8 = vweird.f32 %v2496_v55 }
 0x5de   :  { %v2157_v28 = vadd.f32 1.0, %v2498_v5  ;;  %v2127_v20 = vsel %vm2126_vm7, %v2494_v8, %v2123_v17  ;;  %vm2145_vm11 = vmor %vm2143_vm9, %vm2144_vm8  ;;  %v2500_v1 = vpop.eup %2499 }
 0x5df   :  { %v2140_v61 = vsub.f32 1.0, %v2139_v36  ;;  %v2132_v59 = vsel %vm2129_vm10, %v2131_v25, %v2127_v20 }
 0x5e0   :  { %2501 = vrcp.f32 %v2157_v28  ;;  %v2174_v48 = vmul.f32 %v2500_v1, %v2132_v59  ;;  %v2169_v7 = vand.u32 2147483648, %v2157_v28  ;;  %v2167_v26 = vand.u32 2147483647, %v2157_v28  ;;  %v2252_v58 = vpop.f32.mrf.mxu0 }
 0x5e1   :  { %v2141_v2 = vmul.f32 %v2496_v55, %v2140_v61  ;;  %vm2163_vm14 = vweird.f32 %v2157_v28  ;;  %v2253_v31 = vadd.f32 %v2376_v14, %v2252_v58 }
 0x5e2   :  { %v2170_v56 = vor.u32 1.1754944e-38, %v2169_v7  ;;  %vm2168_vm0 = vcmp.eq.f32.partialorder %v2167_v26, 8.507059e+37 }
 0x5e3   :  { %v2142_v24 = vadd.f32 %v2496_v55, %v2141_v2 }
 0x5e5   :  { %v2146_v52 = vsel %vm2145_vm11, %v2496_v55, %v2142_v24 }
 0x5e6   :  { %v2502_v13 = vpop.eup %2501  ;;  %v2151_v12 = vsel %vm2148_vm12, %v2150_v44, %v2146_v52 }
 0x5e7   :  { %v2173_v4 = vmul.f32 %v2151_v12, %v5872_v43  ;;  %v2159_v15 = vmul.f32 %v2502_v13, %v2157_v28  ;;  %vm2164_vm13 = vweird.f32 %v2502_v13 }
 0x5e8   :  { %vm2165_vm15 = vmor %vm2163_vm14, %vm2164_vm13  ;;  %v2255_v11 = vpop.f32.mrf.mxu0 }
 0x5e9   :  { %v2175_v39 = vadd.f32 %v2174_v48, %v2173_v4  ;;  %v2160_v34 = vsub.f32 1.0, %v2159_v15  ;;  %v2256_v8 = vadd.f32 %v2376_v14, %v2255_v11 }
 0x5eb   :  { %2503 = vtanh.f32 %v2175_v39  ;;  %v2161_v29 = vmul.f32 %v2502_v13, %v2160_v34 }
 0x5ed   :  { %v2162_v33 = vadd.f32 %v2502_v13, %v2161_v29 }
 0x5ef   :  { %v2166_v30 = vsel %vm2165_vm15, %v2502_v13, %v2162_v33 }
 0x5f0   :  { %v2171_v46 = vsel %vm2168_vm0, %v2170_v56, %v2166_v30  ;;  %v2258_v47 = vpop.f32.mrf.mxu0 }
 0x5f1   :  { %v2504_v23 = vpop.eup %2503  ;;  %v2259_v63 = vadd.f32 %v2376_v14, %v2258_v47 }
 0x5f2   :  { %v2177_v41 = vmul.f32 %v2504_v23, %v2171_v46 }
 0x5f4   :  { %2178 = vst [vmem:[#allocation2 + $0x78] sm:$0x3] %v2177_v41  ;;  %v2180_v43 = vrot.slane %v2177_v41, 2 }
 0x5f6   :  { %2182 = vst [vmem:[#allocation2] sm:$0x3] %v2180_v43 }
 0x5f8   :  { %v2261_v54 = vpop.f32.mrf.mxu0 }
 0x5f9   :  { %v2262_v19 = vadd.f32 %v2376_v14, %v2261_v54 }
 0x5fb   :  { %v2197_v60 = vld [vmem:[#allocation2 + $0x78] sm:$0xff] }
 0x5fc   :  { %2272 = vmatmul.f32.gmra.mxu0 %v2197_v60 }
 0x5fd   :  { %v2184_v45 = vld [vmem:[#allocation2] sm:$0xff] }
 0x5fe   :  { %2292 = vmatmul.f32.vlgmr.msrb.gmra.mxu1 %v2184_v45 }
 0x600   :  { %v2264_v27 = vpop.f32.mrf.mxu0 }
 0x601   :  { %v2265_v35 = vadd.f32 %v2376_v14, %v2264_v27 }
 0x606   :  { %2295 = vmatmul.f32.gmra.mxu1 %v2186_v0 }
 0x608   :  { %v2267_v36 = vpop.f32.mrf.mxu0 }
 0x609   :  { %v2268_v17 = vadd.f32 %v2376_v14, %v2267_v36 }
 0x60e   :  { %2298 = vmatmul.f32.gmra.mxu1 %v2188_v49 }
 0x610   :  { %v2270_v28 = vpop.f32.mrf.mxu0 }
 0x611   :  { %v2271_v61 = vadd.f32 %v2376_v14, %v2270_v28 }
 0x616   :  { %2301 = vmatmul.f32.gmra.mxu1 %v2190_v37 }
 0x61e   :  { %2304 = vmatmul.f32.gmra.mxu1 %v2192_v53 }
 0x626   :  { %2307 = vmatmul.f32.gmra.mxu1 %v2194_v22 }
 0x62e   :  { %2310 = vmatmul.f32.gmra.mxu1 %v2196_v40 }
 0x636   :  { %2313 = vmatmul.f32.gmra.mxu1 %v2198_v57 }
 0x679   :  { %v2273_v2 = vpop.f32.mrf.mxu0 }
 0x67a   :  { %v2274_v20 = vadd.f32 %v2376_v14, %v2273_v2 }
 0x67b   :  { %v2293_v32 = vpop.f32.mrf.mxu1 }
 0x67c   :  { %v2294_v18 = vadd.f32 %v2293_v32, %v2253_v31 }
 0x67e   :  { %2317 = vst [vmem:[%s6013_s6] sm:$0xff] %v2294_v18 }
 0x683   :  { %v2296_v3 = vpop.f32.mrf.mxu1 }
 0x684   :  { %v2297_v9 = vadd.f32 %v2296_v3, %v2256_v8 }
 0x686   :  { %2318 = vst [vmem:[%s6013_s6 + $0x8] sm:$0xff] %v2297_v9 }
 0x68b   :  { %v2299_v6 = vpop.f32.mrf.mxu1 }
 0x68c   :  { %v2300_v50 = vadd.f32 %v2299_v6, %v2259_v63 }
 0x68e   :  { %2319 = vst [vmem:[%s6013_s6 + $0x10] sm:$0xff] %v2300_v50 }
 0x693   :  { %v2302_v42 = vpop.f32.mrf.mxu1 }
 0x694   :  { %v2303_v38 = vadd.f32 %v2302_v42, %v2262_v19 }
 0x696   :  { %2320 = vst [vmem:[%s6013_s6 + $0x18] sm:$0xff] %v2303_v38 }
 0x69b   :  { %v2305_v55 = vpop.f32.mrf.mxu1 }
 0x69c   :  { %v2306_v5 = vadd.f32 %v2305_v55, %v2265_v35 }
 0x69e   :  { %2321 = vst [vmem:[%s6013_s6 + $0x20] sm:$0xff] %v2306_v5 }
 0x6a3   :  { %v2308_v16 = vpop.f32.mrf.mxu1 }
 0x6a4   :  { %v2309_v62 = vadd.f32 %v2308_v16, %v2268_v17 }
 0x6a6   :  { %2322 = vst [vmem:[%s6013_s6 + $0x28] sm:$0xff] %v2309_v62 }
 0x6ab   :  { %v2311_v10 = vpop.f32.mrf.mxu1 }
 0x6ac   :  { %v2312_v51 = vadd.f32 %v2311_v10, %v2271_v61 }
 0x6ae   :  { %2323 = vst [vmem:[%s6013_s6 + $0x30] sm:$0xff] %v2312_v51 }
 0x6b3   :  { %v2314_v21 = vpop.f32.mrf.mxu1 }
 0x6b4   :  { %v2315_v25 = vadd.f32 %v2314_v21, %v2274_v20 }
 0x6b6   :  { %2324 = vst [vmem:[%s6013_s6 + $0x38] sm:$0xff] %v2315_v25 }

</bundles_post_ra>
